<compile_context>
chip_gen: v7x
topology: tpu7x:2x2x1
jax: 0.10.0
libtpu: 0.0.40
codegen_flags: <defaults>
</compile_context>

<pallas_src>
import functools
import math

import jax
import jax.numpy as jnp
from jax.experimental import pallas as pl
from jax.experimental.pallas import tpu as pltpu

# ---------------- model config (small, consistent with DiT.__init__) --------
BATCH = 2
NUM_INPUTS = 8          # N (num_inputs)
HIDDEN = 32             # hidden_size == input_size (required by DiT.forward)
NUM_HEADS = 4
DEPTH = 2
MLP_RATIO = 4.0
MLP_HIDDEN = int(HIDDEN * MLP_RATIO)
FREQ_DIM = 256          # frequency_embedding_size
EPS = 1e-6
GELU_C = math.sqrt(2.0 / math.pi)


# ----------------------------- kernel helpers --------------------------------
def _layernorm(v):
    mu = jnp.mean(v, axis=-1, keepdims=True)
    var = jnp.mean((v - mu) ** 2, axis=-1, keepdims=True)
    return (v - mu) * jax.lax.rsqrt(var + EPS)


def _gelu_tanh(u):
    return 0.5 * u * (1.0 + jnp.tanh(GELU_C * (u + 0.044715 * u * u * u)))


# ----------------------------- fused kernel ----------------------------------
def dit_fused_kernel(x_ref, pos_ref, tf_ref, c_ref,
                     tw1_ref, tb1_ref, tw2_ref, tb2_ref,
                     w_ada_ref, b_ada_ref,
                     w_q_ref, b_q_ref, w_k_ref, b_k_ref, w_v_ref, b_v_ref,
                     w_proj_ref, b_proj_ref,
                     w_fc1_ref, b_fc1_ref, w_fc2_ref, b_fc2_ref,
                     wf_ada_ref, bf_ada_ref, w_lin_ref, b_lin_ref,
                     o_ref,
                     x_vmem, csilu_vmem,
                     *, batch, seq, num_heads):
    d = pl.program_id(0)
    B, N, H = batch, seq, num_heads
    BN, D = x_vmem.shape
    hd = D // H
    f32 = jnp.float32

    # ---- prologue (depth step 0): timestep-embedder MLP + conditioning ------
    @pl.when(d == 0)
    def _prologue():
        tf = tf_ref[...]                                                # (B, F)
        h = jnp.dot(tf, tw1_ref[...], preferred_element_type=f32) + tb1_ref[...]
        h = h * jax.nn.sigmoid(h)                                       # SiLU
        cc = jnp.dot(h, tw2_ref[...], preferred_element_type=f32) + tb2_ref[...]
        cc = cc + c_ref[...]                                            # t_emb + c  (B, D)
        cs = cc * jax.nn.sigmoid(cc)                                    # SiLU(cond)
        # Row-broadcast SiLU(cond) once: rows [b*N, (b+1)*N) share batch b.
        for b in range(B):
            csilu_vmem[pl.ds(b * N, N), :] = jnp.broadcast_to(cs[b:b + 1, :], (N, D))
        # pos-embed add (pos is pre-tiled to (B*N, D) in the wrapper).
        x_vmem[...] = x_ref[...] + pos_ref[...]

    # ---- DiT block #d (x stays resident in VMEM across depth) ---------------
    x = x_vmem[...]                                                     # (BN, D) f32
    cs_rows = csilu_vmem[...]                                           # (BN, D)

    # adaLN-Zero modulation: 6 chunks via leading-axis-packed weights (no lane
    # slicing of a (B, 6D) result).
    def mod_chunk(i):
        return (jnp.dot(cs_rows, w_ada_ref[i], preferred_element_type=f32)
                + b_ada_ref[i])                                         # (BN, D)

    shift_msa, scale_msa, gate_msa = mod_chunk(0), mod_chunk(1), mod_chunk(2)
    shift_mlp, scale_mlp, gate_mlp = mod_chunk(3), mod_chunk(4), mod_chunk(5)

    # ---- attention branch ----------------------------------------------------
    h = _layernorm(x) * (1.0 + scale_msa) + shift_msa                   # modulate
    q_scale = 1.0 / math.sqrt(hd)                                       # folded into q
    attn = jnp.zeros((BN, D), f32)
    for j in range(H):                                                  # static unroll; per-head
        qj = (jnp.dot(h, w_q_ref[j], preferred_element_type=f32) + b_q_ref[j]) * q_scale
        kj = jnp.dot(h, w_k_ref[j], preferred_element_type=f32) + b_k_ref[j]
        vj = jnp.dot(h, w_v_ref[j], preferred_element_type=f32) + b_v_ref[j]
        # leading-dim split only (N == sublane tile) -> layout preserving
        qb = qj.reshape(B, N, hd)
        kb = kj.reshape(B, N, hd)
        vb = vj.reshape(B, N, hd)
        s = jnp.einsum("bnd,bmd->bnm", qb, kb, preferred_element_type=f32)  # (B,N,N)
        s = s - jnp.max(s, axis=-1, keepdims=True)
        p = jnp.exp(s)
        p = p * pl.reciprocal(jnp.sum(p, axis=-1, keepdims=True), approx=True)
        ob = jnp.einsum("bnm,bmd->bnd", p, vb, preferred_element_type=f32)  # (B,N,hd)
        # concat(heads) @ W_proj  ==  sum_j head_j @ W_proj[j]  (no concat/relayout)
        attn = attn + jnp.dot(ob.reshape(BN, hd), w_proj_ref[j],
                              preferred_element_type=f32)
    attn = attn + b_proj_ref[...]
    x = x + gate_msa * attn

    # ---- MLP branch ----------------------------------------------------------
    h2 = _layernorm(x) * (1.0 + scale_mlp) + shift_mlp
    u = jnp.dot(h2, w_fc1_ref[...], preferred_element_type=f32) + b_fc1_ref[...]
    u = _gelu_tanh(u)
    m = jnp.dot(u, w_fc2_ref[...], preferred_element_type=f32) + b_fc2_ref[...]
    x = x + gate_mlp * m
    x_vmem[...] = x

    # ---- epilogue (last depth step): FinalLayer ------------------------------
    @pl.when(d == pl.num_programs(0) - 1)
    def _epilogue():
        shift = jnp.dot(cs_rows, wf_ada_ref[0], preferred_element_type=f32) + bf_ada_ref[0]
        scale = jnp.dot(cs_rows, wf_ada_ref[1], preferred_element_type=f32) + bf_ada_ref[1]
        hf = _layernorm(x) * (1.0 + scale) + shift
        y = jnp.dot(hf, w_lin_ref[...], preferred_element_type=f32) + b_lin_ref[...]
        o_ref[...] = y.astype(o_ref.dtype)


# ----------------------------- pallas_call wrapper ----------------------------
def _const_spec(shape):
    nd = len(shape)
    return pl.BlockSpec(shape, lambda d: (0,) * nd)


def _depth_spec(shape_wo_depth):
    nd = len(shape_wo_depth)
    return pl.BlockSpec((None,) + tuple(shape_wo_depth),
                        lambda d: (d,) + (0,) * nd)


def timestep_embedding(t, dim, max_period=10000):
    half = dim // 2
    freqs = jnp.exp(-math.log(max_period) * jnp.arange(half, dtype=jnp.float32) / half)
    args = t.astype(jnp.float32)[:, None] * freqs[None]
    return jnp.concatenate([jnp.cos(args), jnp.sin(args)], axis=-1)   # dim is even


def dit_forward(params, x, t, c):
    B, N, D = x.shape
    BN = B * N
    H = NUM_HEADS
    hd = D // H
    MH = MLP_HIDDEN

    tf = timestep_embedding(t, FREQ_DIM)                               # (B, 256)
    x_flat = x.reshape(BN, D)
    pos_flat = jnp.broadcast_to(params["pos_embed"][None], (B, N, D)).reshape(BN, D)

    kernel = functools.partial(dit_fused_kernel, batch=B, seq=N, num_heads=H)
    grid_spec = pltpu.PrefetchScalarGridSpec(
        num_scalar_prefetch=0,
        grid=(DEPTH,),
        in_specs=[
            _const_spec((BN, D)),            # x (flattened)
            _const_spec((BN, D)),            # pos_embed (row-tiled)
            _const_spec((B, FREQ_DIM)),      # tf
            _const_spec((B, D)),             # c
            _const_spec((FREQ_DIM, D)),      # t_w1
            _const_spec((1, D)),             # t_b1
            _const_spec((D, D)),             # t_w2
            _const_spec((1, D)),             # t_b2
            _depth_spec((6, D, D)),          # w_ada
            _depth_spec((6, 1, D)),          # b_ada
            _depth_spec((H, D, hd)),         # w_q
            _depth_spec((H, 1, hd)),         # b_q
            _depth_spec((H, D, hd)),         # w_k
            _depth_spec((H, 1, hd)),         # b_k
            _depth_spec((H, D, hd)),         # w_v
            _depth_spec((H, 1, hd)),         # b_v
            _depth_spec((H, hd, D)),         # w_proj
            _depth_spec((1, D)),             # b_proj
            _depth_spec((D, MH)),            # w_fc1
            _depth_spec((1, MH)),            # b_fc1
            _depth_spec((MH, D)),            # w_fc2
            _depth_spec((1, D)),             # b_fc2
            _const_spec((2, D, D)),          # wf_ada (final layer)
            _const_spec((2, 1, D)),          # bf_ada
            _const_spec((D, D)),             # w_lin
            _const_spec((1, D)),             # b_lin
        ],
        # Constant index over the depth axis -> output stays resident, single
        # HBM store at grid end.  (Out last-dim is 32 < 128, but with full
        # fusion only one 2 KiB masked store remains -> negligible.)
        out_specs=pl.BlockSpec((BN, D), lambda d: (0, 0)),
        scratch_shapes=[pltpu.VMEM((BN, D), jnp.float32),   # x resident across depth
                        pltpu.VMEM((BN, D), jnp.float32)],  # SiLU(cond) row-broadcast
    )
    out = pl.pallas_call(
        kernel,
        out_shape=jax.ShapeDtypeStruct((BN, D), jnp.float32),
        grid_spec=grid_spec,
        compiler_params=pltpu.CompilerParams(dimension_semantics=("arbitrary",)),
    )(x_flat, pos_flat, tf, c,
      params["t_w1"], params["t_b1"], params["t_w2"], params["t_b2"],
      params["w_ada"], params["b_ada"],
      params["w_q"], params["b_q"], params["w_k"], params["b_k"],
      params["w_v"], params["b_v"],
      params["w_proj"], params["b_proj"],
      params["w_fc1"], params["b_fc1"], params["w_fc2"], params["b_fc2"],
      params["wf_ada"], params["bf_ada"], params["w_lin"], params["b_lin"])
    return out.reshape(B, N, D)


# --------------------- pure-JAX reference (for verification) ------------------
def ref_forward(params, x, t, c):
    B, N, D = x.shape
    H, hd = NUM_HEADS, D // NUM_HEADS
    x = x + params["pos_embed"][None]
    tf = timestep_embedding(t, FREQ_DIM)
    hm = jax.nn.silu(tf @ params["t_w1"] + params["t_b1"])
    cc = hm @ params["t_w2"] + params["t_b2"] + c

    def ln(v):
        mu = v.mean(-1, keepdims=True)
        var = ((v - mu) ** 2).mean(-1, keepdims=True)
        return (v - mu) / jnp.sqrt(var + EPS)

    for l in range(DEPTH):
        # rebuild standard-layout matrices from the kernel packing
        w_ada = params["w_ada"][l].transpose(1, 0, 2).reshape(D, 6 * D)
        b_ada = params["b_ada"][l].reshape(6 * D)
        mod = jax.nn.silu(cc) @ w_ada + b_ada
        sm, scm, gm, sp, scp, gp = jnp.split(mod, 6, axis=-1)

        w_q = params["w_q"][l].transpose(1, 0, 2).reshape(D, D)
        w_k = params["w_k"][l].transpose(1, 0, 2).reshape(D, D)
        w_v = params["w_v"][l].transpose(1, 0, 2).reshape(D, D)
        b_q = params["b_q"][l].reshape(D)
        b_k = params["b_k"][l].reshape(D)
        b_v = params["b_v"][l].reshape(D)
        w_o = params["w_proj"][l].reshape(D, D)
        b_o = params["b_proj"][l].reshape(D)

        h = ln(x) * (1 + scm[:, None]) + sm[:, None]
        q = (h @ w_q + b_q).reshape(B, N, H, hd).transpose(0, 2, 1, 3)
        k = (h @ w_k + b_k).reshape(B, N, H, hd).transpose(0, 2, 1, 3)
        v = (h @ w_v + b_v).reshape(B, N, H, hd).transpose(0, 2, 1, 3)
        s = jnp.einsum("bhqd,bhkd->bhqk", q, k) / math.sqrt(hd)
        a = jax.nn.softmax(s, axis=-1)
        o = jnp.einsum("bhqk,bhkd->bhqd", a, v).transpose(0, 2, 1, 3).reshape(B, N, D)
        x = x + gm[:, None] * (o @ w_o + b_o)

        h = ln(x) * (1 + scp[:, None]) + sp[:, None]
        u = h @ params["w_fc1"][l] + params["b_fc1"][l]
        u = 0.5 * u * (1 + jnp.tanh(GELU_C * (u + 0.044715 * u ** 3)))
        x = x + gp[:, None] * (u @ params["w_fc2"][l] + params["b_fc2"][l])

    wf = params["wf_ada"].transpose(1, 0, 2).reshape(D, 2 * D)
    bf = params["bf_ada"].reshape(2 * D)
    mod = jax.nn.silu(cc) @ wf + bf
    sh, sc = jnp.split(mod, 2, axis=-1)
    x = ln(x) * (1 + sc[:, None]) + sh[:, None]
    return x @ params["w_lin"] + params["b_lin"]


# ----------------------------- parameter init ---------------------------------
def init_params(key):
    D, H, hd, MH = HIDDEN, NUM_HEADS, HIDDEN // NUM_HEADS, MLP_HIDDEN
    ks = jax.random.split(key, 12)

    def xavier(k, shape, fan_in, fan_out):
        bound = math.sqrt(6.0 / (fan_in + fan_out))
        return jax.random.uniform(k, shape, jnp.float32, -bound, bound)

    def normal(k, shape, std=0.02):
        return std * jax.random.normal(k, shape, jnp.float32)

    # NOTE: PyTorch's init_weights zeroes the adaLN / final-linear weights
    # (adaLN-Zero).  Non-trivial random weights are used here so the kernel's
    # compute path is exercised by the numerical check; shapes and forward
    # semantics are unchanged.
    w_ada_std = xavier(ks[0], (DEPTH, D, 6 * D), D, 6 * D)
    b_ada_std = normal(ks[1], (DEPTH, 6 * D))
    w_qkv_std = xavier(ks[2], (DEPTH, D, 3 * D), D, 3 * D)
    b_qkv_std = normal(ks[3], (DEPTH, 3 * D))
    w_proj_std = xavier(ks[4], (DEPTH, D, D), D, D)
    b_proj_std = normal(ks[5], (DEPTH, D))
    w_fc1 = xavier(ks[6], (DEPTH, D, MH), D, MH)
    b_fc1 = normal(ks[7], (DEPTH, MH))
    w_fc2 = xavier(ks[8], (DEPTH, MH, D), MH, D)
    b_fc2 = normal(ks[9], (DEPTH, D))

    fk = jax.random.split(ks[10], 4)
    wf_ada_std = xavier(fk[0], (D, 2 * D), D, 2 * D)
    bf_ada_std = normal(fk[1], (2 * D,))
    w_lin = xavier(fk[2], (D, D), D, D)
    b_lin = normal(fk[3], (D,))

    tk = jax.random.split(ks[11], 5)
    params = dict(
        pos_embed=normal(tk[0], (NUM_INPUTS, D)),
        t_w1=normal(tk[1], (FREQ_DIM, D)),
        t_b1=normal(tk[2], (1, D)),
        t_w2=normal(tk[3], (D, D)),
        t_b2=normal(tk[4], (1, D)),
        # per-depth weights repacked for leading-axis chunk/head selection
        w_ada=w_ada_std.reshape(DEPTH, D, 6, D).transpose(0, 2, 1, 3),   # (L,6,D,D)
        b_ada=b_ada_std.reshape(DEPTH, 6, 1, D),
        w_proj=w_proj_std.reshape(DEPTH, H, hd, D),                      # (L,H,hd,D)
        b_proj=b_proj_std.reshape(DEPTH, 1, D),
        w_fc1=w_fc1, b_fc1=b_fc1.reshape(DEPTH, 1, MH),
        w_fc2=w_fc2, b_fc2=b_fc2.reshape(DEPTH, 1, D),
        wf_ada=wf_ada_std.reshape(D, 2, D).transpose(1, 0, 2),           # (2,D,D)
        bf_ada=bf_ada_std.reshape(2, 1, D),
        w_lin=w_lin, b_lin=b_lin.reshape(1, D),
    )
    qkv = w_qkv_std.reshape(DEPTH, D, 3, H, hd).transpose(2, 0, 3, 1, 4)   # (3,L,H,D,hd)
    bqkv = b_qkv_std.reshape(DEPTH, 3, H, 1, hd).transpose(1, 0, 2, 3, 4)  # (3,L,H,1,hd)
    params.update(w_q=qkv[0], w_k=qkv[1], w_v=qkv[2],
                  b_q=bqkv[0], b_k=bqkv[1], b_v=bqkv[2])
    return params


# --------------------------------- main ---------------------------------------
if __name__ == "__main__":
    key = jax.random.PRNGKey(0)
    pkey, xkey, tkey, ckey = jax.random.split(key, 4)
    params = init_params(pkey)

    x = jax.random.normal(xkey, (BATCH, NUM_INPUTS, HIDDEN), jnp.float32)
    t = jax.random.uniform(tkey, (BATCH,), jnp.float32, 0.0, 1000.0)
    c = jax.random.normal(ckey, (BATCH, HIDDEN), jnp.float32)

    out = jax.jit(dit_forward)(params, x, t, c)
    out = jax.block_until_ready(out)
    assert out.shape == (BATCH, NUM_INPUTS, HIDDEN)

    with jax.default_matmul_precision("float32"):
        ref = ref_forward(params, x, t, c)
    max_err = float(jnp.max(jnp.abs(out - ref)))
    # approx-reciprocal softmax denominator -> slightly relaxed tolerance
    assert jnp.allclose(out, ref, atol=2e-3, rtol=2e-3), max_err

    print("KERNEL_OK")
</pallas_src>

<mosaic_0001>
module attributes {stable_mosaic.version = 11 : i64} {
  func.func @dit_fused_kernel(%arg0: i32, %arg1: memref<16x32xf32, #tpu.memory_space<vmem>>, %arg2: memref<16x32xf32, #tpu.memory_space<vmem>>, %arg3: memref<2x256xf32, #tpu.memory_space<vmem>>, %arg4: memref<2x32xf32, #tpu.memory_space<vmem>>, %arg5: memref<256x32xf32, #tpu.memory_space<vmem>>, %arg6: memref<1x32xf32, #tpu.memory_space<vmem>>, %arg7: memref<32x32xf32, #tpu.memory_space<vmem>>, %arg8: memref<1x32xf32, #tpu.memory_space<vmem>>, %arg9: memref<1x6x32x32xf32, #tpu.memory_space<vmem>>, %arg10: memref<1x6x1x32xf32, #tpu.memory_space<vmem>>, %arg11: memref<1x4x32x8xf32, #tpu.memory_space<vmem>>, %arg12: memref<1x4x1x8xf32, #tpu.memory_space<vmem>>, %arg13: memref<1x4x32x8xf32, #tpu.memory_space<vmem>>, %arg14: memref<1x4x1x8xf32, #tpu.memory_space<vmem>>, %arg15: memref<1x4x32x8xf32, #tpu.memory_space<vmem>>, %arg16: memref<1x4x1x8xf32, #tpu.memory_space<vmem>>, %arg17: memref<1x4x8x32xf32, #tpu.memory_space<vmem>>, %arg18: memref<1x1x32xf32, #tpu.memory_space<vmem>>, %arg19: memref<1x32x128xf32, #tpu.memory_space<vmem>>, %arg20: memref<1x1x128xf32, #tpu.memory_space<vmem>>, %arg21: memref<1x128x32xf32, #tpu.memory_space<vmem>>, %arg22: memref<1x1x32xf32, #tpu.memory_space<vmem>>, %arg23: memref<2x32x32xf32, #tpu.memory_space<vmem>>, %arg24: memref<2x1x32xf32, #tpu.memory_space<vmem>>, %arg25: memref<32x32xf32, #tpu.memory_space<vmem>>, %arg26: memref<1x32xf32, #tpu.memory_space<vmem>>, %arg27: memref<16x32xf32, #tpu.memory_space<vmem>>, %arg28: memref<16x32xf32, #tpu.memory_space<vmem>>, %arg29: memref<16x32xf32, #tpu.memory_space<vmem>>) attributes {dimension_semantics = [#tpu.dimension_semantics<arbitrary>], iteration_bounds = array<i64: 2>, scalar_prefetch = 0 : i64, scratch_operands = 2 : i64, tpu.core_type = #tpu.core_type<tc>, window_params = [{pipeline_mode = #tpu.pipeline_mode<synchronous>, transform_indices = @transform_0, window_bounds = array<i64: 16, 32>}, {pipeline_mode = #tpu.pipeline_mode<synchronous>, transform_indices = @transform_1, window_bounds = array<i64: 16, 32>}, {pipeline_mode = #tpu.pipeline_mode<synchronous>, transform_indices = @transform_2, window_bounds = array<i64: 2, 256>}, {pipeline_mode = #tpu.pipeline_mode<synchronous>, transform_indices = @transform_3, window_bounds = array<i64: 2, 32>}, {pipeline_mode = #tpu.pipeline_mode<synchronous>, transform_indices = @transform_4, window_bounds = array<i64: 256, 32>}, {pipeline_mode = #tpu.pipeline_mode<synchronous>, transform_indices = @transform_5, window_bounds = array<i64: 1, 32>}, {pipeline_mode = #tpu.pipeline_mode<synchronous>, transform_indices = @transform_6, window_bounds = array<i64: 32, 32>}, {pipeline_mode = #tpu.pipeline_mode<synchronous>, transform_indices = @transform_7, window_bounds = array<i64: 1, 32>}, {transform_indices = @transform_8, window_bounds = array<i64: 1, 6, 32, 32>}, {transform_indices = @transform_9, window_bounds = array<i64: 1, 6, 1, 32>}, {transform_indices = @transform_10, window_bounds = array<i64: 1, 4, 32, 8>}, {transform_indices = @transform_11, window_bounds = array<i64: 1, 4, 1, 8>}, {transform_indices = @transform_12, window_bounds = array<i64: 1, 4, 32, 8>}, {transform_indices = @transform_13, window_bounds = array<i64: 1, 4, 1, 8>}, {transform_indices = @transform_14, window_bounds = array<i64: 1, 4, 32, 8>}, {transform_indices = @transform_15, window_bounds = array<i64: 1, 4, 1, 8>}, {transform_indices = @transform_16, window_bounds = array<i64: 1, 4, 8, 32>}, {transform_indices = @transform_17, window_bounds = array<i64: 1, 1, 32>}, {transform_indices = @transform_18, window_bounds = array<i64: 1, 32, 128>}, {transform_indices = @transform_19, window_bounds = array<i64: 1, 1, 128>}, {transform_indices = @transform_20, window_bounds = array<i64: 1, 128, 32>}, {transform_indices = @transform_21, window_bounds = array<i64: 1, 1, 32>}, {pipeline_mode = #tpu.pipeline_mode<synchronous>, transform_indices = @transform_22, window_bounds = array<i64: 2, 32, 32>}, {pipeline_mode = #tpu.pipeline_mode<synchronous>, transform_indices = @transform_23, window_bounds = array<i64: 2, 1, 32>}, {pipeline_mode = #tpu.pipeline_mode<synchronous>, transform_indices = @transform_24, window_bounds = array<i64: 32, 32>}, {pipeline_mode = #tpu.pipeline_mode<synchronous>, transform_indices = @transform_25, window_bounds = array<i64: 1, 32>}, {pipeline_mode = #tpu.pipeline_mode<synchronous>, transform_indices = @transform_26, window_bounds = array<i64: 16, 32>}]} {
    %c0_i32 = arith.constant 0 : i32
    %0 = arith.cmpi eq, %arg0, %c0_i32 : i32
    %1 = arith.extui %0 : i1 to i32
    %c0_i32_0 = arith.constant 0 : i32
    %2 = arith.cmpi ne, %1, %c0_i32_0 : i32
    scf.if %2 {
      %c0_237 = arith.constant 0 : index
      %c0_238 = arith.constant 0 : index
      %303 = vector.load %arg3[%c0_237, %c0_238] : memref<2x256xf32, #tpu.memory_space<vmem>>, vector<2x256xf32>
      %c0_239 = arith.constant 0 : index
      %c0_240 = arith.constant 0 : index
      %304 = vector.load %arg5[%c0_239, %c0_240] : memref<256x32xf32, #tpu.memory_space<vmem>>, vector<256x32xf32>
      %cst_241 = arith.constant dense<0.000000e+00> : vector<2x32xf32>
      %305 = tpu.matmul %303, %304, %cst_241 {dimension_numbers = #tpu.dot_dimension_numbers<[1], [0], [0], [1], [0, 0, 1, 1], [], []>} : vector<2x256xf32>, vector<256x32xf32>, vector<2x32xf32> -> vector<2x32xf32>
      %c0_242 = arith.constant 0 : index
      %c0_243 = arith.constant 0 : index
      %306 = vector.load %arg6[%c0_242, %c0_243] : memref<1x32xf32, #tpu.memory_space<vmem>>, vector<1x32xf32>
      %307 = vector.broadcast %306 : vector<1x32xf32> to vector<2x32xf32>
      %308 = arith.addf %305, %307 : vector<2x32xf32>
      %309 = arith.negf %308 : vector<2x32xf32>
      %310 = math.exp %309 : vector<2x32xf32>
      %cst_244 = arith.constant 1.000000e+00 : f32
      %311 = vector.broadcast %cst_244 : f32 to vector<2x32xf32>
      %312 = arith.addf %311, %310 : vector<2x32xf32>
      %313 = arith.divf %311, %312 : vector<2x32xf32>
      %314 = arith.mulf %308, %313 : vector<2x32xf32>
      %c0_245 = arith.constant 0 : index
      %c0_246 = arith.constant 0 : index
      %315 = vector.load %arg7[%c0_245, %c0_246] : memref<32x32xf32, #tpu.memory_space<vmem>>, vector<32x32xf32>
      %cst_247 = arith.constant dense<0.000000e+00> : vector<2x32xf32>
      %316 = tpu.matmul %314, %315, %cst_247 {dimension_numbers = #tpu.dot_dimension_numbers<[1], [0], [0], [1], [0, 0, 1, 1], [], []>} : vector<2x32xf32>, vector<32x32xf32>, vector<2x32xf32> -> vector<2x32xf32>
      %c0_248 = arith.constant 0 : index
      %c0_249 = arith.constant 0 : index
      %317 = vector.load %arg8[%c0_248, %c0_249] : memref<1x32xf32, #tpu.memory_space<vmem>>, vector<1x32xf32>
      %318 = vector.broadcast %317 : vector<1x32xf32> to vector<2x32xf32>
      %319 = arith.addf %316, %318 : vector<2x32xf32>
      %c0_250 = arith.constant 0 : index
      %c0_251 = arith.constant 0 : index
      %320 = vector.load %arg4[%c0_250, %c0_251] : memref<2x32xf32, #tpu.memory_space<vmem>>, vector<2x32xf32>
      %321 = arith.addf %319, %320 : vector<2x32xf32>
      %322 = arith.negf %321 : vector<2x32xf32>
      %323 = math.exp %322 : vector<2x32xf32>
      %cst_252 = arith.constant 1.000000e+00 : f32
      %324 = vector.broadcast %cst_252 : f32 to vector<2x32xf32>
      %325 = arith.addf %324, %323 : vector<2x32xf32>
      %326 = arith.divf %324, %325 : vector<2x32xf32>
      %327 = arith.mulf %321, %326 : vector<2x32xf32>
      %328 = vector.extract_strided_slice %327 {offsets = [0, 0], sizes = [1, 32], strides = [1, 1]} : vector<2x32xf32> to vector<1x32xf32>
      %329 = vector.shape_cast %328 : vector<1x32xf32> to vector<1x32xf32>
      %330 = vector.broadcast %329 : vector<1x32xf32> to vector<8x32xf32>
      %c0_253 = arith.constant 0 : index
      %c0_254 = arith.constant 0 : index
      %331 = vector.load %arg29[%c0_253, %c0_254] : memref<16x32xf32, #tpu.memory_space<vmem>>, vector<8x32xf32>
      tpu.vector_store %arg29[%c0_253, %c0_254], %330 {strides = array<i32>} : memref<16x32xf32, #tpu.memory_space<vmem>>, vector<8x32xf32>,
      %332 = vector.extract_strided_slice %327 {offsets = [1, 0], sizes = [1, 32], strides = [1, 1]} : vector<2x32xf32> to vector<1x32xf32>
      %333 = vector.shape_cast %332 : vector<1x32xf32> to vector<1x32xf32>
      %334 = vector.broadcast %333 : vector<1x32xf32> to vector<8x32xf32>
      %c8 = arith.constant 8 : index
      %c0_255 = arith.constant 0 : index
      %335 = vector.load %arg29[%c8, %c0_255] : memref<16x32xf32, #tpu.memory_space<vmem>>, vector<8x32xf32>
      tpu.vector_store %arg29[%c8, %c0_255], %334 {strides = array<i32>} : memref<16x32xf32, #tpu.memory_space<vmem>>, vector<8x32xf32>,
      %c0_256 = arith.constant 0 : index
      %c0_257 = arith.constant 0 : index
      %336 = vector.load %arg1[%c0_256, %c0_257] : memref<16x32xf32, #tpu.memory_space<vmem>>, vector<16x32xf32>
      %c0_258 = arith.constant 0 : index
      %c0_259 = arith.constant 0 : index
      %337 = vector.load %arg2[%c0_258, %c0_259] : memref<16x32xf32, #tpu.memory_space<vmem>>, vector<16x32xf32>
      %338 = arith.addf %336, %337 : vector<16x32xf32>
      %c0_260 = arith.constant 0 : index
      %c0_261 = arith.constant 0 : index
      %339 = vector.load %arg28[%c0_260, %c0_261] : memref<16x32xf32, #tpu.memory_space<vmem>>, vector<16x32xf32>
      tpu.vector_store %arg28[%c0_260, %c0_261], %338 {strides = array<i32>} : memref<16x32xf32, #tpu.memory_space<vmem>>, vector<16x32xf32>,
    } else {
    }
    %c0 = arith.constant 0 : index
    %c0_1 = arith.constant 0 : index
    %3 = vector.load %arg28[%c0, %c0_1] : memref<16x32xf32, #tpu.memory_space<vmem>>, vector<16x32xf32>
    %c0_2 = arith.constant 0 : index
    %c0_3 = arith.constant 0 : index
    %4 = vector.load %arg29[%c0_2, %c0_3] : memref<16x32xf32, #tpu.memory_space<vmem>>, vector<16x32xf32>
    %c0_4 = arith.constant 0 : index
    %c0_5 = arith.constant 0 : index
    %c0_6 = arith.constant 0 : index
    %c0_7 = arith.constant 0 : index
    %5 = vector.load %arg9[%c0_4, %c0_5, %c0_6, %c0_7] : memref<1x6x32x32xf32, #tpu.memory_space<vmem>>, vector<1x1x32x32xf32>
    %6 = vector.shape_cast %5 : vector<1x1x32x32xf32> to vector<32x32xf32>
    %cst = arith.constant dense<0.000000e+00> : vector<16x32xf32>
    %7 = tpu.matmul %4, %6, %cst {dimension_numbers = #tpu.dot_dimension_numbers<[1], [0], [0], [1], [0, 0, 1, 1], [], []>} : vector<16x32xf32>, vector<32x32xf32>, vector<16x32xf32> -> vector<16x32xf32>
    %c0_8 = arith.constant 0 : index
    %c0_9 = arith.constant 0 : index
    %c0_10 = arith.constant 0 : index
    %c0_11 = arith.constant 0 : index
    %8 = vector.load %arg10[%c0_8, %c0_9, %c0_10, %c0_11] : memref<1x6x1x32xf32, #tpu.memory_space<vmem>>, vector<1x1x1x32xf32>
    %9 = vector.shape_cast %8 : vector<1x1x1x32xf32> to vector<1x32xf32>
    %10 = vector.broadcast %9 : vector<1x32xf32> to vector<16x32xf32>
    %11 = arith.addf %7, %10 : vector<16x32xf32>
    %c0_12 = arith.constant 0 : index
    %c1 = arith.constant 1 : index
    %c0_13 = arith.constant 0 : index
    %c0_14 = arith.constant 0 : index
    %12 = vector.load %arg9[%c0_12, %c1, %c0_13, %c0_14] : memref<1x6x32x32xf32, #tpu.memory_space<vmem>>, vector<1x1x32x32xf32>
    %13 = vector.shape_cast %12 : vector<1x1x32x32xf32> to vector<32x32xf32>
    %cst_15 = arith.constant dense<0.000000e+00> : vector<16x32xf32>
    %14 = tpu.matmul %4, %13, %cst_15 {dimension_numbers = #tpu.dot_dimension_numbers<[1], [0], [0], [1], [0, 0, 1, 1], [], []>} : vector<16x32xf32>, vector<32x32xf32>, vector<16x32xf32> -> vector<16x32xf32>
    %c0_16 = arith.constant 0 : index
    %c1_17 = arith.constant 1 : index
    %c0_18 = arith.constant 0 : index
    %c0_19 = arith.constant 0 : index
    %15 = vector.load %arg10[%c0_16, %c1_17, %c0_18, %c0_19] : memref<1x6x1x32xf32, #tpu.memory_space<vmem>>, vector<1x1x1x32xf32>
    %16 = vector.shape_cast %15 : vector<1x1x1x32xf32> to vector<1x32xf32>
    %17 = vector.broadcast %16 : vector<1x32xf32> to vector<16x32xf32>
    %18 = arith.addf %14, %17 : vector<16x32xf32>
    %c0_20 = arith.constant 0 : index
    %c2 = arith.constant 2 : index
    %c0_21 = arith.constant 0 : index
    %c0_22 = arith.constant 0 : index
    %19 = vector.load %arg9[%c0_20, %c2, %c0_21, %c0_22] : memref<1x6x32x32xf32, #tpu.memory_space<vmem>>, vector<1x1x32x32xf32>
    %20 = vector.shape_cast %19 : vector<1x1x32x32xf32> to vector<32x32xf32>
    %cst_23 = arith.constant dense<0.000000e+00> : vector<16x32xf32>
    %21 = tpu.matmul %4, %20, %cst_23 {dimension_numbers = #tpu.dot_dimension_numbers<[1], [0], [0], [1], [0, 0, 1, 1], [], []>} : vector<16x32xf32>, vector<32x32xf32>, vector<16x32xf32> -> vector<16x32xf32>
    %c0_24 = arith.constant 0 : index
    %c2_25 = arith.constant 2 : index
    %c0_26 = arith.constant 0 : index
    %c0_27 = arith.constant 0 : index
    %22 = vector.load %arg10[%c0_24, %c2_25, %c0_26, %c0_27] : memref<1x6x1x32xf32, #tpu.memory_space<vmem>>, vector<1x1x1x32xf32>
    %23 = vector.shape_cast %22 : vector<1x1x1x32xf32> to vector<1x32xf32>
    %24 = vector.broadcast %23 : vector<1x32xf32> to vector<16x32xf32>
    %25 = arith.addf %21, %24 : vector<16x32xf32>
    %c0_28 = arith.constant 0 : index
    %c3 = arith.constant 3 : index
    %c0_29 = arith.constant 0 : index
    %c0_30 = arith.constant 0 : index
    %26 = vector.load %arg9[%c0_28, %c3, %c0_29, %c0_30] : memref<1x6x32x32xf32, #tpu.memory_space<vmem>>, vector<1x1x32x32xf32>
    %27 = vector.shape_cast %26 : vector<1x1x32x32xf32> to vector<32x32xf32>
    %cst_31 = arith.constant dense<0.000000e+00> : vector<16x32xf32>
    %28 = tpu.matmul %4, %27, %cst_31 {dimension_numbers = #tpu.dot_dimension_numbers<[1], [0], [0], [1], [0, 0, 1, 1], [], []>} : vector<16x32xf32>, vector<32x32xf32>, vector<16x32xf32> -> vector<16x32xf32>
    %c0_32 = arith.constant 0 : index
    %c3_33 = arith.constant 3 : index
    %c0_34 = arith.constant 0 : index
    %c0_35 = arith.constant 0 : index
    %29 = vector.load %arg10[%c0_32, %c3_33, %c0_34, %c0_35] : memref<1x6x1x32xf32, #tpu.memory_space<vmem>>, vector<1x1x1x32xf32>
    %30 = vector.shape_cast %29 : vector<1x1x1x32xf32> to vector<1x32xf32>
    %31 = vector.broadcast %30 : vector<1x32xf32> to vector<16x32xf32>
    %32 = arith.addf %28, %31 : vector<16x32xf32>
    %c0_36 = arith.constant 0 : index
    %c4 = arith.constant 4 : index
    %c0_37 = arith.constant 0 : index
    %c0_38 = arith.constant 0 : index
    %33 = vector.load %arg9[%c0_36, %c4, %c0_37, %c0_38] : memref<1x6x32x32xf32, #tpu.memory_space<vmem>>, vector<1x1x32x32xf32>
    %34 = vector.shape_cast %33 : vector<1x1x32x32xf32> to vector<32x32xf32>
    %cst_39 = arith.constant dense<0.000000e+00> : vector<16x32xf32>
    %35 = tpu.matmul %4, %34, %cst_39 {dimension_numbers = #tpu.dot_dimension_numbers<[1], [0], [0], [1], [0, 0, 1, 1], [], []>} : vector<16x32xf32>, vector<32x32xf32>, vector<16x32xf32> -> vector<16x32xf32>
    %c0_40 = arith.constant 0 : index
    %c4_41 = arith.constant 4 : index
    %c0_42 = arith.constant 0 : index
    %c0_43 = arith.constant 0 : index
    %36 = vector.load %arg10[%c0_40, %c4_41, %c0_42, %c0_43] : memref<1x6x1x32xf32, #tpu.memory_space<vmem>>, vector<1x1x1x32xf32>
    %37 = vector.shape_cast %36 : vector<1x1x1x32xf32> to vector<1x32xf32>
    %38 = vector.broadcast %37 : vector<1x32xf32> to vector<16x32xf32>
    %39 = arith.addf %35, %38 : vector<16x32xf32>
    %c0_44 = arith.constant 0 : index
    %c5 = arith.constant 5 : index
    %c0_45 = arith.constant 0 : index
    %c0_46 = arith.constant 0 : index
    %40 = vector.load %arg9[%c0_44, %c5, %c0_45, %c0_46] : memref<1x6x32x32xf32, #tpu.memory_space<vmem>>, vector<1x1x32x32xf32>
    %41 = vector.shape_cast %40 : vector<1x1x32x32xf32> to vector<32x32xf32>
    %cst_47 = arith.constant dense<0.000000e+00> : vector<16x32xf32>
    %42 = tpu.matmul %4, %41, %cst_47 {dimension_numbers = #tpu.dot_dimension_numbers<[1], [0], [0], [1], [0, 0, 1, 1], [], []>} : vector<16x32xf32>, vector<32x32xf32>, vector<16x32xf32> -> vector<16x32xf32>
    %c0_48 = arith.constant 0 : index
    %c5_49 = arith.constant 5 : index
    %c0_50 = arith.constant 0 : index
    %c0_51 = arith.constant 0 : index
    %43 = vector.load %arg10[%c0_48, %c5_49, %c0_50, %c0_51] : memref<1x6x1x32xf32, #tpu.memory_space<vmem>>, vector<1x1x1x32xf32>
    %44 = vector.shape_cast %43 : vector<1x1x1x32xf32> to vector<1x32xf32>
    %45 = vector.broadcast %44 : vector<1x32xf32> to vector<16x32xf32>
    %46 = arith.addf %42, %45 : vector<16x32xf32>
    %cst_52 = arith.constant dense<0.000000e+00> : vector<16xf32>
    %47 = vector.multi_reduction <add>, %3, %cst_52 [1] : vector<16x32xf32> to vector<16xf32>
    %48 = vector.shape_cast %47 : vector<16xf32> to vector<16x1xf32>
    %cst_53 = arith.constant 3.200000e+01 : f32
    %49 = vector.broadcast %cst_53 : f32 to vector<16x1xf32>
    %50 = arith.divf %48, %49 : vector<16x1xf32>
    %51 = vector.broadcast %50 : vector<16x1xf32> to vector<16x32xf32>
    %52 = arith.subf %3, %51 : vector<16x32xf32>
    %53 = arith.mulf %52, %52 : vector<16x32xf32>
    %cst_54 = arith.constant dense<0.000000e+00> : vector<16xf32>
    %54 = vector.multi_reduction <add>, %53, %cst_54 [1] : vector<16x32xf32> to vector<16xf32>
    %55 = vector.shape_cast %54 : vector<16xf32> to vector<16x1xf32>
    %cst_55 = arith.constant 3.200000e+01 : f32
    %56 = vector.broadcast %cst_55 : f32 to vector<16x1xf32>
    %57 = arith.divf %55, %56 : vector<16x1xf32>
    %58 = vector.broadcast %50 : vector<16x1xf32> to vector<16x32xf32>
    %59 = arith.subf %3, %58 : vector<16x32xf32>
    %cst_56 = arith.constant 9.99999997E-7 : f32
    %60 = vector.broadcast %cst_56 : f32 to vector<16x1xf32>
    %61 = arith.addf %57, %60 : vector<16x1xf32>
    %62 = math.rsqrt %61 : vector<16x1xf32>
    %63 = vector.broadcast %62 : vector<16x1xf32> to vector<16x32xf32>
    %64 = arith.mulf %59, %63 : vector<16x32xf32>
    %cst_57 = arith.constant 1.000000e+00 : f32
    %65 = vector.broadcast %cst_57 : f32 to vector<16x32xf32>
    %66 = arith.addf %65, %18 : vector<16x32xf32>
    %67 = arith.mulf %64, %66 : vector<16x32xf32>
    %68 = arith.addf %67, %11 : vector<16x32xf32>
    %cst_58 = arith.constant 0.000000e+00 : f32
    %69 = vector.broadcast %cst_58 : f32 to vector<16x32xf32>
    %c0_59 = arith.constant 0 : index
    %c0_60 = arith.constant 0 : index
    %c0_61 = arith.constant 0 : index
    %c0_62 = arith.constant 0 : index
    %70 = vector.load %arg11[%c0_59, %c0_60, %c0_61, %c0_62] : memref<1x4x32x8xf32, #tpu.memory_space<vmem>>, vector<1x1x32x8xf32>
    %71 = vector.shape_cast %70 : vector<1x1x32x8xf32> to vector<32x8xf32>
    %cst_63 = arith.constant dense<0.000000e+00> : vector<16x8xf32>
    %72 = tpu.matmul %68, %71, %cst_63 {dimension_numbers = #tpu.dot_dimension_numbers<[1], [0], [0], [1], [0, 0, 1, 1], [], []>} : vector<16x32xf32>, vector<32x8xf32>, vector<16x8xf32> -> vector<16x8xf32>
    %c0_64 = arith.constant 0 : index
    %c0_65 = arith.constant 0 : index
    %c0_66 = arith.constant 0 : index
    %c0_67 = arith.constant 0 : index
    %73 = vector.load %arg12[%c0_64, %c0_65, %c0_66, %c0_67] : memref<1x4x1x8xf32, #tpu.memory_space<vmem>>, vector<1x1x1x8xf32>
    %74 = vector.shape_cast %73 : vector<1x1x1x8xf32> to vector<1x8xf32>
    %75 = vector.broadcast %74 : vector<1x8xf32> to vector<16x8xf32>
    %76 = arith.addf %72, %75 : vector<16x8xf32>
    %cst_68 = arith.constant 0.353553385 : f32
    %77 = vector.broadcast %cst_68 : f32 to vector<16x8xf32>
    %78 = arith.mulf %76, %77 : vector<16x8xf32>
    %c0_69 = arith.constant 0 : index
    %c0_70 = arith.constant 0 : index
    %c0_71 = arith.constant 0 : index
    %c0_72 = arith.constant 0 : index
    %79 = vector.load %arg13[%c0_69, %c0_70, %c0_71, %c0_72] : memref<1x4x32x8xf32, #tpu.memory_space<vmem>>, vector<1x1x32x8xf32>
    %80 = vector.shape_cast %79 : vector<1x1x32x8xf32> to vector<32x8xf32>
    %cst_73 = arith.constant dense<0.000000e+00> : vector<16x8xf32>
    %81 = tpu.matmul %68, %80, %cst_73 {dimension_numbers = #tpu.dot_dimension_numbers<[1], [0], [0], [1], [0, 0, 1, 1], [], []>} : vector<16x32xf32>, vector<32x8xf32>, vector<16x8xf32> -> vector<16x8xf32>
    %c0_74 = arith.constant 0 : index
    %c0_75 = arith.constant 0 : index
    %c0_76 = arith.constant 0 : index
    %c0_77 = arith.constant 0 : index
    %82 = vector.load %arg14[%c0_74, %c0_75, %c0_76, %c0_77] : memref<1x4x1x8xf32, #tpu.memory_space<vmem>>, vector<1x1x1x8xf32>
    %83 = vector.shape_cast %82 : vector<1x1x1x8xf32> to vector<1x8xf32>
    %84 = vector.broadcast %83 : vector<1x8xf32> to vector<16x8xf32>
    %85 = arith.addf %81, %84 : vector<16x8xf32>
    %c0_78 = arith.constant 0 : index
    %c0_79 = arith.constant 0 : index
    %c0_80 = arith.constant 0 : index
    %c0_81 = arith.constant 0 : index
    %86 = vector.load %arg15[%c0_78, %c0_79, %c0_80, %c0_81] : memref<1x4x32x8xf32, #tpu.memory_space<vmem>>, vector<1x1x32x8xf32>
    %87 = vector.shape_cast %86 : vector<1x1x32x8xf32> to vector<32x8xf32>
    %cst_82 = arith.constant dense<0.000000e+00> : vector<16x8xf32>
    %88 = tpu.matmul %68, %87, %cst_82 {dimension_numbers = #tpu.dot_dimension_numbers<[1], [0], [0], [1], [0, 0, 1, 1], [], []>} : vector<16x32xf32>, vector<32x8xf32>, vector<16x8xf32> -> vector<16x8xf32>
    %c0_83 = arith.constant 0 : index
    %c0_84 = arith.constant 0 : index
    %c0_85 = arith.constant 0 : index
    %c0_86 = arith.constant 0 : index
    %89 = vector.load %arg16[%c0_83, %c0_84, %c0_85, %c0_86] : memref<1x4x1x8xf32, #tpu.memory_space<vmem>>, vector<1x1x1x8xf32>
    %90 = vector.shape_cast %89 : vector<1x1x1x8xf32> to vector<1x8xf32>
    %91 = vector.broadcast %90 : vector<1x8xf32> to vector<16x8xf32>
    %92 = arith.addf %88, %91 : vector<16x8xf32>
    %93 = vector.shape_cast %78 : vector<16x8xf32> to vector<2x8x8xf32>
    %94 = vector.shape_cast %85 : vector<16x8xf32> to vector<2x8x8xf32>
    %95 = vector.shape_cast %92 : vector<16x8xf32> to vector<2x8x8xf32>
    "tpu.trace_start"() <{level = 10 : i32, message = "bnd,bmd->bnm"}> : () -> ()
    %cst_87 = arith.constant dense<0.000000e+00> : vector<2x8x8xf32>
    %96 = tpu.matmul %93, %94, %cst_87 {dimension_numbers = #tpu.dot_dimension_numbers<[2], [2], [1], [1], [0, 0, 0, 1, 1, 1], [0], [0]>} : vector<2x8x8xf32>, vector<2x8x8xf32>, vector<2x8x8xf32> -> vector<2x8x8xf32>
    "tpu.trace_stop"() : () -> ()
    %cst_88 = arith.constant dense<0xFF800000> : vector<2x8xf32>
    %97 = vector.multi_reduction <maximumf>, %96, %cst_88 [2] : vector<2x8x8xf32> to vector<2x8xf32>
    %98 = vector.shape_cast %97 : vector<2x8xf32> to vector<2x8x1xf32>
    %99 = vector.broadcast %98 : vector<2x8x1xf32> to vector<2x8x8xf32>
    %100 = arith.subf %96, %99 : vector<2x8x8xf32>
    %101 = math.exp %100 : vector<2x8x8xf32>
    %cst_89 = arith.constant dense<0.000000e+00> : vector<2x8xf32>
    %102 = vector.multi_reduction <add>, %101, %cst_89 [2] : vector<2x8x8xf32> to vector<2x8xf32>
    %103 = vector.shape_cast %102 : vector<2x8xf32> to vector<2x8x1xf32>
    %104 = tpu.reciprocal %103 {approx = true} : vector<2x8x1xf32> -> vector<2x8x1xf32>
    %105 = vector.broadcast %104 : vector<2x8x1xf32> to vector<2x8x8xf32>
    %106 = arith.mulf %101, %105 : vector<2x8x8xf32>
    "tpu.trace_start"() <{level = 10 : i32, message = "bnm,bmd->bnd"}> : () -> ()
    %cst_90 = arith.constant dense<0.000000e+00> : vector<2x8x8xf32>
    %107 = tpu.matmul %106, %95, %cst_90 {dimension_numbers = #tpu.dot_dimension_numbers<[2], [1], [1], [2], [0, 0, 0, 1, 1, 2], [0], [0]>} : vector<2x8x8xf32>, vector<2x8x8xf32>, vector<2x8x8xf32> -> vector<2x8x8xf32>
    "tpu.trace_stop"() : () -> ()
    %108 = vector.shape_cast %107 : vector<2x8x8xf32> to vector<16x8xf32>
    %c0_91 = arith.constant 0 : index
    %c0_92 = arith.constant 0 : index
    %c0_93 = arith.constant 0 : index
    %c0_94 = arith.constant 0 : index
    %109 = vector.load %arg17[%c0_91, %c0_92, %c0_93, %c0_94] : memref<1x4x8x32xf32, #tpu.memory_space<vmem>>, vector<1x1x8x32xf32>
    %110 = vector.shape_cast %109 : vector<1x1x8x32xf32> to vector<8x32xf32>
    %cst_95 = arith.constant dense<0.000000e+00> : vector<16x32xf32>
    %111 = tpu.matmul %108, %110, %cst_95 {dimension_numbers = #tpu.dot_dimension_numbers<[1], [0], [0], [1], [0, 0, 1, 1], [], []>} : vector<16x8xf32>, vector<8x32xf32>, vector<16x32xf32> -> vector<16x32xf32>
    %112 = arith.addf %69, %111 : vector<16x32xf32>
    %c0_96 = arith.constant 0 : index
    %c1_97 = arith.constant 1 : index
    %c0_98 = arith.constant 0 : index
    %c0_99 = arith.constant 0 : index
    %113 = vector.load %arg11[%c0_96, %c1_97, %c0_98, %c0_99] : memref<1x4x32x8xf32, #tpu.memory_space<vmem>>, vector<1x1x32x8xf32>
    %114 = vector.shape_cast %113 : vector<1x1x32x8xf32> to vector<32x8xf32>
    %cst_100 = arith.constant dense<0.000000e+00> : vector<16x8xf32>
    %115 = tpu.matmul %68, %114, %cst_100 {dimension_numbers = #tpu.dot_dimension_numbers<[1], [0], [0], [1], [0, 0, 1, 1], [], []>} : vector<16x32xf32>, vector<32x8xf32>, vector<16x8xf32> -> vector<16x8xf32>
    %c0_101 = arith.constant 0 : index
    %c1_102 = arith.constant 1 : index
    %c0_103 = arith.constant 0 : index
    %c0_104 = arith.constant 0 : index
    %116 = vector.load %arg12[%c0_101, %c1_102, %c0_103, %c0_104] : memref<1x4x1x8xf32, #tpu.memory_space<vmem>>, vector<1x1x1x8xf32>
    %117 = vector.shape_cast %116 : vector<1x1x1x8xf32> to vector<1x8xf32>
    %118 = vector.broadcast %117 : vector<1x8xf32> to vector<16x8xf32>
    %119 = arith.addf %115, %118 : vector<16x8xf32>
    %cst_105 = arith.constant 0.353553385 : f32
    %120 = vector.broadcast %cst_105 : f32 to vector<16x8xf32>
    %121 = arith.mulf %119, %120 : vector<16x8xf32>
    %c0_106 = arith.constant 0 : index
    %c1_107 = arith.constant 1 : index
    %c0_108 = arith.constant 0 : index
    %c0_109 = arith.constant 0 : index
    %122 = vector.load %arg13[%c0_106, %c1_107, %c0_108, %c0_109] : memref<1x4x32x8xf32, #tpu.memory_space<vmem>>, vector<1x1x32x8xf32>
    %123 = vector.shape_cast %122 : vector<1x1x32x8xf32> to vector<32x8xf32>
    %cst_110 = arith.constant dense<0.000000e+00> : vector<16x8xf32>
    %124 = tpu.matmul %68, %123, %cst_110 {dimension_numbers = #tpu.dot_dimension_numbers<[1], [0], [0], [1], [0, 0, 1, 1], [], []>} : vector<16x32xf32>, vector<32x8xf32>, vector<16x8xf32> -> vector<16x8xf32>
    %c0_111 = arith.constant 0 : index
    %c1_112 = arith.constant 1 : index
    %c0_113 = arith.constant 0 : index
    %c0_114 = arith.constant 0 : index
    %125 = vector.load %arg14[%c0_111, %c1_112, %c0_113, %c0_114] : memref<1x4x1x8xf32, #tpu.memory_space<vmem>>, vector<1x1x1x8xf32>
    %126 = vector.shape_cast %125 : vector<1x1x1x8xf32> to vector<1x8xf32>
    %127 = vector.broadcast %126 : vector<1x8xf32> to vector<16x8xf32>
    %128 = arith.addf %124, %127 : vector<16x8xf32>
    %c0_115 = arith.constant 0 : index
    %c1_116 = arith.constant 1 : index
    %c0_117 = arith.constant 0 : index
    %c0_118 = arith.constant 0 : index
    %129 = vector.load %arg15[%c0_115, %c1_116, %c0_117, %c0_118] : memref<1x4x32x8xf32, #tpu.memory_space<vmem>>, vector<1x1x32x8xf32>
    %130 = vector.shape_cast %129 : vector<1x1x32x8xf32> to vector<32x8xf32>
    %cst_119 = arith.constant dense<0.000000e+00> : vector<16x8xf32>
    %131 = tpu.matmul %68, %130, %cst_119 {dimension_numbers = #tpu.dot_dimension_numbers<[1], [0], [0], [1], [0, 0, 1, 1], [], []>} : vector<16x32xf32>, vector<32x8xf32>, vector<16x8xf32> -> vector<16x8xf32>
    %c0_120 = arith.constant 0 : index
    %c1_121 = arith.constant 1 : index
    %c0_122 = arith.constant 0 : index
    %c0_123 = arith.constant 0 : index
    %132 = vector.load %arg16[%c0_120, %c1_121, %c0_122, %c0_123] : memref<1x4x1x8xf32, #tpu.memory_space<vmem>>, vector<1x1x1x8xf32>
    %133 = vector.shape_cast %132 : vector<1x1x1x8xf32> to vector<1x8xf32>
    %134 = vector.broadcast %133 : vector<1x8xf32> to vector<16x8xf32>
    %135 = arith.addf %131, %134 : vector<16x8xf32>
    %136 = vector.shape_cast %121 : vector<16x8xf32> to vector<2x8x8xf32>
    %137 = vector.shape_cast %128 : vector<16x8xf32> to vector<2x8x8xf32>
    %138 = vector.shape_cast %135 : vector<16x8xf32> to vector<2x8x8xf32>
    "tpu.trace_start"() <{level = 10 : i32, message = "bnd,bmd->bnm"}> : () -> ()
    %cst_124 = arith.constant dense<0.000000e+00> : vector<2x8x8xf32>
    %139 = tpu.matmul %136, %137, %cst_124 {dimension_numbers = #tpu.dot_dimension_numbers<[2], [2], [1], [1], [0, 0, 0, 1, 1, 1], [0], [0]>} : vector<2x8x8xf32>, vector<2x8x8xf32>, vector<2x8x8xf32> -> vector<2x8x8xf32>
    "tpu.trace_stop"() : () -> ()
    %cst_125 = arith.constant dense<0xFF800000> : vector<2x8xf32>
    %140 = vector.multi_reduction <maximumf>, %139, %cst_125 [2] : vector<2x8x8xf32> to vector<2x8xf32>
    %141 = vector.shape_cast %140 : vector<2x8xf32> to vector<2x8x1xf32>
    %142 = vector.broadcast %141 : vector<2x8x1xf32> to vector<2x8x8xf32>
    %143 = arith.subf %139, %142 : vector<2x8x8xf32>
    %144 = math.exp %143 : vector<2x8x8xf32>
    %cst_126 = arith.constant dense<0.000000e+00> : vector<2x8xf32>
    %145 = vector.multi_reduction <add>, %144, %cst_126 [2] : vector<2x8x8xf32> to vector<2x8xf32>
    %146 = vector.shape_cast %145 : vector<2x8xf32> to vector<2x8x1xf32>
    %147 = tpu.reciprocal %146 {approx = true} : vector<2x8x1xf32> -> vector<2x8x1xf32>
    %148 = vector.broadcast %147 : vector<2x8x1xf32> to vector<2x8x8xf32>
    %149 = arith.mulf %144, %148 : vector<2x8x8xf32>
    "tpu.trace_start"() <{level = 10 : i32, message = "bnm,bmd->bnd"}> : () -> ()
    %cst_127 = arith.constant dense<0.000000e+00> : vector<2x8x8xf32>
    %150 = tpu.matmul %149, %138, %cst_127 {dimension_numbers = #tpu.dot_dimension_numbers<[2], [1], [1], [2], [0, 0, 0, 1, 1, 2], [0], [0]>} : vector<2x8x8xf32>, vector<2x8x8xf32>, vector<2x8x8xf32> -> vector<2x8x8xf32>
    "tpu.trace_stop"() : () -> ()
    %151 = vector.shape_cast %150 : vector<2x8x8xf32> to vector<16x8xf32>
    %c0_128 = arith.constant 0 : index
    %c1_129 = arith.constant 1 : index
    %c0_130 = arith.constant 0 : index
    %c0_131 = arith.constant 0 : index
    %152 = vector.load %arg17[%c0_128, %c1_129, %c0_130, %c0_131] : memref<1x4x8x32xf32, #tpu.memory_space<vmem>>, vector<1x1x8x32xf32>
    %153 = vector.shape_cast %152 : vector<1x1x8x32xf32> to vector<8x32xf32>
    %cst_132 = arith.constant dense<0.000000e+00> : vector<16x32xf32>
    %154 = tpu.matmul %151, %153, %cst_132 {dimension_numbers = #tpu.dot_dimension_numbers<[1], [0], [0], [1], [0, 0, 1, 1], [], []>} : vector<16x8xf32>, vector<8x32xf32>, vector<16x32xf32> -> vector<16x32xf32>
    %155 = arith.addf %112, %154 : vector<16x32xf32>
    %c0_133 = arith.constant 0 : index
    %c2_134 = arith.constant 2 : index
    %c0_135 = arith.constant 0 : index
    %c0_136 = arith.constant 0 : index
    %156 = vector.load %arg11[%c0_133, %c2_134, %c0_135, %c0_136] : memref<1x4x32x8xf32, #tpu.memory_space<vmem>>, vector<1x1x32x8xf32>
    %157 = vector.shape_cast %156 : vector<1x1x32x8xf32> to vector<32x8xf32>
    %cst_137 = arith.constant dense<0.000000e+00> : vector<16x8xf32>
    %158 = tpu.matmul %68, %157, %cst_137 {dimension_numbers = #tpu.dot_dimension_numbers<[1], [0], [0], [1], [0, 0, 1, 1], [], []>} : vector<16x32xf32>, vector<32x8xf32>, vector<16x8xf32> -> vector<16x8xf32>
    %c0_138 = arith.constant 0 : index
    %c2_139 = arith.constant 2 : index
    %c0_140 = arith.constant 0 : index
    %c0_141 = arith.constant 0 : index
    %159 = vector.load %arg12[%c0_138, %c2_139, %c0_140, %c0_141] : memref<1x4x1x8xf32, #tpu.memory_space<vmem>>, vector<1x1x1x8xf32>
    %160 = vector.shape_cast %159 : vector<1x1x1x8xf32> to vector<1x8xf32>
    %161 = vector.broadcast %160 : vector<1x8xf32> to vector<16x8xf32>
    %162 = arith.addf %158, %161 : vector<16x8xf32>
    %cst_142 = arith.constant 0.353553385 : f32
    %163 = vector.broadcast %cst_142 : f32 to vector<16x8xf32>
    %164 = arith.mulf %162, %163 : vector<16x8xf32>
    %c0_143 = arith.constant 0 : index
    %c2_144 = arith.constant 2 : index
    %c0_145 = arith.constant 0 : index
    %c0_146 = arith.constant 0 : index
    %165 = vector.load %arg13[%c0_143, %c2_144, %c0_145, %c0_146] : memref<1x4x32x8xf32, #tpu.memory_space<vmem>>, vector<1x1x32x8xf32>
    %166 = vector.shape_cast %165 : vector<1x1x32x8xf32> to vector<32x8xf32>
    %cst_147 = arith.constant dense<0.000000e+00> : vector<16x8xf32>
    %167 = tpu.matmul %68, %166, %cst_147 {dimension_numbers = #tpu.dot_dimension_numbers<[1], [0], [0], [1], [0, 0, 1, 1], [], []>} : vector<16x32xf32>, vector<32x8xf32>, vector<16x8xf32> -> vector<16x8xf32>
    %c0_148 = arith.constant 0 : index
    %c2_149 = arith.constant 2 : index
    %c0_150 = arith.constant 0 : index
    %c0_151 = arith.constant 0 : index
    %168 = vector.load %arg14[%c0_148, %c2_149, %c0_150, %c0_151] : memref<1x4x1x8xf32, #tpu.memory_space<vmem>>, vector<1x1x1x8xf32>
    %169 = vector.shape_cast %168 : vector<1x1x1x8xf32> to vector<1x8xf32>
    %170 = vector.broadcast %169 : vector<1x8xf32> to vector<16x8xf32>
    %171 = arith.addf %167, %170 : vector<16x8xf32>
    %c0_152 = arith.constant 0 : index
    %c2_153 = arith.constant 2 : index
    %c0_154 = arith.constant 0 : index
    %c0_155 = arith.constant 0 : index
    %172 = vector.load %arg15[%c0_152, %c2_153, %c0_154, %c0_155] : memref<1x4x32x8xf32, #tpu.memory_space<vmem>>, vector<1x1x32x8xf32>
    %173 = vector.shape_cast %172 : vector<1x1x32x8xf32> to vector<32x8xf32>
    %cst_156 = arith.constant dense<0.000000e+00> : vector<16x8xf32>
    %174 = tpu.matmul %68, %173, %cst_156 {dimension_numbers = #tpu.dot_dimension_numbers<[1], [0], [0], [1], [0, 0, 1, 1], [], []>} : vector<16x32xf32>, vector<32x8xf32>, vector<16x8xf32> -> vector<16x8xf32>
    %c0_157 = arith.constant 0 : index
    %c2_158 = arith.constant 2 : index
    %c0_159 = arith.constant 0 : index
    %c0_160 = arith.constant 0 : index
    %175 = vector.load %arg16[%c0_157, %c2_158, %c0_159, %c0_160] : memref<1x4x1x8xf32, #tpu.memory_space<vmem>>, vector<1x1x1x8xf32>
    %176 = vector.shape_cast %175 : vector<1x1x1x8xf32> to vector<1x8xf32>
    %177 = vector.broadcast %176 : vector<1x8xf32> to vector<16x8xf32>
    %178 = arith.addf %174, %177 : vector<16x8xf32>
    %179 = vector.shape_cast %164 : vector<16x8xf32> to vector<2x8x8xf32>
    %180 = vector.shape_cast %171 : vector<16x8xf32> to vector<2x8x8xf32>
    %181 = vector.shape_cast %178 : vector<16x8xf32> to vector<2x8x8xf32>
    "tpu.trace_start"() <{level = 10 : i32, message = "bnd,bmd->bnm"}> : () -> ()
    %cst_161 = arith.constant dense<0.000000e+00> : vector<2x8x8xf32>
    %182 = tpu.matmul %179, %180, %cst_161 {dimension_numbers = #tpu.dot_dimension_numbers<[2], [2], [1], [1], [0, 0, 0, 1, 1, 1], [0], [0]>} : vector<2x8x8xf32>, vector<2x8x8xf32>, vector<2x8x8xf32> -> vector<2x8x8xf32>
    "tpu.trace_stop"() : () -> ()
    %cst_162 = arith.constant dense<0xFF800000> : vector<2x8xf32>
    %183 = vector.multi_reduction <maximumf>, %182, %cst_162 [2] : vector<2x8x8xf32> to vector<2x8xf32>
    %184 = vector.shape_cast %183 : vector<2x8xf32> to vector<2x8x1xf32>
    %185 = vector.broadcast %184 : vector<2x8x1xf32> to vector<2x8x8xf32>
    %186 = arith.subf %182, %185 : vector<2x8x8xf32>
    %187 = math.exp %186 : vector<2x8x8xf32>
    %cst_163 = arith.constant dense<0.000000e+00> : vector<2x8xf32>
    %188 = vector.multi_reduction <add>, %187, %cst_163 [2] : vector<2x8x8xf32> to vector<2x8xf32>
    %189 = vector.shape_cast %188 : vector<2x8xf32> to vector<2x8x1xf32>
    %190 = tpu.reciprocal %189 {approx = true} : vector<2x8x1xf32> -> vector<2x8x1xf32>
    %191 = vector.broadcast %190 : vector<2x8x1xf32> to vector<2x8x8xf32>
    %192 = arith.mulf %187, %191 : vector<2x8x8xf32>
    "tpu.trace_start"() <{level = 10 : i32, message = "bnm,bmd->bnd"}> : () -> ()
    %cst_164 = arith.constant dense<0.000000e+00> : vector<2x8x8xf32>
    %193 = tpu.matmul %192, %181, %cst_164 {dimension_numbers = #tpu.dot_dimension_numbers<[2], [1], [1], [2], [0, 0, 0, 1, 1, 2], [0], [0]>} : vector<2x8x8xf32>, vector<2x8x8xf32>, vector<2x8x8xf32> -> vector<2x8x8xf32>
    "tpu.trace_stop"() : () -> ()
    %194 = vector.shape_cast %193 : vector<2x8x8xf32> to vector<16x8xf32>
    %c0_165 = arith.constant 0 : index
    %c2_166 = arith.constant 2 : index
    %c0_167 = arith.constant 0 : index
    %c0_168 = arith.constant 0 : index
    %195 = vector.load %arg17[%c0_165, %c2_166, %c0_167, %c0_168] : memref<1x4x8x32xf32, #tpu.memory_space<vmem>>, vector<1x1x8x32xf32>
    %196 = vector.shape_cast %195 : vector<1x1x8x32xf32> to vector<8x32xf32>
    %cst_169 = arith.constant dense<0.000000e+00> : vector<16x32xf32>
    %197 = tpu.matmul %194, %196, %cst_169 {dimension_numbers = #tpu.dot_dimension_numbers<[1], [0], [0], [1], [0, 0, 1, 1], [], []>} : vector<16x8xf32>, vector<8x32xf32>, vector<16x32xf32> -> vector<16x32xf32>
    %198 = arith.addf %155, %197 : vector<16x32xf32>
    %c0_170 = arith.constant 0 : index
    %c3_171 = arith.constant 3 : index
    %c0_172 = arith.constant 0 : index
    %c0_173 = arith.constant 0 : index
    %199 = vector.load %arg11[%c0_170, %c3_171, %c0_172, %c0_173] : memref<1x4x32x8xf32, #tpu.memory_space<vmem>>, vector<1x1x32x8xf32>
    %200 = vector.shape_cast %199 : vector<1x1x32x8xf32> to vector<32x8xf32>
    %cst_174 = arith.constant dense<0.000000e+00> : vector<16x8xf32>
    %201 = tpu.matmul %68, %200, %cst_174 {dimension_numbers = #tpu.dot_dimension_numbers<[1], [0], [0], [1], [0, 0, 1, 1], [], []>} : vector<16x32xf32>, vector<32x8xf32>, vector<16x8xf32> -> vector<16x8xf32>
    %c0_175 = arith.constant 0 : index
    %c3_176 = arith.constant 3 : index
    %c0_177 = arith.constant 0 : index
    %c0_178 = arith.constant 0 : index
    %202 = vector.load %arg12[%c0_175, %c3_176, %c0_177, %c0_178] : memref<1x4x1x8xf32, #tpu.memory_space<vmem>>, vector<1x1x1x8xf32>
    %203 = vector.shape_cast %202 : vector<1x1x1x8xf32> to vector<1x8xf32>
    %204 = vector.broadcast %203 : vector<1x8xf32> to vector<16x8xf32>
    %205 = arith.addf %201, %204 : vector<16x8xf32>
    %cst_179 = arith.constant 0.353553385 : f32
    %206 = vector.broadcast %cst_179 : f32 to vector<16x8xf32>
    %207 = arith.mulf %205, %206 : vector<16x8xf32>
    %c0_180 = arith.constant 0 : index
    %c3_181 = arith.constant 3 : index
    %c0_182 = arith.constant 0 : index
    %c0_183 = arith.constant 0 : index
    %208 = vector.load %arg13[%c0_180, %c3_181, %c0_182, %c0_183] : memref<1x4x32x8xf32, #tpu.memory_space<vmem>>, vector<1x1x32x8xf32>
    %209 = vector.shape_cast %208 : vector<1x1x32x8xf32> to vector<32x8xf32>
    %cst_184 = arith.constant dense<0.000000e+00> : vector<16x8xf32>
    %210 = tpu.matmul %68, %209, %cst_184 {dimension_numbers = #tpu.dot_dimension_numbers<[1], [0], [0], [1], [0, 0, 1, 1], [], []>} : vector<16x32xf32>, vector<32x8xf32>, vector<16x8xf32> -> vector<16x8xf32>
    %c0_185 = arith.constant 0 : index
    %c3_186 = arith.constant 3 : index
    %c0_187 = arith.constant 0 : index
    %c0_188 = arith.constant 0 : index
    %211 = vector.load %arg14[%c0_185, %c3_186, %c0_187, %c0_188] : memref<1x4x1x8xf32, #tpu.memory_space<vmem>>, vector<1x1x1x8xf32>
    %212 = vector.shape_cast %211 : vector<1x1x1x8xf32> to vector<1x8xf32>
    %213 = vector.broadcast %212 : vector<1x8xf32> to vector<16x8xf32>
    %214 = arith.addf %210, %213 : vector<16x8xf32>
    %c0_189 = arith.constant 0 : index
    %c3_190 = arith.constant 3 : index
    %c0_191 = arith.constant 0 : index
    %c0_192 = arith.constant 0 : index
    %215 = vector.load %arg15[%c0_189, %c3_190, %c0_191, %c0_192] : memref<1x4x32x8xf32, #tpu.memory_space<vmem>>, vector<1x1x32x8xf32>
    %216 = vector.shape_cast %215 : vector<1x1x32x8xf32> to vector<32x8xf32>
    %cst_193 = arith.constant dense<0.000000e+00> : vector<16x8xf32>
    %217 = tpu.matmul %68, %216, %cst_193 {dimension_numbers = #tpu.dot_dimension_numbers<[1], [0], [0], [1], [0, 0, 1, 1], [], []>} : vector<16x32xf32>, vector<32x8xf32>, vector<16x8xf32> -> vector<16x8xf32>
    %c0_194 = arith.constant 0 : index
    %c3_195 = arith.constant 3 : index
    %c0_196 = arith.constant 0 : index
    %c0_197 = arith.constant 0 : index
    %218 = vector.load %arg16[%c0_194, %c3_195, %c0_196, %c0_197] : memref<1x4x1x8xf32, #tpu.memory_space<vmem>>, vector<1x1x1x8xf32>
    %219 = vector.shape_cast %218 : vector<1x1x1x8xf32> to vector<1x8xf32>
    %220 = vector.broadcast %219 : vector<1x8xf32> to vector<16x8xf32>
    %221 = arith.addf %217, %220 : vector<16x8xf32>
    %222 = vector.shape_cast %207 : vector<16x8xf32> to vector<2x8x8xf32>
    %223 = vector.shape_cast %214 : vector<16x8xf32> to vector<2x8x8xf32>
    %224 = vector.shape_cast %221 : vector<16x8xf32> to vector<2x8x8xf32>
    "tpu.trace_start"() <{level = 10 : i32, message = "bnd,bmd->bnm"}> : () -> ()
    %cst_198 = arith.constant dense<0.000000e+00> : vector<2x8x8xf32>
    %225 = tpu.matmul %222, %223, %cst_198 {dimension_numbers = #tpu.dot_dimension_numbers<[2], [2], [1], [1], [0, 0, 0, 1, 1, 1], [0], [0]>} : vector<2x8x8xf32>, vector<2x8x8xf32>, vector<2x8x8xf32> -> vector<2x8x8xf32>
    "tpu.trace_stop"() : () -> ()
    %cst_199 = arith.constant dense<0xFF800000> : vector<2x8xf32>
    %226 = vector.multi_reduction <maximumf>, %225, %cst_199 [2] : vector<2x8x8xf32> to vector<2x8xf32>
    %227 = vector.shape_cast %226 : vector<2x8xf32> to vector<2x8x1xf32>
    %228 = vector.broadcast %227 : vector<2x8x1xf32> to vector<2x8x8xf32>
    %229 = arith.subf %225, %228 : vector<2x8x8xf32>
    %230 = math.exp %229 : vector<2x8x8xf32>
    %cst_200 = arith.constant dense<0.000000e+00> : vector<2x8xf32>
    %231 = vector.multi_reduction <add>, %230, %cst_200 [2] : vector<2x8x8xf32> to vector<2x8xf32>
    %232 = vector.shape_cast %231 : vector<2x8xf32> to vector<2x8x1xf32>
    %233 = tpu.reciprocal %232 {approx = true} : vector<2x8x1xf32> -> vector<2x8x1xf32>
    %234 = vector.broadcast %233 : vector<2x8x1xf32> to vector<2x8x8xf32>
    %235 = arith.mulf %230, %234 : vector<2x8x8xf32>
    "tpu.trace_start"() <{level = 10 : i32, message = "bnm,bmd->bnd"}> : () -> ()
    %cst_201 = arith.constant dense<0.000000e+00> : vector<2x8x8xf32>
    %236 = tpu.matmul %235, %224, %cst_201 {dimension_numbers = #tpu.dot_dimension_numbers<[2], [1], [1], [2], [0, 0, 0, 1, 1, 2], [0], [0]>} : vector<2x8x8xf32>, vector<2x8x8xf32>, vector<2x8x8xf32> -> vector<2x8x8xf32>
    "tpu.trace_stop"() : () -> ()
    %237 = vector.shape_cast %236 : vector<2x8x8xf32> to vector<16x8xf32>
    %c0_202 = arith.constant 0 : index
    %c3_203 = arith.constant 3 : index
    %c0_204 = arith.constant 0 : index
    %c0_205 = arith.constant 0 : index
    %238 = vector.load %arg17[%c0_202, %c3_203, %c0_204, %c0_205] : memref<1x4x8x32xf32, #tpu.memory_space<vmem>>, vector<1x1x8x32xf32>
    %239 = vector.shape_cast %238 : vector<1x1x8x32xf32> to vector<8x32xf32>
    %cst_206 = arith.constant dense<0.000000e+00> : vector<16x32xf32>
    %240 = tpu.matmul %237, %239, %cst_206 {dimension_numbers = #tpu.dot_dimension_numbers<[1], [0], [0], [1], [0, 0, 1, 1], [], []>} : vector<16x8xf32>, vector<8x32xf32>, vector<16x32xf32> -> vector<16x32xf32>
    %241 = arith.addf %198, %240 : vector<16x32xf32>
    %c0_207 = arith.constant 0 : index
    %c0_208 = arith.constant 0 : index
    %c0_209 = arith.constant 0 : index
    %242 = vector.load %arg18[%c0_207, %c0_208, %c0_209] : memref<1x1x32xf32, #tpu.memory_space<vmem>>, vector<1x1x32xf32>
    %243 = vector.shape_cast %242 : vector<1x1x32xf32> to vector<1x32xf32>
    %244 = vector.broadcast %243 : vector<1x32xf32> to vector<16x32xf32>
    %245 = arith.addf %241, %244 : vector<16x32xf32>
    %246 = arith.mulf %25, %245 : vector<16x32xf32>
    %247 = arith.addf %3, %246 : vector<16x32xf32>
    %cst_210 = arith.constant dense<0.000000e+00> : vector<16xf32>
    %248 = vector.multi_reduction <add>, %247, %cst_210 [1] : vector<16x32xf32> to vector<16xf32>
    %249 = vector.shape_cast %248 : vector<16xf32> to vector<16x1xf32>
    %cst_211 = arith.constant 3.200000e+01 : f32
    %250 = vector.broadcast %cst_211 : f32 to vector<16x1xf32>
    %251 = arith.divf %249, %250 : vector<16x1xf32>
    %252 = vector.broadcast %251 : vector<16x1xf32> to vector<16x32xf32>
    %253 = arith.subf %247, %252 : vector<16x32xf32>
    %254 = arith.mulf %253, %253 : vector<16x32xf32>
    %cst_212 = arith.constant dense<0.000000e+00> : vector<16xf32>
    %255 = vector.multi_reduction <add>, %254, %cst_212 [1] : vector<16x32xf32> to vector<16xf32>
    %256 = vector.shape_cast %255 : vector<16xf32> to vector<16x1xf32>
    %cst_213 = arith.constant 3.200000e+01 : f32
    %257 = vector.broadcast %cst_213 : f32 to vector<16x1xf32>
    %258 = arith.divf %256, %257 : vector<16x1xf32>
    %259 = vector.broadcast %251 : vector<16x1xf32> to vector<16x32xf32>
    %260 = arith.subf %247, %259 : vector<16x32xf32>
    %cst_214 = arith.constant 9.99999997E-7 : f32
    %261 = vector.broadcast %cst_214 : f32 to vector<16x1xf32>
    %262 = arith.addf %258, %261 : vector<16x1xf32>
    %263 = math.rsqrt %262 : vector<16x1xf32>
    %264 = vector.broadcast %263 : vector<16x1xf32> to vector<16x32xf32>
    %265 = arith.mulf %260, %264 : vector<16x32xf32>
    %cst_215 = arith.constant 1.000000e+00 : f32
    %266 = vector.broadcast %cst_215 : f32 to vector<16x32xf32>
    %267 = arith.addf %266, %39 : vector<16x32xf32>
    %268 = arith.mulf %265, %267 : vector<16x32xf32>
    %269 = arith.addf %268, %32 : vector<16x32xf32>
    %c0_216 = arith.constant 0 : index
    %c0_217 = arith.constant 0 : index
    %c0_218 = arith.constant 0 : index
    %270 = vector.load %arg19[%c0_216, %c0_217, %c0_218] : memref<1x32x128xf32, #tpu.memory_space<vmem>>, vector<1x32x128xf32>
    %271 = vector.shape_cast %270 : vector<1x32x128xf32> to vector<32x128xf32>
    %cst_219 = arith.constant dense<0.000000e+00> : vector<16x128xf32>
    %272 = tpu.matmul %269, %271, %cst_219 {dimension_numbers = #tpu.dot_dimension_numbers<[1], [0], [0], [1], [0, 0, 1, 1], [], []>} : vector<16x32xf32>, vector<32x128xf32>, vector<16x128xf32> -> vector<16x128xf32>
    %c0_220 = arith.constant 0 : index
    %c0_221 = arith.constant 0 : index
    %c0_222 = arith.constant 0 : index
    %273 = vector.load %arg20[%c0_220, %c0_221, %c0_222] : memref<1x1x128xf32, #tpu.memory_space<vmem>>, vector<1x1x128xf32>
    %274 = vector.shape_cast %273 : vector<1x1x128xf32> to vector<1x128xf32>
    %275 = vector.broadcast %274 : vector<1x128xf32> to vector<16x128xf32>
    %276 = arith.addf %272, %275 : vector<16x128xf32>
    %cst_223 = arith.constant 5.000000e-01 : f32
    %277 = vector.broadcast %cst_223 : f32 to vector<16x128xf32>
    %278 = arith.mulf %277, %276 : vector<16x128xf32>
    %cst_224 = arith.constant 4.471500e-02 : f32
    %279 = vector.broadcast %cst_224 : f32 to vector<16x128xf32>
    %280 = arith.mulf %279, %276 : vector<16x128xf32>
    %281 = arith.mulf %280, %276 : vector<16x128xf32>
    %282 = arith.mulf %281, %276 : vector<16x128xf32>
    %283 = arith.addf %276, %282 : vector<16x128xf32>
    %cst_225 = arith.constant 0.797884583 : f32
    %284 = vector.broadcast %cst_225 : f32 to vector<16x128xf32>
    %285 = arith.mulf %284, %283 : vector<16x128xf32>
    %286 = math.tanh %285 : vector<16x128xf32>
    %cst_226 = arith.constant 1.000000e+00 : f32
    %287 = vector.broadcast %cst_226 : f32 to vector<16x128xf32>
    %288 = arith.addf %287, %286 : vector<16x128xf32>
    %289 = arith.mulf %278, %288 : vector<16x128xf32>
    %c0_227 = arith.constant 0 : index
    %c0_228 = arith.constant 0 : index
    %c0_229 = arith.constant 0 : index
    %290 = vector.load %arg21[%c0_227, %c0_228, %c0_229] : memref<1x128x32xf32, #tpu.memory_space<vmem>>, vector<1x128x32xf32>
    %291 = vector.shape_cast %290 : vector<1x128x32xf32> to vector<128x32xf32>
    %cst_230 = arith.constant dense<0.000000e+00> : vector<16x32xf32>
    %292 = tpu.matmul %289, %291, %cst_230 {dimension_numbers = #tpu.dot_dimension_numbers<[1], [0], [0], [1], [0, 0, 1, 1], [], []>} : vector<16x128xf32>, vector<128x32xf32>, vector<16x32xf32> -> vector<16x32xf32>
    %c0_231 = arith.constant 0 : index
    %c0_232 = arith.constant 0 : index
    %c0_233 = arith.constant 0 : index
    %293 = vector.load %arg22[%c0_231, %c0_232, %c0_233] : memref<1x1x32xf32, #tpu.memory_space<vmem>>, vector<1x1x32xf32>
    %294 = vector.shape_cast %293 : vector<1x1x32xf32> to vector<1x32xf32>
    %295 = vector.broadcast %294 : vector<1x32xf32> to vector<16x32xf32>
    %296 = arith.addf %292, %295 : vector<16x32xf32>
    %297 = arith.mulf %46, %296 : vector<16x32xf32>
    %298 = arith.addf %247, %297 : vector<16x32xf32>
    %c0_234 = arith.constant 0 : index
    %c0_235 = arith.constant 0 : index
    %299 = vector.load %arg28[%c0_234, %c0_235] : memref<16x32xf32, #tpu.memory_space<vmem>>, vector<16x32xf32>
    tpu.vector_store %arg28[%c0_234, %c0_235], %298 {strides = array<i32>} : memref<16x32xf32, #tpu.memory_space<vmem>>, vector<16x32xf32>,
    %c1_i32 = arith.constant 1 : i32
    %300 = arith.cmpi eq, %arg0, %c1_i32 : i32
    %301 = arith.extui %300 : i1 to i32
    %c0_i32_236 = arith.constant 0 : i32
    %302 = arith.cmpi ne, %301, %c0_i32_236 : i32
    scf.if %302 {
      %c0_237 = arith.constant 0 : index
      %c0_238 = arith.constant 0 : index
      %c0_239 = arith.constant 0 : index
      %303 = vector.load %arg23[%c0_237, %c0_238, %c0_239] : memref<2x32x32xf32, #tpu.memory_space<vmem>>, vector<1x32x32xf32>
      %304 = vector.shape_cast %303 : vector<1x32x32xf32> to vector<32x32xf32>
      %cst_240 = arith.constant dense<0.000000e+00> : vector<16x32xf32>
      %305 = tpu.matmul %4, %304, %cst_240 {dimension_numbers = #tpu.dot_dimension_numbers<[1], [0], [0], [1], [0, 0, 1, 1], [], []>} : vector<16x32xf32>, vector<32x32xf32>, vector<16x32xf32> -> vector<16x32xf32>
      %c0_241 = arith.constant 0 : index
      %c0_242 = arith.constant 0 : index
      %c0_243 = arith.constant 0 : index
      %306 = vector.load %arg24[%c0_241, %c0_242, %c0_243] : memref<2x1x32xf32, #tpu.memory_space<vmem>>, vector<1x1x32xf32>
      %307 = vector.shape_cast %306 : vector<1x1x32xf32> to vector<1x32xf32>
      %308 = vector.broadcast %307 : vector<1x32xf32> to vector<16x32xf32>
      %309 = arith.addf %305, %308 : vector<16x32xf32>
      %c1_244 = arith.constant 1 : index
      %c0_245 = arith.constant 0 : index
      %c0_246 = arith.constant 0 : index
      %310 = vector.load %arg23[%c1_244, %c0_245, %c0_246] : memref<2x32x32xf32, #tpu.memory_space<vmem>>, vector<1x32x32xf32>
      %311 = vector.shape_cast %310 : vector<1x32x32xf32> to vector<32x32xf32>
      %cst_247 = arith.constant dense<0.000000e+00> : vector<16x32xf32>
      %312 = tpu.matmul %4, %311, %cst_247 {dimension_numbers = #tpu.dot_dimension_numbers<[1], [0], [0], [1], [0, 0, 1, 1], [], []>} : vector<16x32xf32>, vector<32x32xf32>, vector<16x32xf32> -> vector<16x32xf32>
      %c1_248 = arith.constant 1 : index
      %c0_249 = arith.constant 0 : index
      %c0_250 = arith.constant 0 : index
      %313 = vector.load %arg24[%c1_248, %c0_249, %c0_250] : memref<2x1x32xf32, #tpu.memory_space<vmem>>, vector<1x1x32xf32>
      %314 = vector.shape_cast %313 : vector<1x1x32xf32> to vector<1x32xf32>
      %315 = vector.broadcast %314 : vector<1x32xf32> to vector<16x32xf32>
      %316 = arith.addf %312, %315 : vector<16x32xf32>
      %cst_251 = arith.constant dense<0.000000e+00> : vector<16xf32>
      %317 = vector.multi_reduction <add>, %298, %cst_251 [1] : vector<16x32xf32> to vector<16xf32>
      %318 = vector.shape_cast %317 : vector<16xf32> to vector<16x1xf32>
      %cst_252 = arith.constant 3.200000e+01 : f32
      %319 = vector.broadcast %cst_252 : f32 to vector<16x1xf32>
      %320 = arith.divf %318, %319 : vector<16x1xf32>
      %321 = vector.broadcast %320 : vector<16x1xf32> to vector<16x32xf32>
      %322 = arith.subf %298, %321 : vector<16x32xf32>
      %323 = arith.mulf %322, %322 : vector<16x32xf32>
      %cst_253 = arith.constant dense<0.000000e+00> : vector<16xf32>
      %324 = vector.multi_reduction <add>, %323, %cst_253 [1] : vector<16x32xf32> to vector<16xf32>
      %325 = vector.shape_cast %324 : vector<16xf32> to vector<16x1xf32>
      %cst_254 = arith.constant 3.200000e+01 : f32
      %326 = vector.broadcast %cst_254 : f32 to vector<16x1xf32>
      %327 = arith.divf %325, %326 : vector<16x1xf32>
      %328 = vector.broadcast %320 : vector<16x1xf32> to vector<16x32xf32>
      %329 = arith.subf %298, %328 : vector<16x32xf32>
      %cst_255 = arith.constant 9.99999997E-7 : f32
      %330 = vector.broadcast %cst_255 : f32 to vector<16x1xf32>
      %331 = arith.addf %327, %330 : vector<16x1xf32>
      %332 = math.rsqrt %331 : vector<16x1xf32>
      %333 = vector.broadcast %332 : vector<16x1xf32> to vector<16x32xf32>
      %334 = arith.mulf %329, %333 : vector<16x32xf32>
      %cst_256 = arith.constant 1.000000e+00 : f32
      %335 = vector.broadcast %cst_256 : f32 to vector<16x32xf32>
      %336 = arith.addf %335, %316 : vector<16x32xf32>
      %337 = arith.mulf %334, %336 : vector<16x32xf32>
      %338 = arith.addf %337, %309 : vector<16x32xf32>
      %c0_257 = arith.constant 0 : index
      %c0_258 = arith.constant 0 : index
      %339 = vector.load %arg25[%c0_257, %c0_258] : memref<32x32xf32, #tpu.memory_space<vmem>>, vector<32x32xf32>
      %cst_259 = arith.constant dense<0.000000e+00> : vector<16x32xf32>
      %340 = tpu.matmul %338, %339, %cst_259 {dimension_numbers = #tpu.dot_dimension_numbers<[1], [0], [0], [1], [0, 0, 1, 1], [], []>} : vector<16x32xf32>, vector<32x32xf32>, vector<16x32xf32> -> vector<16x32xf32>
      %c0_260 = arith.constant 0 : index
      %c0_261 = arith.constant 0 : index
      %341 = vector.load %arg26[%c0_260, %c0_261] : memref<1x32xf32, #tpu.memory_space<vmem>>, vector<1x32xf32>
      %342 = vector.broadcast %341 : vector<1x32xf32> to vector<16x32xf32>
      %343 = arith.addf %340, %342 : vector<16x32xf32>
      %c0_262 = arith.constant 0 : index
      %c0_263 = arith.constant 0 : index
      %344 = vector.load %arg27[%c0_262, %c0_263] : memref<16x32xf32, #tpu.memory_space<vmem>>, vector<16x32xf32>
      tpu.vector_store %arg27[%c0_262, %c0_263], %343 {strides = array<i32>} : memref<16x32xf32, #tpu.memory_space<vmem>>, vector<16x32xf32>,
    } else {
    }
    return
  }
  func.func @transform_0(%arg0: i32) -> (i32, i32) {
    %c0_i32 = arith.constant 0 : i32
    %c0_i32_0 = arith.constant 0 : i32
    %c0_i32_1 = arith.constant 0 : i32
    return %c0_i32, %c0_i32_0 : i32, i32
  }
  func.func @transform_1(%arg0: i32) -> (i32, i32) {
    %c0_i32 = arith.constant 0 : i32
    %c0_i32_0 = arith.constant 0 : i32
    %c0_i32_1 = arith.constant 0 : i32
    return %c0_i32, %c0_i32_0 : i32, i32
  }
  func.func @transform_2(%arg0: i32) -> (i32, i32) {
    %c0_i32 = arith.constant 0 : i32
    %c0_i32_0 = arith.constant 0 : i32
    %c0_i32_1 = arith.constant 0 : i32
    return %c0_i32, %c0_i32_0 : i32, i32
  }
  func.func @transform_3(%arg0: i32) -> (i32, i32) {
    %c0_i32 = arith.constant 0 : i32
    %c0_i32_0 = arith.constant 0 : i32
    %c0_i32_1 = arith.constant 0 : i32
    return %c0_i32, %c0_i32_0 : i32, i32
  }
  func.func @transform_4(%arg0: i32) -> (i32, i32) {
    %c0_i32 = arith.constant 0 : i32
    %c0_i32_0 = arith.constant 0 : i32
    %c0_i32_1 = arith.constant 0 : i32
    return %c0_i32, %c0_i32_0 : i32, i32
  }
  func.func @transform_5(%arg0: i32) -> (i32, i32) {
    %c0_i32 = arith.constant 0 : i32
    %c0_i32_0 = arith.constant 0 : i32
    %c0_i32_1 = arith.constant 0 : i32
    return %c0_i32, %c0_i32_0 : i32, i32
  }
  func.func @transform_6(%arg0: i32) -> (i32, i32) {
    %c0_i32 = arith.constant 0 : i32
    %c0_i32_0 = arith.constant 0 : i32
    %c0_i32_1 = arith.constant 0 : i32
    return %c0_i32, %c0_i32_0 : i32, i32
  }
  func.func @transform_7(%arg0: i32) -> (i32, i32) {
    %c0_i32 = arith.constant 0 : i32
    %c0_i32_0 = arith.constant 0 : i32
    %c0_i32_1 = arith.constant 0 : i32
    return %c0_i32, %c0_i32_0 : i32, i32
  }
  func.func @transform_8(%arg0: i32) -> (i32, i32, i32, i32) {
    %c0_i32 = arith.constant 0 : i32
    %c0_i32_0 = arith.constant 0 : i32
    %c0_i32_1 = arith.constant 0 : i32
    %c0_i32_2 = arith.constant 0 : i32
    return %arg0, %c0_i32, %c0_i32_0, %c0_i32_1 : i32, i32, i32, i32
  }
  func.func @transform_9(%arg0: i32) -> (i32, i32, i32, i32) {
    %c0_i32 = arith.constant 0 : i32
    %c0_i32_0 = arith.constant 0 : i32
    %c0_i32_1 = arith.constant 0 : i32
    %c0_i32_2 = arith.constant 0 : i32
    return %arg0, %c0_i32, %c0_i32_0, %c0_i32_1 : i32, i32, i32, i32
  }
  func.func @transform_10(%arg0: i32) -> (i32, i32, i32, i32) {
    %c0_i32 = arith.constant 0 : i32
    %c0_i32_0 = arith.constant 0 : i32
    %c0_i32_1 = arith.constant 0 : i32
    %c0_i32_2 = arith.constant 0 : i32
    return %arg0, %c0_i32, %c0_i32_0, %c0_i32_1 : i32, i32, i32, i32
  }
  func.func @transform_11(%arg0: i32) -> (i32, i32, i32, i32) {
    %c0_i32 = arith.constant 0 : i32
    %c0_i32_0 = arith.constant 0 : i32
    %c0_i32_1 = arith.constant 0 : i32
    %c0_i32_2 = arith.constant 0 : i32
    return %arg0, %c0_i32, %c0_i32_0, %c0_i32_1 : i32, i32, i32, i32
  }
  func.func @transform_12(%arg0: i32) -> (i32, i32, i32, i32) {
    %c0_i32 = arith.constant 0 : i32
    %c0_i32_0 = arith.constant 0 : i32
    %c0_i32_1 = arith.constant 0 : i32
    %c0_i32_2 = arith.constant 0 : i32
    return %arg0, %c0_i32, %c0_i32_0, %c0_i32_1 : i32, i32, i32, i32
  }
  func.func @transform_13(%arg0: i32) -> (i32, i32, i32, i32) {
    %c0_i32 = arith.constant 0 : i32
    %c0_i32_0 = arith.constant 0 : i32
    %c0_i32_1 = arith.constant 0 : i32
    %c0_i32_2 = arith.constant 0 : i32
    return %arg0, %c0_i32, %c0_i32_0, %c0_i32_1 : i32, i32, i32, i32
  }
  func.func @transform_14(%arg0: i32) -> (i32, i32, i32, i32) {
    %c0_i32 = arith.constant 0 : i32
    %c0_i32_0 = arith.constant 0 : i32
    %c0_i32_1 = arith.constant 0 : i32
    %c0_i32_2 = arith.constant 0 : i32
    return %arg0, %c0_i32, %c0_i32_0, %c0_i32_1 : i32, i32, i32, i32
  }
  func.func @transform_15(%arg0: i32) -> (i32, i32, i32, i32) {
    %c0_i32 = arith.constant 0 : i32
    %c0_i32_0 = arith.constant 0 : i32
    %c0_i32_1 = arith.constant 0 : i32
    %c0_i32_2 = arith.constant 0 : i32
    return %arg0, %c0_i32, %c0_i32_0, %c0_i32_1 : i32, i32, i32, i32
  }
  func.func @transform_16(%arg0: i32) -> (i32, i32, i32, i32) {
    %c0_i32 = arith.constant 0 : i32
    %c0_i32_0 = arith.constant 0 : i32
    %c0_i32_1 = arith.constant 0 : i32
    %c0_i32_2 = arith.constant 0 : i32
    return %arg0, %c0_i32, %c0_i32_0, %c0_i32_1 : i32, i32, i32, i32
  }
  func.func @transform_17(%arg0: i32) -> (i32, i32, i32) {
    %c0_i32 = arith.constant 0 : i32
    %c0_i32_0 = arith.constant 0 : i32
    %c0_i32_1 = arith.constant 0 : i32
    return %arg0, %c0_i32, %c0_i32_0 : i32, i32, i32
  }
  func.func @transform_18(%arg0: i32) -> (i32, i32, i32) {
    %c0_i32 = arith.constant 0 : i32
    %c0_i32_0 = arith.constant 0 : i32
    %c0_i32_1 = arith.constant 0 : i32
    return %arg0, %c0_i32, %c0_i32_0 : i32, i32, i32
  }
  func.func @transform_19(%arg0: i32) -> (i32, i32, i32) {
    %c0_i32 = arith.constant 0 : i32
    %c0_i32_0 = arith.constant 0 : i32
    %c0_i32_1 = arith.constant 0 : i32
    return %arg0, %c0_i32, %c0_i32_0 : i32, i32, i32
  }
  func.func @transform_20(%arg0: i32) -> (i32, i32, i32) {
    %c0_i32 = arith.constant 0 : i32
    %c0_i32_0 = arith.constant 0 : i32
    %c0_i32_1 = arith.constant 0 : i32
    return %arg0, %c0_i32, %c0_i32_0 : i32, i32, i32
  }
  func.func @transform_21(%arg0: i32) -> (i32, i32, i32) {
    %c0_i32 = arith.constant 0 : i32
    %c0_i32_0 = arith.constant 0 : i32
    %c0_i32_1 = arith.constant 0 : i32
    return %arg0, %c0_i32, %c0_i32_0 : i32, i32, i32
  }
  func.func @transform_22(%arg0: i32) -> (i32, i32, i32) {
    %c0_i32 = arith.constant 0 : i32
    %c0_i32_0 = arith.constant 0 : i32
    %c0_i32_1 = arith.constant 0 : i32
    %c0_i32_2 = arith.constant 0 : i32
    return %c0_i32, %c0_i32_0, %c0_i32_1 : i32, i32, i32
  }
  func.func @transform_23(%arg0: i32) -> (i32, i32, i32) {
    %c0_i32 = arith.constant 0 : i32
    %c0_i32_0 = arith.constant 0 : i32
    %c0_i32_1 = arith.constant 0 : i32
    %c0_i32_2 = arith.constant 0 : i32
    return %c0_i32, %c0_i32_0, %c0_i32_1 : i32, i32, i32
  }
  func.func @transform_24(%arg0: i32) -> (i32, i32) {
    %c0_i32 = arith.constant 0 : i32
    %c0_i32_0 = arith.constant 0 : i32
    %c0_i32_1 = arith.constant 0 : i32
    return %c0_i32, %c0_i32_0 : i32, i32
  }
  func.func @transform_25(%arg0: i32) -> (i32, i32) {
    %c0_i32 = arith.constant 0 : i32
    %c0_i32_0 = arith.constant 0 : i32
    %c0_i32_1 = arith.constant 0 : i32
    return %c0_i32, %c0_i32_0 : i32, i32
  }
  func.func @transform_26(%arg0: i32) -> (i32, i32) {
    %c0_i32 = arith.constant 0 : i32
    %c0_i32_0 = arith.constant 0 : i32
    %c0_i32_1 = arith.constant 0 : i32
    return %c0_i32, %c0_i32_0 : i32, i32
  }
}

</mosaic_0001>

<bundles_post_ra>
// kernel: dit_forward.1
= control target key start
LH: loop header
LB: loop body
LE: loop exit
PB: predicated region body
PF: predicated region fallthrough
CT: control target
= control target key end

     0   :  { %s7292_s0 = inlined_call_operand.vmem [shape: f32[16,32], index: 0, kind: input, shape index: {}]   ;;  %s7293_s1 = inlined_call_operand.vmem [shape: f32[16,32], index: 1, kind: input, shape index: {}]   ;;  %s7294_s2 = inlined_call_operand.vmem [shape: f32[2,256], index: 2, kind: input, shape index: {}]   ;;  %s7295_s3 = inlined_call_operand.vmem [shape: f32[2,32], index: 3, kind: input, shape index: {}]   ;;  %s7296_s4 = inlined_call_operand.vmem [shape: f32[256,32], index: 4, kind: input, shape index: {}]   ;;  %s7297_s5 = inlined_call_operand.vmem [shape: f32[1,32], index: 5, kind: input, shape index: {}]   ;;  %s7298_s6 = inlined_call_operand.vmem [shape: f32[32,32], index: 6, kind: input, shape index: {}]   ;;  %s7299_s7 = inlined_call_operand.vmem [shape: f32[1,32], index: 7, kind: input, shape index: {}]   ;;  %s7300_s8 = inlined_call_operand.vmem [shape: f32[2,6,32,32], index: 8, kind: input, shape index: {}]   ;;  %s7301_s9 = inlined_call_operand.vmem [shape: f32[2,6,1,32], index: 9, kind: input, shape index: {}]   ;;  %s7302_s10 = inlined_call_operand.vmem [shape: f32[2,4,32,8], index: 10, kind: input, shape index: {}]   ;;  %s7303_s11 = inlined_call_operand.vmem [shape: f32[2,4,1,8], index: 11, kind: input, shape index: {}]   ;;  %s7304_s12 = inlined_call_operand.vmem [shape: f32[2,4,32,8], index: 12, kind: input, shape index: {}]   ;;  %s7305_s13 = inlined_call_operand.vmem [shape: f32[2,4,1,8], index: 13, kind: input, shape index: {}]   ;;  %s7306_s14 = inlined_call_operand.vmem [shape: f32[2,4,32,8], index: 14, kind: input, shape index: {}]   ;;  %s7307_s15 = inlined_call_operand.vmem [shape: f32[2,4,1,8], index: 15, kind: input, shape index: {}]   ;;  %s7308_s16 = inlined_call_operand.vmem [shape: f32[2,4,8,32], index: 16, kind: input, shape index: {}]   ;;  %s7309_s17 = inlined_call_operand.vmem [shape: f32[2,1,32], index: 17, kind: input, shape index: {}]   ;;  %s7310_s18 = inlined_call_operand.vmem [shape: f32[2,32,128], index: 18, kind: input, shape index: {}]   ;;  %s7311_s19 = inlined_call_operand.vmem [shape: f32[2,1,128], index: 19, kind: input, shape index: {}]   ;;  %s7312_s20 = inlined_call_operand.vmem [shape: f32[2,128,32], index: 20, kind: input, shape index: {}]   ;;  %s7313_s21 = inlined_call_operand.vmem [shape: f32[2,1,32], index: 21, kind: input, shape index: {}]   ;;  %s7314_s22 = inlined_call_operand.vmem [shape: f32[2,32,32], index: 22, kind: input, shape index: {}]   ;;  %s7315_s23 = inlined_call_operand.vmem [shape: f32[2,1,32], index: 23, kind: input, shape index: {}]   ;;  %s7316_s24 = inlined_call_operand.vmem [shape: f32[32,32], index: 24, kind: input, shape index: {}]   ;;  %s7317_s25 = inlined_call_operand.vmem [shape: f32[1,32], index: 25, kind: input, shape index: {}]   ;;  %s7318_s26 = inlined_call_operand.hbm [shape: f32[16,32], index: 26, kind: output, shape index: {}]  }
   0x1   :  { %7331 = sst [smem:[#allocation10_spill]] %s7292_s0 }
   0x2   :  { %7332 = sst [smem:[#allocation11_spill]] %s7293_s1 }
   0x3   :  { %7333 = sst [smem:[#allocation12_spill]] %s7294_s2 }
   0x4   :  { %7334 = sst [smem:[#allocation13_spill]] %s7295_s3 }
   0x5   :  { %7335 = sst [smem:[#allocation14_spill]] %s7296_s4 }
   0x6   :  { %7336 = sst [smem:[#allocation15_spill]] %s7297_s5 }
   0x7   :  { %7337 = sst [smem:[#allocation16_spill]] %s7298_s6 }
   0x8   :  { %7338 = sst [smem:[#allocation17_spill]] %s7299_s7 }
   0x9   :  { %7339 = sst [smem:[#allocation18_spill]] %s7300_s8 }
   0xa   :  { %7340 = sst [smem:[#allocation19_spill]] %s7301_s9 }
   0xb   :  { %7341 = sst [smem:[#allocation20_spill]] %s7302_s10 }
   0xc   :  { %7342 = sst [smem:[#allocation21_spill]] %s7303_s11 }
   0xd   :  { %7343 = sst [smem:[#allocation22_spill]] %s7304_s12 }
   0xe   :  { %7344 = sst [smem:[#allocation23_spill]] %s7305_s13 }
   0xf   :  { %7345 = sst [smem:[#allocation24_spill]] %s7306_s14 }
  0x10   :  { %7346 = sst [smem:[#allocation25_spill]] %s7307_s15 }
  0x11   :  { %7347 = sst [smem:[#allocation26_spill]] %s7308_s16 }
  0x12   :  { %7348 = sst [smem:[#allocation27_spill]] %s7314_s22 }
  0x13   :  { %7349 = sst [smem:[#allocation28_spill]] %s7315_s23 }
  0x14   :  { %7350 = sst [smem:[#allocation29_spill]] %s7316_s24 }
  0x15   :  { %7351 = sst [smem:[#allocation30_spill]] %s7317_s25 }
  0x16   :  { %7352 = sst [smem:[#allocation31_spill]] %s7318_s26 }
  0x17   :  { %31 = vsyncpa [#allocation5], 0  ;;  %s6613_s27 = smov 0  }
  0x18 LB: > { %7353 = sst [smem:[#allocation7_spill]] %s6468_s27  ;;  %s6619_s3 = sadd.s32 4294967295, %s6468_s27   ;;  %s6468_s27 = sphi %s6613_s27, %s37_s27  }
  0x19   : > { %7354 = sst [smem:[#allocation8_spill]] %s6619_s3  ;;  %p5263_p0 = scmp.ge.s32.totalorder %s6468_s27, 1 }
  0x1a   : > { %p828_p1 = scmp.lt.s32.totalorder %s6468_s27, 3 }
  0x1c   : > { %p829_p2 = pnand %p5263_p0, %p828_p1 }
  0x1e   : > { %832 = sbr.rel (%p829_p2) target bundleno = 6126 (0x17ee), region = 124 }
  0x25   : > { %p948_p3 = scmp.lt.s32.totalorder %s6619_s3, 1  ;;  %s7355_s9 = sld [smem:[#allocation20_spill]] }
  0x26   : > { %s7357_s10 = sld [smem:[#allocation18_spill]]  ;;  %s7358_s25 = sld [smem:[#allocation19_spill]] }
  0x27   : > { %s6625_s7 = scalar_select %p948_p3, %s6619_s3, 1 }
  0x28   : > { %s7359_s11 = sld [smem:[#allocation21_spill]]  ;;  %s7360_s12 = sld [smem:[#allocation22_spill]] }
  0x29   : > { %s6350_s28 = smul.u32 192, %s6625_s7  ;;  %s5470_s8 = sshll.u32 %s6625_s7, 7 }
  0x2a   : > { %s6351_s4 = smul.u32 6, %s6625_s7  ;;  %s5267_s1 = sshll.u32 %s6625_s7, 2 }
  0x2b   : > { %s6633_s30 = scalar_lea.vmem %s7355_s9, %s5470_s8  ;;  %s7361_s13 = sld [smem:[#allocation23_spill]] }
  0x2c   : > { %7356 = sst [smem:[#allocation9_spill]] %s6633_s30  ;;  %s6638_s6 = scalar_lea.vmem %s7357_s10, %s6350_s28 }
  0x2d   : > { %s6644_s23 = scalar_lea.vmem %s7358_s25, %s6351_s4  ;;  %s7362_s14 = sld [smem:[#allocation24_spill]] }
  0x2e   : > { %s6649_s3 = scalar_lea.vmem %s7359_s11, %s5267_s1  ;;  %s6654_s9 = scalar_lea.vmem %s7360_s12, %s5470_s8 }
  0x2f   : > { %s7363_s15 = sld [smem:[#allocation25_spill]]  ;;  %s5473_s24 = sshll.u32 %s6625_s7, 5 }
  0x30   : > { %s7364_s16 = sld [smem:[#allocation26_spill]]  ;;  %s6684_s5 = scalar_lea.vmem %s7310_s18, %s5473_s24 }
  0x31   : > { %s6659_s28 = scalar_lea.vmem %s7361_s13, %s5267_s1  ;;  %s1007_s11 = scalar_lea.vmem %s7313_s21, %s6625_s7 }
  0x32   : > { %s7365_s12 = sld [smem:[#allocation8_spill]] }
  0x33   : > { %s6664_s25 = scalar_lea.vmem %s7362_s14, %s5470_s8 }
  0x35   : > { %s6669_s22 = scalar_lea.vmem %s7363_s15, %s5267_s1  ;;  %s999_s1 = scalar_lea.vmem %s7311_s19, %s6625_s7 }
  0x36   : > { %s6679_s30 = scalar_lea.vmem %s7364_s16, %s5473_s24  ;;  %s6693_s15 = scalar_lea.vmem %s7312_s20, %s5470_s8 }
  0x38   : > { %p5280_p4 = scmp.ne.s32.totalorder %s7365_s12, 0 }
  0x39   : > { %s7366_s24 = sld [smem:[#allocation14_spill]] (!%p5280_p4)  ;;  %s7367_s13 = sld [smem:[#allocation12_spill]] (!%p5280_p4)  ;;  %v6470_v53 = vmov (!%p5280_p4), 0.0|0.0   ;;  %vm6471_vm0 = vmmov (!%p5280_p4), 0   ;;  %v6472_v57 = vmov (!%p5280_p4), 0.0   ;;  %vm1151_vm1 = vcmask (!%p5280_p4), 261120  }
  0x3a   : > { %1011 = sbr.rel (%p5280_p4) target bundleno = 590 (0x24e), region = 128  ;;  %s7368_s4 = sld [smem:[#allocation16_spill]] (!%p5280_p4)  ;;  %6130 = vmatprep.subr.bf16.mxu1 (!%p5280_p4), %v6470_v53  ;;  %5718 = vmatprep.mubr.msk.f32.mxu1 (!%p5280_p4), %vm6471_vm0, %v6472_v57 }
  0x3b   : > { %s7369_s8 = sld [smem:[#allocation10_spill]] (!%p5280_p4)  ;;  %s7370_s16 = sld [smem:[#allocation11_spill]] (!%p5280_p4) }
  0x3c   : > { %s7371_s10 = sld [smem:[#allocation15_spill]] (!%p5280_p4)  ;;  %s7372_s29 = sld [smem:[#allocation17_spill]] (!%p5280_p4) }
  0x3f   : > { %v1029_v0 = vld [vmem:[%s7366_s24 + $0x80] sm:$0xff] (!%p5280_p4)  ;;  %v1030_v1 = vld [vmem:[%s7366_s24 + $0x88] sm:$0xff] (!%p5280_p4)  ;;  %v1031_v5 = vld [vmem:[%s7366_s24 + $0x90] sm:$0xff] (!%p5280_p4) }
  0x40   : > { %v1013_v2 = vld [vmem:[%s7366_s24] sm:$0xff] (!%p5280_p4)  ;;  %v6098_v3 = vpack.c.bf16 (!%p5280_p4), %v1030_v1, %v1029_v0  ;;  %v1014_v4 = vld [vmem:[%s7366_s24 + $0x8] sm:$0xff] (!%p5280_p4)  ;;  %v1032_v6 = vld [vmem:[%s7366_s24 + $0x98] sm:$0xff] (!%p5280_p4) }
  0x41   : > { %v6100_v7 = vpack.c.bf16 %v1014_v4, %v1013_v2  ;;  %v6102_v8 = vpack.c.bf16 %v1032_v6, %v1031_v5  ;;  %v1015_v9 = vld [vmem:[%s7366_s24 + $0x10] sm:$0xff]  ;;  %v1016_v10 = vld [vmem:[%s7366_s24 + $0x18] sm:$0xff]  ;;  %v1033_v11 = vld [vmem:[%s7366_s24 + $0xa0] sm:$0xff] }
  0x42   : > { %6099 = vmatprep.subr.bf16.mxu0 %v6098_v3  ;;  %v1034_v12 = vld [vmem:[%s7366_s24 + $0xa8] sm:$0xff]  ;;  %v6104_v13 = vpack.c.bf16 %v1016_v10, %v1015_v9  ;;  %v1017_v15 = vld [vmem:[%s7366_s24 + $0x20] sm:$0xff]  ;;  %v1035_v17 = vld [vmem:[%s7366_s24 + $0xb0] sm:$0xff] }
  0x43   : > { %6101 = vmatpush3.bf16.msra.mxu0 %v6100_v7  ;;  %v6106_v14 = vpack.c.bf16 %v1034_v12, %v1033_v11  ;;  %v1018_v16 = vld [vmem:[%s7366_s24 + $0x28] sm:$0xff]  ;;  %v1036_v18 = vld [vmem:[%s7366_s24 + $0xb8] sm:$0xff]  ;;  %v1019_v21 = vld [vmem:[%s7366_s24 + $0x30] sm:$0xff] }
  0x44   : > { %6103 = vmatprep.subr.bf16.mxu0 %v6102_v8  ;;  %v6108_v19 = vpack.c.bf16 %v1018_v16, %v1017_v15  ;;  %v6110_v20 = vpack.c.bf16 %v1036_v18, %v1035_v17  ;;  %v1020_v22 = vld [vmem:[%s7366_s24 + $0x38] sm:$0xff]  ;;  %v1037_v23 = vld [vmem:[%s7366_s24 + $0xc0] sm:$0xff]  ;;  %v1038_v24 = vld [vmem:[%s7366_s24 + $0xc8] sm:$0xff] }
  0x45   : > { %v5282_v25 = vld.sshfl [vmem:[%s7367_s13] sm:$0x33 pattern:$0x76325410]  ;;  %v6112_v27 = vpack.c.bf16 %v1020_v22, %v1019_v21  ;;  %v6114_v28 = vpack.c.bf16 %v1038_v24, %v1037_v23  ;;  %v1022_v30 = vld [vmem:[%s7366_s24 + $0x48] sm:$0xff]  ;;  %v1039_v31 = vld [vmem:[%s7366_s24 + $0xd0] sm:$0xff] }
  0x46   : > { %v1060_v26 = vcombine.high %v5282_v25, %v5282_v25  ;;  %v1021_v29 = vld [vmem:[%s7366_s24 + $0x40] sm:$0xff]  ;;  %v1040_v32 = vld [vmem:[%s7366_s24 + $0xd8] sm:$0xff]  ;;  %v1023_v35 = vld [vmem:[%s7366_s24 + $0x50] sm:$0xff]  ;;  %s7373_s13 = sld [smem:[#allocation13_spill]] }
  0x47   : > { %6105 = vmatpush3.bf16.msra.mxu0 %v6104_v13  ;;  %v6116_v33 = vpack.c.bf16 %v1022_v30, %v1021_v29  ;;  %v6118_v34 = vpack.c.bf16 %v1040_v32, %v1039_v31  ;;  %v1024_v36 = vld [vmem:[%s7366_s24 + $0x58] sm:$0xff]  ;;  %v1041_v37 = vld [vmem:[%s7366_s24 + $0xe0] sm:$0xff]  ;;  %v1042_v38 = vld [vmem:[%s7366_s24 + $0xe8] sm:$0xff] }
  0x48   : > { %6107 = vmatprep.subr.bf16.mxu0 %v6106_v14  ;;  %1127 = vmatprep.mubr.f32.mxu0 %v1060_v26  ;;  %v6120_v39 = vpack.c.bf16 %v1024_v36, %v1023_v35  ;;  %v6122_v40 = vpack.c.bf16 %v1042_v38, %v1041_v37  ;;  %v1025_v41 = vld [vmem:[%s7366_s24 + $0x60] sm:$0xff]  ;;  %v1026_v42 = vld [vmem:[%s7366_s24 + $0x68] sm:$0xff]  ;;  %v1043_v43 = vld [vmem:[%s7366_s24 + $0xf0] sm:$0xff] }
  0x49   : > { %v1044_v44 = vld [vmem:[%s7366_s24 + $0xf8] sm:$0xff]  ;;  %v6124_v45 = vpack.c.bf16 %v1026_v42, %v1025_v41  ;;  %v1027_v47 = vld [vmem:[%s7366_s24 + $0x70] sm:$0xff]  ;;  %v1140_v50 = vld [vmem:[%s7368_s4] sm:$0xff] }
  0x4a   : > { %v6126_v46 = vpack.c.bf16 %v1044_v44, %v1043_v43  ;;  %v1028_v48 = vld [vmem:[%s7366_s24 + $0x78] sm:$0xff]  ;;  %v1141_v51 = vld [vmem:[%s7368_s4 + $0x8] sm:$0xff]  ;;  %v1142_v54 = vld [vmem:[%s7368_s4 + $0x10] sm:$0xff] }
  0x4b   : > { %6109 = vmatpush3.bf16.msra.mxu0 %v6108_v19  ;;  %v6128_v49 = vpack.c.bf16 %v1028_v48, %v1027_v47  ;;  %v6131_v52 = vpack.c.bf16 %v1141_v51, %v1140_v50  ;;  %v1143_v55 = vld [vmem:[%s7368_s4 + $0x18] sm:$0xff]  ;;  %v1244_v58 = vld [vmem:[%s7369_s8] sm:$0xff]  ;;  %v1245_v59 = vld [vmem:[%s7369_s8 + $0x8] sm:$0xff]  ;;  %v1234_v19 = vlaneseq }
  0x4c   : > { %6111 = vmatprep.subr.bf16.mxu0 %v6110_v20  ;;  %v6134_v56 = vpack.c.bf16 %v1143_v55, %v1142_v54  ;;  %v1246_v60 = vld [vmem:[%s7370_s16] sm:$0xff]  ;;  %v1247_v61 = vld [vmem:[%s7370_s16 + $0x8] sm:$0xff] }
  0x4d   : > { %6132 = vmatpush3.bf16.msra.mxu1 %v6131_v52  ;;  %v1248_v62 = vadd.f32 %v1246_v60, %v1244_v58  ;;  %v1249_v63 = vadd.f32 %v1247_v61, %v1245_v59  ;;  %v5281_v1 = vld [vmem:[%s7371_s10] ss:$0 sm:$0xff]  ;;  %v1235_v20 = vshrl.u32 %v1234_v19, 7 }
  0x4e   : > { %6133 = vmatprep.subr.bf16.mxu1 %v6470_v53  ;;  %v5284_v10 = vld [vmem:[%s7372_s29] ss:$0 sm:$0xff] }
  0x4f   : > { %6113 = vmatpush3.bf16.msra.mxu0 %v6112_v27  ;;  %1250 = vst.msk [vmem:[#allocation2] sm:$0xff] %vm1151_vm1, %v1248_v62  ;;  %1251 = vst.msk [vmem:[#allocation2 + $0x8] sm:$0xff] %vm1151_vm1, %v1249_v63  ;;  %v1225_v12 = vld [vmem:[%s7373_s13] sm:$0x3]  ;;  %v1236_v21 = vsub.s32 0, %v1235_v20  ;;  %v1241_v22 = vsub.s32 1, %v1235_v20 }
  0x50   : > { %6115 = vmatprep.subr.bf16.mxu0 %v6114_v28 }
  0x51   : > { %6135 = vmatpush3.bf16.msra.mxu1 %v6134_v56 }
  0x53   : > { %6117 = vmatpush3.bf16.msra.mxu0 %v6116_v33 }
  0x54   : > { %6119 = vmatprep.subr.bf16.mxu0 %v6118_v34 }
  0x57   : > { %6121 = vmatpush3.bf16.msra.mxu0 %v6120_v39 }
  0x58   : > { %6123 = vmatprep.subr.bf16.mxu0 %v6122_v40 }
  0x5b   : > { %6125 = vmatpush3.bf16.msra.mxu0 %v6124_v45 }
  0x5c   : > { %6127 = vmatprep.subr.bf16.mxu0 %v6126_v46 }
  0x5f   : > { %6129 = vmatpush3.bf16.msra.mxu0 %v6128_v49 }
  0x62   : > { %1128 = vmatmul.mubr.f32.vlgmr.msra.gmra.mrb[0].mxu0 %v5282_v25 }
 0x135   : > { %v5508_v0 = vpop.f32.mrb[0].mxu0 }
 0x136   : > { %v5509_v2 = vpop.f32.mrb[1].mxu0 }
 0x137   : > { %v5510_v3 = vadd.f32 %v5509_v2, %v5508_v0 }
 0x139   : > { %v1130_v4 = vadd.f32 %v5510_v3, %v5281_v1 }
 0x13b   : > { %v5283_v5 = vmul.f32 -1.442695, %v1130_v4 }
 0x13d   : > { %6374 = vpow2.f32 %v5283_v5 }
 0x147   : > { %v6375_v6 = vpop.eup %6374 }
 0x148   : > { %v1136_v7 = vadd.f32 1.0, %v6375_v6 }
 0x14a   : > { %6376 = vrcp.f32 %v1136_v7 }
 0x154   : > { %v6377_v8 = vpop.eup %6376 }
 0x155   : > { %v1139_v9 = vmul.f32 %v6377_v8, %v1130_v4 }
 0x157   : > { %5719 = vmatmul.mubr.msk.f32.vlgmr.msra.gmra.mrb[0].mxu1 %vm1151_vm1, %v1139_v9 }
 0x22a   : > { %v1221_v11 = vpop.f32.mrb[0].mxu1 }
 0x22b   : > { %v1222_v13 = vadd.f32 %v5284_v10, %v1221_v11  ;;  %v5720_v14 = vpop.f32.mrb[1].mxu1 }
 0x22d   : > { %v1226_v15 = vadd.f32 %v1225_v12, %v1222_v13 }
 0x22f   : > { %v5286_v16 = vmul.f32 -1.442695, %v1226_v15 }
 0x231   : > { %6378 = vpow2.f32 %v5286_v16 }
 0x23b   : > { %v6379_v17 = vpop.eup %6378 }
 0x23c   : > { %v1230_v18 = vadd.f32 1.0, %v6379_v17 }
 0x23e   : > { %6380 = vrcp.f32 %v1230_v18 }
 0x248   : > { %v6381_v23 = vpop.eup %6380 }
 0x249   : > { %v1233_v24 = vmul.f32 %v6381_v23, %v1226_v15 }
 0x24b   : > { %v1237_v25 = vrot.slane %v1233_v24, %v1236_v21  ;;  %v1242_v26 = vrot.slane %v1233_v24, %v1241_v22 }
 0x24d   : > { %1238 = vst.msk [vmem:[#allocation3] sm:$0xff] %vm1151_vm1, %v1237_v25  ;;  %1243 = vst.msk [vmem:[#allocation3 + $0x8] sm:$0xff] %vm1151_vm1, %v1242_v26 }
 0x24e PF: > { %v1252_v27 = vld [vmem:[#allocation2] sm:$0xff]  ;;  %vm1267_vm2 = vcmask 261120   ;;  %v1253_v28 = vld [vmem:[#allocation2 + $0x8] sm:$0xff]  ;;  %v1258_v32 = vld [vmem:[%s6638_s6 + $0x10] sm:$0xff]  ;;  %s7374_s2 = sld [smem:[#allocation9_spill]]  ;;  %vm6474_vm3 = vmmov 0  }
 0x24f   : > { %v1256_v29 = vld [vmem:[%s6638_s6] sm:$0xff]  ;;  %v1789_v30 = vsel %vm1267_vm2, %v1252_v27, 0.0  ;;  %v1257_v31 = vld [vmem:[%s6638_s6 + $0x8] sm:$0xff]  ;;  %v1259_v33 = vld [vmem:[%s6638_s6 + $0x18] sm:$0xff]  ;;  %v1792_v37 = vsel %vm1267_vm2, %v1253_v28, 0.0  ;;  %vm2088_vm4 = vcmask 64512  }
 0x250   : > { %1790 = vadd.xlane.f32.xlu0 %v1789_v30  ;;  %v6136_v34 = vpack.c.bf16 %v1257_v31, %v1256_v29  ;;  %v6140_v35 = vpack.c.bf16 %v1259_v33, %v1258_v32  ;;  %v5290_v38 = vld [vmem:[%s6638_s6 + $0x20] sm:$0xff]  ;;  %v5291_v39 = vld [vmem:[%s6638_s6 + $0x28] sm:$0xff]  ;;  %v5292_v41 = vld [vmem:[%s6638_s6 + $0x30] sm:$0xff] }
 0x251   : > { %v6144_v40 = vpack.c.bf16 %v5291_v39, %v5290_v38  ;;  %v5293_v42 = vld [vmem:[%s6638_s6 + $0x38] sm:$0xff]  ;;  %v5298_v45 = vld [vmem:[%s6638_s6 + $0x40] sm:$0xff]  ;;  %v5299_v46 = vld [vmem:[%s6638_s6 + $0x48] sm:$0xff] }
 0x252   : > { %6137 = vmatprep.subr.bf16.mxu1 %v6136_v34  ;;  %v6148_v44 = vpack.c.bf16 %v5293_v42, %v5292_v41  ;;  %v5300_v47 = vld [vmem:[%s6638_s6 + $0x50] sm:$0xff]  ;;  %v6152_v48 = vpack.c.bf16 %v5299_v46, %v5298_v45  ;;  %v5301_v49 = vld [vmem:[%s6638_s6 + $0x58] sm:$0xff]  ;;  %v5306_v61 = vld [vmem:[%s6638_s6 + $0x60] sm:$0xff] }
 0x253   : > { %6139 = vmatpush3.bf16.msra.mxu1 %v6136_v34  ;;  %v6156_v50 = vpack.c.bf16 %v5301_v49, %v5300_v47  ;;  %v5307_v62 = vld [vmem:[%s6638_s6 + $0x68] sm:$0xff]  ;;  %v5308_v0 = vld [vmem:[%s6638_s6 + $0x70] sm:$0xff]  ;;  %v5309_v1 = vld [vmem:[%s6638_s6 + $0x78] sm:$0xff] }
 0x254   : > { %v6842_v36 = vld [vmem:[#allocation3] sm:$0xff]  ;;  %1793 = vadd.xlane.f32.xlu0 %v1792_v37  ;;  %6141 = vmatprep.subr.bf16.mxu1 %v6140_v35  ;;  %v6853_v43 = vld [vmem:[#allocation3 + $0x8] sm:$0xff]  ;;  %v6160_v63 = vpack.c.bf16 %v5307_v62, %v5306_v61  ;;  %v6164_v2 = vpack.c.bf16 %v5309_v1, %v5308_v0  ;;  %v5314_v3 = vld [vmem:[%s6638_s6 + $0x80] sm:$0xff] }
 0x255   : > { %5729 = vmatprep.mubr.msk.f32.mxu1 %vm1267_vm2, %v6842_v36  ;;  %5773 = vmatprep.mubr.msk.f32.mxu0 %vm1267_vm2, %v6842_v36  ;;  %v5315_v4 = vld [vmem:[%s6638_s6 + $0x88] sm:$0xff]  ;;  %v5322_v6 = vld [vmem:[%s6638_s6 + $0xa0] sm:$0xff]  ;;  %v5316_v9 = vld [vmem:[%s6638_s6 + $0x90] sm:$0xff] }
 0x256   : > { %v6168_v5 = vpack.c.bf16 %v5315_v4, %v5314_v3  ;;  %v5323_v7 = vld [vmem:[%s6638_s6 + $0xa8] sm:$0xff]  ;;  %v5317_v10 = vld [vmem:[%s6638_s6 + $0x98] sm:$0xff]  ;;  %v5324_v12 = vld [vmem:[%s6638_s6 + $0xb0] sm:$0xff] }
 0x257   : > { %6143 = vmatpush3.bf16.msra.mxu1 %v6140_v35  ;;  %v6176_v8 = vpack.c.bf16 %v5323_v7, %v5322_v6  ;;  %v6172_v11 = vpack.c.bf16 %v5317_v10, %v5316_v9  ;;  %v5325_v13 = vld [vmem:[%s6638_s6 + $0xb8] sm:$0xff]  ;;  %v1822_v15 = vld [vmem:[%s7374_s2] sm:$0xff]  ;;  %v1823_v16 = vld [vmem:[%s7374_s2 + $0x8] sm:$0xff] }
 0x258   : > { %6145 = vmatprep.subr.bf16.mxu1 %v6144_v40  ;;  %6169 = vmatprep.subr.bf16.mxu0 %v6168_v5  ;;  %v6180_v14 = vpack.c.bf16 %v5325_v13, %v5324_v12  ;;  %v6184_v17 = vpack.c.bf16 %v1823_v16, %v1822_v15  ;;  %v1916_v18 = vld [vmem:[%s6654_s9] sm:$0xff]  ;;  %v1917_v19 = vld [vmem:[%s6654_s9 + $0x8] sm:$0xff]  ;;  %v1824_v21 = vld [vmem:[%s7374_s2 + $0x10] sm:$0xff] }
 0x259   : > { %6171 = vmatpush3.bf16.msra.mxu0 %v6168_v5  ;;  %v6192_v20 = vpack.c.bf16 %v1917_v19, %v1916_v18  ;;  %v1825_v22 = vld [vmem:[%s7374_s2 + $0x18] sm:$0xff]  ;;  %v1918_v24 = vld [vmem:[%s6654_s9 + $0x10] sm:$0xff]  ;;  %v6473_v5 = vmov 0.0   ;;  %v5330_v6 = vld [vmem:[%s6649_s3] ss:$0 sm:$0xff] }
 0x25a   : > { %5730 = vmatmul.mubr.msk.f32.vlgmr.msra.gmra.mrb[0].mxu1 %vm1267_vm2, %v6853_v43  ;;  %6173 = vmatprep.subr.bf16.mxu0 %v6172_v11  ;;  %v6188_v23 = vpack.c.bf16 %v1825_v22, %v1824_v21  ;;  %v1919_v25 = vld [vmem:[%s6654_s9 + $0x18] sm:$0xff]  ;;  %v5333_v7 = vld [vmem:[%s6659_s28] ss:$0 sm:$0xff] }
 0x25b   : > { %6147 = vmatpush3.bf16.msra.mxu1 %v6144_v40  ;;  %5740 = vmatprep.mubr.msk.f32.mxu1 %vm1267_vm2, %v6842_v36  ;;  %v6196_v26 = vpack.c.bf16 %v1919_v25, %v1918_v24 }
 0x25c   : > { %6149 = vmatprep.subr.bf16.mxu1 %v6148_v44 }
 0x25d   : > { %6175 = vmatpush3.bf16.msra.mxu0 %v6172_v11 }
 0x25e   : > { %6185 = vmatprep.subr.bf16.mxu0 %v6184_v17 }
 0x25f   : > { %6151 = vmatpush3.bf16.msra.mxu1 %v6148_v44  ;;  %v5295_v44 = vld [vmem:[%s6644_s23 + $0x1] ss:$0 sm:$0xff] }
 0x260   : > { %6153 = vmatprep.subr.bf16.mxu1 %v6152_v48  ;;  %5774 = vmatmul.mubr.msk.f32.vlgmr.msra.gmra.mrb[0].mxu0 %vm1267_vm2, %v6853_v43 }
 0x261   : > { %6187 = vmatpush3.bf16.msra.mxu0 %v6184_v17  ;;  %v5336_v17 = vld [vmem:[%s6669_s22] ss:$0 sm:$0xff] }
 0x262   : > { %5741 = vmatmul.mubr.msk.f32.vlgmr.msra.gmra.mrb[2].mxu1 %vm1267_vm2, %v6853_v43  ;;  %6189 = vmatprep.subr.bf16.mxu0 %v6188_v23 }
 0x263   : > { %5751 = vmatprep.mubr.msk.f32.mxu1 %vm1267_vm2, %v6842_v36  ;;  %6155 = vmatpush3.bf16.msra.mxu1 %v6152_v48  ;;  %v5287_v48 = vld [vmem:[%s6644_s23] ss:$0 sm:$0xff] }
 0x264   : > { %6157 = vmatprep.subr.bf16.mxu1 %v6156_v50 }
 0x265   : > { %6191 = vmatpush3.bf16.msra.mxu0 %v6188_v23 }
 0x267   : > { %6159 = vmatpush3.bf16.msra.mxu1 %v6156_v50 }
 0x268   : > { %6161 = vmatprep.subr.bf16.mxu1 %v6160_v63 }
 0x26a   : > { %5752 = vmatmul.mubr.msk.f32.vlgmr.msra.gmra.mrb[4].mxu1 %vm1267_vm2, %v6853_v43 }
 0x26b   : > { %5762 = vmatprep.mubr.msk.f32.mxu1 %vm1267_vm2, %v6842_v36  ;;  %6163 = vmatpush3.bf16.msra.mxu1 %v6160_v63 }
 0x26c   : > { %6165 = vmatprep.subr.bf16.mxu1 %v6164_v2 }
 0x26f   : > { %6167 = vmatpush3.bf16.msra.mxu1 %v6164_v2 }
 0x270   : > { %6177 = vmatprep.subr.bf16.mxu1 %v6176_v8 }
 0x272   : > { %5763 = vmatmul.mubr.msk.f32.vlgmr.msra.gmra.mrb[6].mxu1 %vm1267_vm2, %v6853_v43 }
 0x273   : > { %5784 = vmatprep.mubr.msk.f32.mxu1 %vm1267_vm2, %v6842_v36  ;;  %6179 = vmatpush3.bf16.msra.mxu1 %v6176_v8 }
 0x274   : > { %6181 = vmatprep.subr.bf16.mxu1 %v6180_v14 }
 0x277   : > { %6183 = vmatpush3.bf16.msra.mxu1 %v6180_v14 }
 0x278   : > { %6193 = vmatprep.subr.bf16.mxu1 %v6192_v20 }
 0x27a   : > { %5785 = vmatmul.mubr.msk.f32.vlgmr.msra.gmra.mrb[8].mxu1 %vm1267_vm2, %v6853_v43 }
 0x27b   : > { %6195 = vmatpush3.bf16.msra.mxu1 %v6192_v20 }
 0x27c   : > { %6197 = vmatprep.subr.bf16.mxu1 %v6196_v26 }
 0x27f   : > { %6199 = vmatpush3.bf16.msra.mxu1 %v6196_v26 }
 0x280   : > { %5820 = vmatprep.subr.mxu1 %v6473_v5 }
 0x2dd   : > { %v1791_v51 = vpop.xlane.xlu0 %1790 }
 0x2de   : > { %v1796_v52 = vmul.f32 0.03125, %v1791_v51 }
 0x2e0   : > { %v6871_v53 = vsub.f32 %v1252_v27, %v1796_v52  ;;  %v2002_v27 = vld [vmem:[%s6664_s25] sm:$0xff] }
 0x2e1   : > { %v1794_v54 = vpop.xlane.xlu0 %1793 }
 0x2e2   : > { %v1797_v55 = vmul.f32 0.03125, %v1794_v54  ;;  %v1800_v56 = vmul.f32 %v6871_v53, %v6871_v53 }
 0x2e4   : > { %v6875_v57 = vsub.f32 %v1253_v28, %v1797_v55  ;;  %v1802_v58 = vsel %vm1267_vm2, %v1800_v56, 0.0  ;;  %v2003_v28 = vld [vmem:[%s6664_s25 + $0x8] sm:$0xff] }
 0x2e5   : > { %1803 = vadd.xlane.f32.xlu1 %v1802_v58  ;;  %v6200_v29 = vpack.c.bf16 %v2003_v28, %v2002_v27 }
 0x2e6   : > { %v1801_v59 = vmul.f32 %v6875_v57, %v6875_v57 }
 0x2e7   : > { %6201 = vmatprep.subr.bf16.mxu0 %v6200_v29 }
 0x2e8   : > { %v1805_v60 = vsel %vm1267_vm2, %v1801_v59, 0.0  ;;  %v2004_v59 = vld [vmem:[%s6664_s25 + $0x10] sm:$0xff] }
 0x2e9   : > { %1806 = vadd.xlane.f32.xlu1 %v1805_v60  ;;  %v2005_v60 = vld [vmem:[%s6664_s25 + $0x18] sm:$0xff] }
 0x32d   : > { %v5731_v30 = vpop.f32.mrb[0].mxu1 }
 0x32e   : > { %v1340_v31 = vpop.f32.mrb[1].mxu1  ;;  %v1346_v61 = vadd.f32 %v5731_v30, %v5287_v48 }
 0x32f   : > { %v1341_v51 = vadd.f32 %v5287_v48, %v1340_v31 }
 0x333   : > { %v6941_v1 = vpop.f32.mrb[0].mxu0 }
 0x334   : > { %v6943_v2 = vpop.f32.mrb[1].mxu0 }
 0x335   : > { %v5742_v32 = vpop.f32.mrb[2].mxu1 }
 0x336   : > { %v1428_v33 = vpop.f32.mrb[3].mxu1  ;;  %v1434_v49 = vadd.f32 %v5742_v32, %v5295_v44 }
 0x337   : > { %v1429_v45 = vadd.f32 %v5295_v44, %v1428_v33  ;;  %v5346_v44 = vld [vmem:[%s7374_s2 + $0x28] sm:$0xff] }
 0x338   : > { %v1817_v56 = vadd.f32 1.0, %v1434_v49 }
 0x339   : > { %v1816_v46 = vadd.f32 1.0, %v1429_v45 }
 0x33d   : > { %v6911_v34 = vpop.f32.mrb[4].mxu1 }
 0x33e   : > { %v6913_v35 = vpop.f32.mrb[5].mxu1 }
 0x372   : > { %v1804_v37 = vpop.xlane.xlu1 %1803 }
 0x373   : > { %v1808_v38 = vmul.f32 0.03125, %v1804_v37 }
 0x375   : > { %v1810_v39 = vadd.f32 1e-06, %v1808_v38 }
 0x376   : > { %v1807_v40 = vpop.xlane.xlu1 %1806 }
 0x377   : > { %6382 = vrsqrt.f32 %v1810_v39  ;;  %v1809_v41 = vmul.f32 0.03125, %v1807_v40 }
 0x379   : > { %v1811_v42 = vadd.f32 1e-06, %v1809_v41 }
 0x37b   : > { %6384 = vrsqrt.f32 %v1811_v42  ;;  %v5345_v42 = vld [vmem:[%s7374_s2 + $0x20] sm:$0xff] }
 0x37c   : > { %v6208_v45 = vpack.c.bf16 %v5346_v44, %v5345_v42 }
 0x381   : > { %v6383_v47 = vpop.eup %6382 }
 0x382   : > { %v1814_v50 = vmul.f32 %v6383_v47, %v6871_v53  ;;  %v6204_v53 = vpack.c.bf16 %v2005_v60, %v2004_v59  ;;  %v5354_v47 = vld [vmem:[%s6654_s9 + $0x28] sm:$0xff]  ;;  %v5355_v59 = vld [vmem:[%s6654_s9 + $0x30] sm:$0xff]  ;;  %v5356_v60 = vld [vmem:[%s6654_s9 + $0x38] sm:$0xff] }
 0x384   : > { %v1818_v52 = vmul.f32 %v1816_v46, %v1814_v50  ;;  %v5353_v46 = vld [vmem:[%s6654_s9 + $0x20] sm:$0xff] }
 0x385   : > { %v6385_v54 = vpop.eup %6384  ;;  %v6216_v48 = vpack.c.bf16 %v5354_v47, %v5353_v46 }
 0x386   : > { %v1815_v55 = vmul.f32 %v6385_v54, %v6875_v57  ;;  %v6919_v58 = vadd.f32 %v1818_v52, %v1341_v51  ;;  %v6937_v57 = vpop.f32.mrb[6].mxu1  ;;  %v5347_v51 = vld [vmem:[%s7374_s2 + $0x30] sm:$0xff]  ;;  %v5348_v52 = vld [vmem:[%s7374_s2 + $0x38] sm:$0xff] }
 0x387   : > { %v6939_v0 = vpop.f32.mrb[7].mxu1 }
 0x388   : > { %v1819_v62 = vmul.f32 %v1817_v56, %v1815_v55  ;;  %5795 = vmatprep.mubr.msk.f32.mxu0 %vm1267_vm2, %v6919_v58  ;;  %5806 = vmatprep.mubr.msk.f32.mxu1 %vm1267_vm2, %v6919_v58  ;;  %v6945_v3 = vpop.f32.mrb[8].mxu1  ;;  %v6212_v56 = vpack.c.bf16 %v5348_v52, %v5347_v51 }
 0x389   : > { %v6947_v4 = vpop.f32.mrb[9].mxu1 }
 0x38a   : > { %v6927_v63 = vadd.f32 %v1819_v62, %v1346_v61  ;;  %v5361_v61 = vld [vmem:[%s6664_s25 + $0x20] sm:$0xff]  ;;  %v5362_v62 = vld [vmem:[%s6664_s25 + $0x28] sm:$0xff] }
 0x38c   : > { %5796 = vmatmul.mubr.msk.f32.vlgmr.msra.gmra.mrb[2].mxu0 %vm1267_vm2, %v6927_v63  ;;  %5807 = vmatmul.mubr.msk.f32.vlgmr.msra.gmra.mrb[10].mxu1 %vm1267_vm2, %v6927_v63 }
 0x38d   : > { %6203 = vmatpush3.bf16.msra.mxu0 %v6200_v29  ;;  %5817 = vmatprep.mubr.msk.f32.mxu0 %vm1267_vm2, %v6919_v58 }
 0x38e   : > { %6205 = vmatprep.subr.bf16.mxu0 %v6204_v53  ;;  %5822 = vmatprep.mubr.msk.f32.mxu1 %vm6474_vm3, %v6473_v5 }
 0x391   : > { %6207 = vmatpush3.bf16.msra.mxu0 %v6204_v53 }
 0x392   : > { %5830 = vmatprep.subr.mxu0 %v6473_v5 }
 0x394   : > { %5818 = vmatmul.mubr.msk.f32.vlgmr.msra.gmra.mrb[4].mxu0 %vm1267_vm2, %v6927_v63 }
 0x395   : > { %5832 = vmatprep.mubr.msk.f32.mxu0 %vm6474_vm3, %v6473_v5 }
 0x45f   : > { %v5797_v8 = vpop.f32.mrb[2].mxu0  ;;  %v5808_v9 = vpop.f32.mrb[10].mxu1 }
 0x460   : > { %v1905_v10 = vpop.f32.mrb[3].mxu0  ;;  %v1993_v11 = vpop.f32.mrb[11].mxu1  ;;  %v1911_v15 = vadd.f32 %v5797_v8, %v5330_v6  ;;  %v1999_v16 = vadd.f32 %v5808_v9, %v5333_v7  ;;  %v6224_v8 = vpack.c.bf16 %v5362_v62, %v5361_v61  ;;  %v5363_v9 = vld [vmem:[%s6664_s25 + $0x30] sm:$0xff] }
 0x461   : > { %v1906_v12 = vadd.f32 %v5330_v6, %v1905_v10  ;;  %v1994_v13 = vadd.f32 %v5333_v7, %v1993_v11  ;;  %v6220_v7 = vpack.c.bf16 %v5356_v60, %v5355_v59  ;;  %v5364_v10 = vld [vmem:[%s6664_s25 + $0x38] sm:$0xff] }
 0x462   : > { %v1915_v19 = vmul.f32 0.35355338, %v1911_v15  ;;  %v6228_v11 = vpack.c.bf16 %v5364_v10, %v5363_v9  ;;  %v5396_v10 = vld [vmem:[%s6664_s25 + $0x40] sm:$0xff] }
 0x463   : > { %v1914_v14 = vmul.f32 0.35355338, %v1906_v12  ;;  %5821 = vmatpush3.xpose.msk.msra.mxu1 %vm2088_vm4, %v1994_v13 }
 0x464   : > { %5825 = vmatprep.subr.mxu1 %v6473_v5 }
 0x466   : > { %5823 = vmatmul.mubr.msk.f32.vlgmr.msra.gmra.mrb[12].mxu1 %vm2088_vm4, %v1914_v14 }
 0x467   : > { %v5819_v18 = vpop.f32.mrb[4].mxu0  ;;  %5826 = vmatpush3.xpose.msk.msra.mxu1 %vm2088_vm4, %v1999_v16  ;;  %5827 = vmatprep.mubr.msk.f32.mxu1 %vm6474_vm3, %v6473_v5 }
 0x468   : > { %v2079_v20 = vpop.f32.mrb[5].mxu0  ;;  %5835 = vmatprep.subr.mxu1 %v6473_v5  ;;  %v2085_v21 = vadd.f32 %v5819_v18, %v5336_v17  ;;  %v5350_v18 = vld [vmem:[%s6649_s3 + $0x1] ss:$0 sm:$0xff] }
 0x469   : > { %v2080_v22 = vadd.f32 %v5336_v17, %v2079_v20 }
 0x46a   : > { %5828 = vmatmul.mubr.msk.f32.vlgmr.msra.gmra.mrb[14].mxu1 %vm2088_vm4, %v1915_v19  ;;  %v5358_v19 = vld [vmem:[%s6659_s28 + $0x1] ss:$0 sm:$0xff] }
 0x46b   : > { %5831 = vmatpush3.msra.mxu0 %v2080_v22  ;;  %5836 = vmatpush3.msra.mxu1 %v2085_v21 }
 0x46c   : > { %5837 = vmatprep.mubr.msk.f32.mxu1 %vm6474_vm3, %v6473_v5  ;;  %6209 = vmatprep.subr.bf16.mxu0 %v6208_v45 }
 0x46d   : > { %6217 = vmatprep.subr.bf16.mxu1 %v6216_v48 }
 0x539   : > { %v2161_v23 = vpop.f32.mrb[12].mxu1 }
 0x53a   : > { %v5824_v24 = vpop.f32.mrb[13].mxu1  ;;  %v2241_v25 = vsel %vm2088_vm4, %v2161_v23, -inf }
 0x53b   : > { %2242 = vmax.xlane.f32.xlu1 %v2241_v25  ;;  %v5366_v24 = vld [vmem:[%s6669_s22 + $0x1] ss:$0 sm:$0xff] }
 0x53d   : > { %v2237_v26 = vpop.f32.mrb[14].mxu1 }
 0x53e   : > { %v5829_v27 = vpop.f32.mrb[15].mxu1  ;;  %v2244_v28 = vsel %vm2088_vm4, %v2237_v26, -inf }
 0x53f   : > { %2245 = vmax.xlane.f32.xlu0 %v2244_v28 }
 0x5c8   : > { %v2243_v29 = vpop.xlane.xlu1 %2242 }
 0x5c9   : > { %v2247_v30 = vsub.f32 %v2161_v23, %v2243_v29 }
 0x5cb   : > { %v2249_v31 = vmul.f32 1.442695, %v2247_v30 }
 0x5cc   : > { %v2246_v32 = vpop.xlane.xlu0 %2245 }
 0x5cd   : > { %6386 = vpow2.f32 %v2249_v31  ;;  %v2248_v33 = vsub.f32 %v2237_v26, %v2246_v32 }
 0x5cf   : > { %v2251_v37 = vmul.f32 1.442695, %v2248_v33 }
 0x5d1   : > { %6388 = vpow2.f32 %v2251_v37 }
 0x5d7   : > { %v6387_v38 = vpop.eup %6386 }
 0x5d8   : > { %v2253_v39 = vsel %vm2088_vm4, %v6387_v38, 0.0 }
 0x5d9   : > { %2254 = vadd.xlane.f32.xlu1 %v2253_v39 }
 0x5db   : > { %v6389_v40 = vpop.eup %6388 }
 0x5dc   : > { %v2256_v41 = vsel %vm2088_vm4, %v6389_v40, 0.0 }
 0x5dd   : > { %2257 = vadd.xlane.f32.xlu0 %v2256_v41 }
 0x666   : > { %v2255_v49 = vpop.xlane.xlu1 %2254 }
 0x667   : > { %6390 = vrcp.f32 %v2255_v49 }
 0x66a   : > { %v2258_v50 = vpop.xlane.xlu0 %2257 }
 0x66b   : > { %6392 = vrcp.f32 %v2258_v50 }
 0x671   : > { %v6391_v54 = vpop.eup %6390 }
 0x672   : > { %v2261_v55 = vmul.f32 %v6391_v54, %v6387_v38  ;;  %v5380_v54 = vld [vmem:[%s7374_s2 + $0x40] sm:$0xff] }
 0x674   : > { %5833 = vmatmul.mubr.msk.f32.vlgmr.msra.gmra.mrb[6].mxu0 %vm2088_vm4, %v2261_v55  ;;  %v5381_v55 = vld [vmem:[%s7374_s2 + $0x48] sm:$0xff] }
 0x675   : > { %v6393_v53 = vpop.eup %6392  ;;  %6211 = vmatpush3.bf16.msra.mxu0 %v6208_v45  ;;  %5848 = vmatprep.mubr.msk.f32.mxu0 %vm1267_vm2, %v6919_v58 }
 0x676   : > { %v2262_v6 = vmul.f32 %v6393_v53, %v6389_v40  ;;  %6213 = vmatprep.subr.bf16.mxu0 %v6212_v56  ;;  %v5382_v53 = vld [vmem:[%s7374_s2 + $0x50] sm:$0xff] }
 0x678   : > { %5838 = vmatmul.mubr.msk.f32.vlgmr.msra.gmra.mrb[16].mxu1 %vm2088_vm4, %v2262_v6  ;;  %v5383_v6 = vld [vmem:[%s7374_s2 + $0x58] sm:$0xff] }
 0x679   : > { %6215 = vmatpush3.bf16.msra.mxu0 %v6212_v56  ;;  %6219 = vmatpush3.bf16.msra.mxu1 %v6216_v48  ;;  %v6232_v56 = vpack.c.bf16 %v5381_v55, %v5380_v54  ;;  %v6236_v9 = vpack.c.bf16 %v5383_v6, %v5382_v53 }
 0x67a   : > { %5859 = vmatprep.mubr.msk.f32.mxu1 %vm1267_vm2, %v6919_v58  ;;  %6221 = vmatprep.subr.bf16.mxu1 %v6220_v7 }
 0x67b   : > { %6225 = vmatprep.subr.bf16.mxu0 %v6224_v8 }
 0x67c   : > { %5849 = vmatmul.mubr.msk.f32.vlgmr.msra.gmra.mrb[8].mxu0 %vm1267_vm2, %v6927_v63 }
 0x67d   : > { %6223 = vmatpush3.bf16.msra.mxu1 %v6220_v7  ;;  %6227 = vmatpush3.bf16.msra.mxu0 %v6224_v8 }
 0x67e   : > { %5870 = vmatprep.mubr.msk.f32.mxu0 %vm1267_vm2, %v6919_v58  ;;  %6229 = vmatprep.subr.bf16.mxu0 %v6228_v11 }
 0x67f   : > { %5873 = vmatprep.subr.mxu1 %v6473_v5 }
 0x680   : > { %5860 = vmatmul.mubr.msk.f32.vlgmr.msra.gmra.mrb[18].mxu1 %vm1267_vm2, %v6927_v63 }
 0x681   : > { %6231 = vmatpush3.bf16.msra.mxu0 %v6228_v11  ;;  %5875 = vmatprep.mubr.msk.f32.mxu1 %vm6474_vm3, %v6473_v5  ;;  %v5397_v11 = vld [vmem:[%s6664_s25 + $0x48] sm:$0xff] }
 0x682   : > { %5883 = vmatprep.subr.mxu0 %v6473_v5 }
 0x684   : > { %5871 = vmatmul.mubr.msk.f32.vlgmr.msra.gmra.mrb[10].mxu0 %vm1267_vm2, %v6927_v63 }
 0x685   : > { %5885 = vmatprep.mubr.msk.f32.mxu0 %vm6474_vm3, %v6473_v5 }
 0x747   : > { %v7004_v12 = vpop.f32.mrb[6].mxu0 }
 0x748   : > { %v5834_v13 = vpop.f32.mrb[7].mxu0 }
 0x749   : > { %v6248_v13 = vpack.c.bf16 %v5397_v11, %v5396_v10  ;;  %v5413_v10 = vld [vmem:[%s7374_s2 + $0x60] sm:$0xff]  ;;  %v5414_v11 = vld [vmem:[%s7374_s2 + $0x68] sm:$0xff] }
 0x74b   : > { %v7006_v14 = vpop.f32.mrb[16].mxu1 }
 0x74c   : > { %v5839_v15 = vpop.f32.mrb[17].mxu1 }
 0x74d   : > { %v5398_v15 = vld [vmem:[%s6664_s25 + $0x50] sm:$0xff] }
 0x74f   : > { %v5850_v16 = vpop.f32.mrb[8].mxu0 }
 0x750   : > { %v2489_v17 = vpop.f32.mrb[9].mxu0  ;;  %v2495_v26 = vadd.f32 %v5850_v16, %v5350_v18  ;;  %v5399_v16 = vld [vmem:[%s6664_s25 + $0x58] sm:$0xff] }
 0x751   : > { %v2490_v21 = vadd.f32 %v5350_v18, %v2489_v17  ;;  %v6252_v17 = vpack.c.bf16 %v5399_v16, %v5398_v15  ;;  %v5375_v18 = vld [vmem:[%s6679_s30 + $0x8] sm:$0xff]  ;;  %v5410_v15 = vld [vmem:[%s6679_s30 + $0x10] sm:$0xff] }
 0x752   : > { %v2499_v31 = vmul.f32 0.35355338, %v2495_v26 }
 0x753   : > { %v5861_v20 = vpop.f32.mrb[18].mxu1  ;;  %v2498_v27 = vmul.f32 0.35355338, %v2490_v21  ;;  %v5388_v21 = vld [vmem:[%s6654_s9 + $0x40] sm:$0xff] }
 0x754   : > { %v2579_v22 = vpop.f32.mrb[19].mxu1  ;;  %v2585_v29 = vadd.f32 %v5861_v20, %v5358_v19 }
 0x755   : > { %v2580_v23 = vadd.f32 %v5358_v19, %v2579_v22  ;;  %v2409_v19 = vld [vmem:[%s6679_s30] sm:$0xff]  ;;  %v5389_v22 = vld [vmem:[%s6654_s9 + $0x48] sm:$0xff] }
 0x757   : > { %v5872_v25 = vpop.f32.mrb[10].mxu0  ;;  %5874 = vmatpush3.xpose.msk.msra.mxu1 %vm2088_vm4, %v2580_v23 }
 0x758   : > { %v2667_v28 = vpop.f32.mrb[11].mxu0  ;;  %5878 = vmatprep.subr.mxu1 %v6473_v5  ;;  %v2673_v32 = vadd.f32 %v5872_v25, %v5366_v24 }
 0x759   : > { %v2668_v30 = vadd.f32 %v5366_v24, %v2667_v28  ;;  %v6240_v24 = vpack.c.bf16 %v5389_v22, %v5388_v21  ;;  %v5391_v28 = vld [vmem:[%s6654_s9 + $0x58] sm:$0xff] }
 0x75a   : > { %5876 = vmatmul.mubr.msk.f32.vlgmr.msra.gmra.mrb[20].mxu1 %vm2088_vm4, %v2498_v27  ;;  %v5390_v27 = vld [vmem:[%s6654_s9 + $0x50] sm:$0xff] }
 0x75b   : > { %5879 = vmatpush3.xpose.msk.msra.mxu1 %vm2088_vm4, %v2585_v29  ;;  %5884 = vmatpush3.msra.mxu0 %v2668_v30  ;;  %v6244_v29 = vpack.c.bf16 %v5391_v28, %v5390_v27  ;;  %v5431_v28 = vld [vmem:[%s6664_s25 + $0x70] sm:$0xff] }
 0x75c   : > { %5880 = vmatprep.mubr.msk.f32.mxu1 %vm6474_vm3, %v6473_v5  ;;  %5888 = vmatprep.subr.mxu1 %v6473_v5 }
 0x75d   : > { %5893 = vmatprep.subr.mxu0 %v5375_v18 }
 0x75e   : > { %5881 = vmatmul.mubr.msk.f32.vlgmr.msra.gmra.mrb[22].mxu1 %vm2088_vm4, %v2499_v31 }
 0x75f   : > { %5889 = vmatpush3.msra.mxu1 %v2673_v32  ;;  %5890 = vmatprep.mubr.msk.f32.mxu1 %vm6474_vm3, %v6473_v5 }
 0x760   : > { %6233 = vmatprep.subr.bf16.mxu1 %v6232_v56 }
 0x82d   : > { %v2748_v33 = vpop.f32.mrb[20].mxu1 }
 0x82e   : > { %v5877_v37 = vpop.f32.mrb[21].mxu1  ;;  %v2828_v38 = vsel %vm2088_vm4, %v2748_v33, -inf }
 0x82f   : > { %2829 = vmax.xlane.f32.xlu0 %v2828_v38  ;;  %v5393_v37 = vld [vmem:[%s6659_s28 + $0x2] ss:$0 sm:$0xff] }
 0x831   : > { %v2824_v39 = vpop.f32.mrb[22].mxu1 }
 0x832   : > { %v5882_v40 = vpop.f32.mrb[23].mxu1  ;;  %v2831_v41 = vsel %vm2088_vm4, %v2824_v39, -inf }
 0x833   : > { %2832 = vmax.xlane.f32.xlu1 %v2831_v41 }
 0x8bc   : > { %v2830_v42 = vpop.xlane.xlu0 %2829 }
 0x8bd   : > { %v2834_v44 = vsub.f32 %v2748_v33, %v2830_v42  ;;  %v5385_v33 = vld [vmem:[%s6649_s3 + $0x2] ss:$0 sm:$0xff] }
 0x8be   : > { %v5401_v42 = vld [vmem:[%s6669_s22 + $0x2] ss:$0 sm:$0xff] }
 0x8bf   : > { %v2836_v45 = vmul.f32 1.442695, %v2834_v44 }
 0x8c0   : > { %v2833_v46 = vpop.xlane.xlu1 %2832 }
 0x8c1   : > { %6394 = vpow2.f32 %v2836_v45  ;;  %v2835_v47 = vsub.f32 %v2824_v39, %v2833_v46 }
 0x8c3   : > { %v2838_v48 = vmul.f32 1.442695, %v2835_v47 }
 0x8c5   : > { %6396 = vpow2.f32 %v2838_v48 }
 0x8cb   : > { %v6395_v49 = vpop.eup %6394 }
 0x8cc   : > { %v2840_v50 = vsel %vm2088_vm4, %v6395_v49, 0.0 }
 0x8cd   : > { %2841 = vadd.xlane.f32.xlu0 %v2840_v50 }
 0x8cf   : > { %v6397_v51 = vpop.eup %6396 }
 0x8d0   : > { %v2843_v52 = vsel %vm2088_vm4, %v6397_v51, 0.0 }
 0x8d1   : > { %2844 = vadd.xlane.f32.xlu1 %v2843_v52 }
 0x95a   : > { %v2842_v59 = vpop.xlane.xlu0 %2841 }
 0x95b   : > { %6398 = vrcp.f32 %v2842_v59 }
 0x95e   : > { %v2845_v60 = vpop.xlane.xlu1 %2844 }
 0x95f   : > { %6400 = vrcp.f32 %v2845_v60 }
 0x965   : > { %v6399_v61 = vpop.eup %6398 }
 0x966   : > { %v2848_v62 = vmul.f32 %v6399_v61, %v6395_v49 }
 0x968   : > { %5886 = vmatmul.mubr.msk.f32.vlgmr.msra.gmra.mrb[12].mxu0 %vm2088_vm4, %v2848_v62 }
 0x969   : > { %v6401_v7 = vpop.eup %6400  ;;  %5894 = vmatpush3.msra.mxu0 %v5375_v18  ;;  %v5415_v18 = vld [vmem:[%s7374_s2 + $0x70] sm:$0xff] }
 0x96a   : > { %v2849_v8 = vmul.f32 %v6401_v7, %v6397_v51  ;;  %5898 = vmatprep.subr.mxu0 %v2409_v19 }
 0x96c   : > { %5891 = vmatmul.mubr.msk.f32.vlgmr.msra.gmra.mrb[24].mxu1 %vm2088_vm4, %v2849_v8 }
 0x96d   : > { %6235 = vmatpush3.bf16.msra.mxu1 %v6232_v56  ;;  %5911 = vmatprep.mubr.msk.f32.mxu1 %vm1267_vm2, %v6919_v58 }
 0x96e   : > { %6237 = vmatprep.subr.bf16.mxu1 %v6236_v9 }
 0x971   : > { %6239 = vmatpush3.bf16.msra.mxu1 %v6236_v9 }
 0x972   : > { %6249 = vmatprep.subr.bf16.mxu1 %v6248_v13 }
 0x974   : > { %5912 = vmatmul.mubr.msk.f32.vlgmr.msra.gmra.mrb[26].mxu1 %vm1267_vm2, %v6927_v63 }
 0x975   : > { %6251 = vmatpush3.bf16.msra.mxu1 %v6248_v13  ;;  %5933 = vmatprep.mubr.msk.f32.mxu1 %vm1267_vm2, %v6919_v58  ;;  %v6256_v13 = vpack.c.bf16 %v5414_v11, %v5413_v10 }
 0x976   : > { %6253 = vmatprep.subr.bf16.mxu1 %v6252_v17 }
 0x979   : > { %6255 = vmatpush3.bf16.msra.mxu1 %v6252_v17 }
 0x97a   : > { %5941 = vmatprep.subr.mxu1 %v6473_v5 }
 0x97c   : > { %5934 = vmatmul.mubr.msk.f32.vlgmr.msra.gmra.mrb[28].mxu1 %vm1267_vm2, %v6927_v63 }
 0x97d   : > { %5943 = vmatprep.mubr.msk.f32.mxu1 %vm6474_vm3, %v6473_v5 }
 0xa3b   : > { %v2919_v20 = vpop.f32.mrb[12].mxu0 }
 0xa3c   : > { %v5887_v23 = vpop.f32.mrb[13].mxu0  ;;  %5895 = vmatprep.mubr.msk.f32.mxu0 %vm2088_vm4, %v2919_v20 }
 0xa3f   : > { %v2992_v25 = vpop.f32.mrb[24].mxu1 }
 0xa40   : > { %v5892_v26 = vpop.f32.mrb[25].mxu1  ;;  %5896 = vmatmul.mubr.msk.f32.vlgmr.msra.gmra.mrb[14].mxu0 %vm2088_vm4, %v2992_v25  ;;  %v5429_v25 = vld [vmem:[%s6664_s25 + $0x60] sm:$0xff] }
 0xa41   : > { %5899 = vmatpush3.msra.mxu0 %v2409_v19  ;;  %5900 = vmatprep.mubr.msk.f32.mxu0 %vm2088_vm4, %v7004_v12  ;;  %v5416_v19 = vld [vmem:[%s7374_s2 + $0x78] sm:$0xff]  ;;  %v5430_v26 = vld [vmem:[%s6664_s25 + $0x68] sm:$0xff] }
 0xa42   : > { %6241 = vmatprep.subr.bf16.mxu0 %v6240_v24  ;;  %v6260_v23 = vpack.c.bf16 %v5416_v19, %v5415_v18  ;;  %v6272_v27 = vpack.c.bf16 %v5430_v26, %v5429_v25  ;;  %v5443_v26 = vld [vmem:[%s6679_s30 + $0x18] sm:$0xff] }
 0xa47   : > { %v5913_v30 = vpop.f32.mrb[26].mxu1 }
 0xa48   : > { %v3239_v31 = vpop.f32.mrb[27].mxu1  ;;  %5901 = vmatmul.mubr.msk.f32.vlgmr.msra.gmra.mrb[14].mxu0 %vm2088_vm4, %v7006_v14  ;;  %v3245_v14 = vadd.f32 %v5913_v30, %v5385_v33 }
 0xa49   : > { %6243 = vmatpush3.bf16.msra.mxu0 %v6240_v24  ;;  %5922 = vmatprep.mubr.msk.f32.mxu0 %vm1267_vm2, %v6919_v58  ;;  %v3240_v39 = vadd.f32 %v5385_v33, %v3239_v31  ;;  %v5421_v31 = vld [vmem:[%s6654_s9 + $0x60] sm:$0xff]  ;;  %v5423_v33 = vld [vmem:[%s6654_s9 + $0x70] sm:$0xff] }
 0xa4a   : > { %6245 = vmatprep.subr.bf16.mxu0 %v6244_v29  ;;  %v3249_v45 = vmul.f32 0.35355338, %v3245_v14 }
 0xa4b   : > { %v3248_v46 = vmul.f32 0.35355338, %v3240_v39 }
 0xa4d   : > { %6247 = vmatpush3.bf16.msra.mxu0 %v6244_v29  ;;  %v5432_v29 = vld [vmem:[%s6664_s25 + $0x78] sm:$0xff] }
 0xa4e   : > { %5936 = vmatprep.subr.mxu0 %v6473_v5  ;;  %v6276_v30 = vpack.c.bf16 %v5432_v29, %v5431_v28 }
 0xa4f   : > { %v5935_v12 = vpop.f32.mrb[28].mxu1 }
 0xa50   : > { %5923 = vmatmul.mubr.msk.f32.vlgmr.msra.gmra.mrb[16].mxu0 %vm1267_vm2, %v6927_v63  ;;  %v3417_v32 = vpop.f32.mrb[29].mxu1  ;;  %v3423_v47 = vadd.f32 %v5935_v12, %v5401_v42  ;;  %v5422_v12 = vld [vmem:[%s6654_s9 + $0x68] sm:$0xff] }
 0xa51   : > { %5938 = vmatprep.mubr.msk.f32.mxu0 %vm6474_vm3, %v6473_v5  ;;  %v3418_v48 = vadd.f32 %v5401_v42, %v3417_v32  ;;  %v6264_v32 = vpack.c.bf16 %v5422_v12, %v5421_v31  ;;  %v5303_v31 = vld [vmem:[%s6644_s23 + $0x2] ss:$0 sm:$0xff] }
 0xb23   : > { %v5924_v38 = vpop.f32.mrb[16].mxu0 }
 0xb24   : > { %v3335_v40 = vadd.f32 %v5924_v38, %v5393_v37  ;;  %v3329_v41 = vpop.f32.mrb[17].mxu0 }
 0xb25   : > { %v3330_v44 = vadd.f32 %v5393_v37, %v3329_v41  ;;  %v5424_v37 = vld [vmem:[%s6654_s9 + $0x78] sm:$0xff]  ;;  %s7375_s9 = scalar_lea.vmem %s7309_s17, %s6625_s7 }
 0xb26   : > { %5942 = vmatpush3.xpose.msk.msra.mxu1 %vm2088_vm4, %v3335_v40  ;;  %v6268_v40 = vpack.c.bf16 %v5424_v37, %v5423_v33  ;;  %v5446_v12 = vld [vmem:[%s7375_s9] ss:$0 sm:$0xff]  ;;  %v1522_v33 = vadd.f32 %v6911_v34, %v5303_v31 }
 0xb27   : > { %5937 = vmatpush3.xpose.msk.msra.mxu0 %vm2088_vm4, %v3330_v44  ;;  %5951 = vmatprep.subr.mxu1 %v6473_v5 }
 0xb28   : > { %5946 = vmatprep.subr.mxu0 %v6473_v5 }
 0xb29   : > { %5944 = vmatmul.mubr.msk.f32.vlgmr.msra.gmra.mrb[30].mxu1 %vm2088_vm4, %v3249_v45  ;;  %v5434_v45 = vld [vmem:[%s6669_s22 + $0x3] ss:$0 sm:$0xff] }
 0xb2a   : > { %5939 = vmatmul.mubr.msk.f32.vlgmr.msra.gmra.mrb[18].mxu0 %vm2088_vm4, %v3248_v46  ;;  %5952 = vmatpush3.msra.mxu1 %v3423_v47 }
 0xb2b   : > { %5947 = vmatpush3.msra.mxu0 %v3418_v48  ;;  %5953 = vmatprep.mubr.msk.f32.mxu1 %vm6474_vm3, %v6473_v5 }
 0xb2c   : > { %5948 = vmatprep.mubr.msk.f32.mxu0 %vm6474_vm3, %v6473_v5  ;;  %6257 = vmatprep.subr.bf16.mxu1 %v6256_v13 }
 0xb2d   : > { %5956 = vmatprep.subr.mxu0 %v5410_v15 }
 0xbfc   : > { %v3574_v49 = vpop.f32.mrb[30].mxu1 }
 0xbfd   : > { %v3498_v50 = vpop.f32.mrb[18].mxu0  ;;  %v5945_v51 = vpop.f32.mrb[31].mxu1  ;;  %v3581_v52 = vsel %vm2088_vm4, %v3574_v49, -inf }
 0xbfe   : > { %3582 = vmax.xlane.f32.xlu1 %v3581_v52  ;;  %v5940_v54 = vpop.f32.mrb[19].mxu0  ;;  %v3578_v55 = vsel %vm2088_vm4, %v3498_v50, -inf }
 0xbff   : > { %3579 = vmax.xlane.f32.xlu0 %v3578_v55 }
 0xc8b   : > { %v3583_v56 = vpop.xlane.xlu1 %3582 }
 0xc8c   : > { %v3585_v59 = vsub.f32 %v3574_v49, %v3583_v56  ;;  %v3580_v60 = vpop.xlane.xlu0 %3579 }
 0xc8d   : > { %v3584_v61 = vsub.f32 %v3498_v50, %v3580_v60  ;;  %v5418_v50 = vld [vmem:[%s6649_s3 + $0x3] ss:$0 sm:$0xff] }
 0xc8e   : > { %v3588_v62 = vmul.f32 1.442695, %v3585_v59 }
 0xc8f   : > { %v3586_v53 = vmul.f32 1.442695, %v3584_v61 }
 0xc90   : > { %6402 = vpow2.f32 %v3588_v62 }
 0xc91   : > { %6404 = vpow2.f32 %v3586_v53 }
 0xc9a   : > { %v6403_v6 = vpop.eup %6402 }
 0xc9b   : > { %v6405_v7 = vpop.eup %6404  ;;  %v3593_v8 = vsel %vm2088_vm4, %v6403_v6, 0.0 }
 0xc9c   : > { %3594 = vadd.xlane.f32.xlu1 %v3593_v8  ;;  %v3590_v9 = vsel %vm2088_vm4, %v6405_v7, 0.0 }
 0xc9d   : > { %3591 = vadd.xlane.f32.xlu0 %v3590_v9 }
 0xd29   : > { %v3595_v16 = vpop.xlane.xlu1 %3594 }
 0xd2a   : > { %6406 = vrcp.f32 %v3595_v16  ;;  %v3592_v17 = vpop.xlane.xlu0 %3591 }
 0xd2b   : > { %6408 = vrcp.f32 %v3592_v17 }
 0xd34   : > { %v6407_v20 = vpop.eup %6406 }
 0xd35   : > { %v6409_v21 = vpop.eup %6408  ;;  %v3599_v22 = vmul.f32 %v6407_v20, %v6403_v6 }
 0xd36   : > { %v3598_v24 = vmul.f32 %v6409_v21, %v6405_v7 }
 0xd37   : > { %5954 = vmatmul.mubr.msk.f32.vlgmr.msra.gmra.mrb[32].mxu1 %vm2088_vm4, %v3599_v22 }
 0xd38   : > { %6259 = vmatpush3.bf16.msra.mxu1 %v6256_v13  ;;  %5949 = vmatmul.mubr.msk.f32.vlgmr.msra.gmra.mrb[20].mxu0 %vm2088_vm4, %v3598_v24 }
 0xd39   : > { %5969 = vmatprep.mubr.msk.f32.mxu1 %vm1267_vm2, %v6919_v58  ;;  %6261 = vmatprep.subr.bf16.mxu1 %v6260_v23 }
 0xd3a   : > { %5957 = vmatpush3.msra.mxu0 %v5410_v15 }
 0xd3b   : > { %6265 = vmatprep.subr.bf16.mxu0 %v6264_v32 }
 0xd3c   : > { %6263 = vmatpush3.bf16.msra.mxu1 %v6260_v23 }
 0xd3d   : > { %6273 = vmatprep.subr.bf16.mxu1 %v6272_v27 }
 0xd3f   : > { %5970 = vmatmul.mubr.msk.f32.vlgmr.msra.gmra.mrb[34].mxu1 %vm1267_vm2, %v6927_v63 }
 0xd40   : > { %6275 = vmatpush3.bf16.msra.mxu1 %v6272_v27  ;;  %5991 = vmatprep.mubr.msk.f32.mxu1 %vm1267_vm2, %v6919_v58 }
 0xd41   : > { %6277 = vmatprep.subr.bf16.mxu1 %v6276_v30 }
 0xd44   : > { %6279 = vmatpush3.bf16.msra.mxu1 %v6276_v30 }
 0xd45   : > { %6004 = vmatprep.subr.mxu1 %v6473_v5 }
 0xd47   : > { %5992 = vmatmul.mubr.msk.f32.vlgmr.msra.gmra.mrb[36].mxu1 %vm1267_vm2, %v6927_v63 }
 0xd48   : > { %6006 = vmatprep.mubr.msk.f32.mxu1 %vm6474_vm3, %v6473_v5 }
 0xe0a   : > { %v3742_v14 = vpop.f32.mrb[32].mxu1 }
 0xe0b   : > { %v3669_v38 = vpop.f32.mrb[20].mxu0  ;;  %v5955_v39 = vpop.f32.mrb[33].mxu1 }
 0xe0c   : > { %v5950_v41 = vpop.f32.mrb[21].mxu0  ;;  %5958 = vmatprep.mubr.msk.f32.mxu0 %vm2088_vm4, %v3669_v38  ;;  %v1517_v38 = vadd.f32 %v5303_v31, %v6913_v35  ;;  %v4660_v31 = vld [vmem:[%s6693_s15 + $0x18] sm:$0xff] }
 0xe0d   : > { %5959 = vmatmul.mubr.msk.f32.vlgmr.msra.gmra.mrb[14].mxu0 %vm2088_vm4, %v3742_v14 }
 0xe0e   : > { %6267 = vmatpush3.bf16.msra.mxu0 %v6264_v32  ;;  %5980 = vmatprep.mubr.msk.f32.mxu0 %vm1267_vm2, %v6919_v58  ;;  %v5426_v58 = vld [vmem:[%s6659_s28 + $0x3] ss:$0 sm:$0xff] }
 0xe0f   : > { %6269 = vmatprep.subr.bf16.mxu0 %v6268_v40 }
 0xe12   : > { %v5971_v42 = vpop.f32.mrb[34].mxu1  ;;  %6271 = vmatpush3.bf16.msra.mxu0 %v6268_v40 }
 0xe13   : > { %v3910_v44 = vpop.f32.mrb[35].mxu1  ;;  %5994 = vmatprep.subr.mxu0 %v6473_v5  ;;  %v3916_v56 = vadd.f32 %v5971_v42, %v5418_v50  ;;  %v6426_v42 = vld [vmem:[#allocation2 + $0x8] sm:$0xff] }
 0xe14   : > { %v3911_v52 = vadd.f32 %v5418_v50, %v3910_v44 }
 0xe15   : > { %5981 = vmatmul.mubr.msk.f32.vlgmr.msra.gmra.mrb[22].mxu0 %vm1267_vm2, %v6927_v63  ;;  %v3920_v60 = vmul.f32 0.35355338, %v3916_v56 }
 0xe16   : > { %5996 = vmatprep.mubr.msk.f32.mxu0 %vm6474_vm3, %v6473_v5  ;;  %v3919_v59 = vmul.f32 0.35355338, %v3911_v52 }
 0xe1a   : > { %v5993_v46 = vpop.f32.mrb[36].mxu1 }
 0xe1b   : > { %v4094_v47 = vadd.f32 %v5993_v46, %v5434_v45  ;;  %v4088_v48 = vpop.f32.mrb[37].mxu1 }
 0xe1c   : > { %v4089_v49 = vadd.f32 %v5434_v45, %v4088_v48  ;;  %v6427_v45 = vld [vmem:[#allocation2] sm:$0xff] }
 0xe1e   : > { %6005 = vmatpush3.msra.mxu1 %v4089_v49 }
 0xee8   : > { %v5982_v51 = vpop.f32.mrb[22].mxu0 }
 0xee9   : > { %v4000_v54 = vpop.f32.mrb[23].mxu0  ;;  %v4006_v63 = vadd.f32 %v5982_v51, %v5426_v58 }
 0xeea   : > { %v4001_v55 = vadd.f32 %v5426_v58, %v4000_v54 }
 0xeec   : > { %5995 = vmatpush3.xpose.msk.msra.mxu0 %vm2088_vm4, %v4001_v55 }
 0xeed   : > { %5999 = vmatprep.subr.mxu0 %v6473_v5 }
 0xeef   : > { %5997 = vmatmul.mubr.msk.f32.vlgmr.msra.gmra.mrb[24].mxu0 %vm2088_vm4, %v3919_v59  ;;  %v4547_v59 = vld [vmem:[%s6684_s5] sm:$0xff] }
 0xef0   : > { %6000 = vmatpush3.xpose.msk.msra.mxu0 %vm2088_vm4, %v4006_v63  ;;  %6001 = vmatprep.mubr.msk.f32.mxu0 %vm6474_vm3, %v6473_v5  ;;  %v4548_v63 = vld [vmem:[%s6684_s5 + $0x8] sm:$0xff] }
 0xef1   : > { %6009 = vmatprep.subr.mxu0 %v6473_v5 }
 0xef3   : > { %6002 = vmatmul.mubr.msk.f32.vlgmr.msra.gmra.mrb[26].mxu0 %vm2088_vm4, %v3920_v60  ;;  %v6280_v60 = vpack.c.bf16 %v4548_v63, %v4547_v59 }
 0xef4   : > { %6010 = vmatpush3.msra.mxu0 %v4094_v47  ;;  %6011 = vmatprep.mubr.msk.f32.mxu0 %vm6474_vm3, %v6473_v5 }
 0xef5   : > { %6014 = vmatprep.subr.mxu0 %v5443_v26  ;;  %6281 = vmatprep.subr.bf16.mxu1 %v6280_v60 }
 0xfc2   : > { %v4169_v61 = vpop.f32.mrb[24].mxu0 }
 0xfc3   : > { %v5998_v62 = vpop.f32.mrb[25].mxu0  ;;  %v4249_v53 = vsel %vm2088_vm4, %v4169_v61, -inf }
 0xfc4   : > { %4250 = vmax.xlane.f32.xlu0 %v4249_v53  ;;  %v4550_v62 = vld [vmem:[%s6684_s5 + $0x18] sm:$0xff] }
 0xfc6   : > { %v4245_v6 = vpop.f32.mrb[26].mxu0 }
 0xfc7   : > { %v6003_v7 = vpop.f32.mrb[27].mxu0  ;;  %v4252_v8 = vsel %vm2088_vm4, %v4245_v6, -inf }
 0xfc8   : > { %4253 = vmax.xlane.f32.xlu1 %v4252_v8  ;;  %v4658_v7 = vld [vmem:[%s6693_s15 + $0x8] sm:$0xff] }
0x1051   : > { %v4251_v9 = vpop.xlane.xlu0 %4250 }
0x1052   : > { %v4255_v10 = vsub.f32 %v4169_v61, %v4251_v9  ;;  %v4549_v61 = vld [vmem:[%s6684_s5 + $0x10] sm:$0xff] }
0x1053   : > { %v6284_v53 = vpack.c.bf16 %v4550_v62, %v4549_v61 }
0x1054   : > { %v4257_v11 = vmul.f32 1.442695, %v4255_v10 }
0x1055   : > { %v4254_v13 = vpop.xlane.xlu1 %4253 }
0x1056   : > { %6410 = vpow2.f32 %v4257_v11  ;;  %v4256_v15 = vsub.f32 %v4245_v6, %v4254_v13  ;;  %v4657_v6 = vld [vmem:[%s6693_s15] sm:$0xff] }
0x1057   : > { %v6288_v8 = vpack.c.bf16 %v4658_v7, %v4657_v6 }
0x1058   : > { %v4259_v16 = vmul.f32 1.442695, %v4256_v15 }
0x105a   : > { %6412 = vpow2.f32 %v4259_v16 }
0x1060   : > { %v6411_v17 = vpop.eup %6410 }
0x1061   : > { %v4261_v5 = vsel %vm2088_vm4, %v6411_v17, 0.0 }
0x1062   : > { %4262 = vadd.xlane.f32.xlu0 %v4261_v5 }
0x1064   : > { %v6413_v18 = vpop.eup %6412 }
0x1065   : > { %v4264_v19 = vsel %vm2088_vm4, %v6413_v18, 0.0 }
0x1066   : > { %4265 = vadd.xlane.f32.xlu1 %v4264_v19 }
0x10ef   : > { %v4263_v20 = vpop.xlane.xlu0 %4262 }
0x10f0   : > { %6414 = vrcp.f32 %v4263_v20  ;;  %v5311_v20 = vld [vmem:[%s6644_s23 + $0x3] ss:$0 sm:$0xff] }
0x10f3   : > { %v4266_v21 = vpop.xlane.xlu1 %4265 }
0x10f4   : > { %6416 = vrcp.f32 %v4266_v21 }
0x10fa   : > { %v6415_v22 = vpop.eup %6414 }
0x10fb   : > { %v4269_v23 = vmul.f32 %v6415_v22, %v6411_v17  ;;  %v5319_v17 = vld [vmem:[%s6644_s23 + $0x4] ss:$0 sm:$0xff] }
0x10fc   : > { %v1698_v5 = vadd.f32 %v6941_v1, %v5319_v17 }
0x10fd   : > { %6007 = vmatmul.mubr.msk.f32.vlgmr.msra.gmra.mrb[38].mxu1 %vm2088_vm4, %v4269_v23 }
0x10fe   : > { %v6417_v24 = vpop.eup %6416  ;;  %6283 = vmatpush3.bf16.msra.mxu1 %v6280_v60  ;;  %v4542_v22 = vadd.f32 1.0, %v1698_v5 }
0x10ff   : > { %v4270_v25 = vmul.f32 %v6417_v24, %v6413_v18  ;;  %6285 = vmatprep.subr.bf16.mxu1 %v6284_v53  ;;  %v1693_v18 = vadd.f32 %v5319_v17, %v6943_v2 }
0x1101   : > { %6012 = vmatmul.mubr.msk.f32.vlgmr.msra.gmra.mrb[28].mxu0 %vm2088_vm4, %v4270_v25  ;;  %v4541_v24 = vadd.f32 1.0, %v1693_v18  ;;  %v5327_v18 = vld [vmem:[%s6644_s23 + $0x5] ss:$0 sm:$0xff]  ;;  %s7376_s23 = sld [smem:[#allocation8_spill]] }
0x1102   : > { %6015 = vmatpush3.msra.mxu0 %v5443_v26  ;;  %6287 = vmatpush3.bf16.msra.mxu1 %v6284_v53  ;;  %v1610_v26 = vadd.f32 %v6937_v57, %v5311_v20  ;;  %v4661_v57 = vld [vmem:[%s6693_s15 + $0x20] sm:$0xff] }
0x1103   : > { %6289 = vmatprep.subr.bf16.mxu0 %v6288_v8 }
0x1107   : > { %p5451_p5 = scmp.ne.s32.totalorder %s7376_s23, 1 }
0x1108   : > { %s7377_s5 = sld [smem:[#allocation27_spill]] (!%p5451_p5)  ;;  %s7379_s26 = sld [smem:[#allocation28_spill]] (!%p5451_p5) }
0x1109   : > { %s7380_s13 = sld [smem:[#allocation30_spill]] (!%p5451_p5) }
0x11d0   : > { %v4340_v27 = vpop.f32.mrb[38].mxu1 }
0x11d1   : > { %v6008_v28 = vpop.f32.mrb[39].mxu1  ;;  %6016 = vmatprep.mubr.msk.f32.mxu0 %vm2088_vm4, %v4340_v27 }
0x11d2   : > { %v1605_v28 = vadd.f32 %v5311_v20, %v6939_v0  ;;  %v4662_v0 = vld [vmem:[%s6693_s15 + $0x28] sm:$0xff] }
0x11d4   : > { %v4413_v29 = vpop.f32.mrb[28].mxu0 }
0x11d5   : > { %v6013_v30 = vpop.f32.mrb[29].mxu0  ;;  %6017 = vmatmul.mubr.msk.f32.vlgmr.msra.gmra.mrb[14].mxu0 %vm2088_vm4, %v4413_v29 }
0x11d6   : > { %6291 = vmatpush3.bf16.msra.mxu0 %v6288_v8  ;;  %v4659_v30 = vld [vmem:[%s6693_s15 + $0x10] sm:$0xff] }
0x12a8   : > { %v6018_v32 = vpop.f32.mrb[14].mxu0 }
0x12a9   : > { %v4510_v37 = vadd.f32 %v6018_v32, %v5446_v12  ;;  %v4491_v14 = vpop.f32.mrb[15].mxu0  ;;  %v6296_v32 = vpack.c.bf16 %v4662_v0, %v4661_v57 }
0x12aa   : > { %v4509_v39 = vadd.f32 %v5446_v12, %v4491_v14  ;;  %v6292_v12 = vpack.c.bf16 %v4660_v31, %v4659_v30  ;;  %v5457_v30 = vld [vmem:[%s7377_s5 + $0x30] sm:$0xff] (!%p5451_p5)  ;;  %v5458_v31 = vld [vmem:[%s7377_s5 + $0x38] sm:$0xff] (!%p5451_p5) }
0x12ab   : > { %v4512_v40 = vmul.f32 %v4510_v37, %v1522_v33  ;;  %v4663_v33 = vld [vmem:[%s6693_s15 + $0x30] sm:$0xff]  ;;  %v4664_v37 = vld [vmem:[%s6693_s15 + $0x38] sm:$0xff]  ;;  %v6332_v0 = vpack.c.bf16 (!%p5451_p5), %v5458_v31, %v5457_v30 }
0x12ac   : > { %v4511_v41 = vmul.f32 %v4509_v39, %v1517_v38  ;;  %6293 = vmatprep.subr.bf16.mxu0 %v6292_v12  ;;  %v6300_v14 = vpack.c.bf16 %v4664_v37, %v4663_v33  ;;  %v4665_v38 = vld [vmem:[%s6693_s15 + $0x40] sm:$0xff]  ;;  %v4666_v39 = vld [vmem:[%s6693_s15 + $0x48] sm:$0xff] }
0x12ad   : > { %v7147_v44 = vadd.f32 %v6426_v42, %v4512_v40  ;;  %6295 = vmatpush3.bf16.msra.mxu0 %v6292_v12  ;;  %v4667_v40 = vld [vmem:[%s6693_s15 + $0x50] sm:$0xff]  ;;  %v4668_v42 = vld [vmem:[%s6693_s15 + $0x58] sm:$0xff] }
0x12ae   : > { %v7149_v46 = vadd.f32 %v6427_v45, %v4511_v41  ;;  %6297 = vmatprep.subr.bf16.mxu0 %v6296_v32  ;;  %v6304_v41 = vpack.c.bf16 %v4666_v39, %v4665_v38  ;;  %v6308_v45 = vpack.c.bf16 %v4668_v42, %v4667_v40 }
0x12af   : > { %v4518_v47 = vsel %vm1267_vm2, %v7147_v44, 0.0 }
0x12b0   : > { %4519 = vadd.xlane.f32.xlu1 %v4518_v47  ;;  %v4515_v34 = vsel %vm1267_vm2, %v7149_v46, 0.0  ;;  %v4669_v47 = vld [vmem:[%s6693_s15 + $0x60] sm:$0xff] }
0x12b1   : > { %4516 = vadd.xlane.f32.xlu0 %v4515_v34  ;;  %6299 = vmatpush3.bf16.msra.mxu0 %v6296_v32  ;;  %v4670_v34 = vld [vmem:[%s6693_s15 + $0x68] sm:$0xff]  ;;  %v4768_v32 = vld [vmem:[%s7377_s5 + $0x18] sm:$0xff] (!%p5451_p5) }
0x12b2   : > { %6301 = vmatprep.subr.bf16.mxu0 %v6300_v14 }
0x12b5   : > { %6303 = vmatpush3.bf16.msra.mxu0 %v6300_v14 }
0x12b6   : > { %6305 = vmatprep.subr.bf16.mxu0 %v6304_v41 }
0x12b9   : > { %6307 = vmatpush3.bf16.msra.mxu0 %v6304_v41 }
0x12ba   : > { %6309 = vmatprep.subr.bf16.mxu0 %v6308_v45 }
0x12bd   : > { %6311 = vmatpush3.bf16.msra.mxu0 %v6308_v45 }
0x133d   : > { %v4520_v35 = vpop.xlane.xlu1 %4519 }
0x133e   : > { %v4522_v48 = vmul.f32 0.03125, %v4520_v35  ;;  %v4517_v49 = vpop.xlane.xlu0 %4516  ;;  %v6312_v35 = vpack.c.bf16 %v4670_v34, %v4669_v47 }
0x133f   : > { %v4521_v50 = vmul.f32 0.03125, %v4517_v49  ;;  %v4672_v49 = vld [vmem:[%s6693_s15 + $0x78] sm:$0xff] }
0x1340   : > { %v4524_v58 = vsub.f32 %v7147_v44, %v4522_v48  ;;  %v4671_v48 = vld [vmem:[%s6693_s15 + $0x70] sm:$0xff]  ;;  %6313 = vmatprep.subr.bf16.mxu0 %v6312_v35  ;;  %s7378_s15 = sld [smem:[#allocation29_spill]] (!%p5451_p5) }
0x1341   : > { %v4523_v51 = vsub.f32 %v7149_v46, %v4521_v50  ;;  %v6316_v50 = vpack.c.bf16 %v4672_v49, %v4671_v48  ;;  %6315 = vmatpush3.bf16.msra.mxu0 %v6312_v35 }
0x1342   : > { %v4526_v52 = vmul.f32 %v4524_v58, %v4524_v58 }
0x1343   : > { %v4525_v54 = vmul.f32 %v4523_v51, %v4523_v51  ;;  %6317 = vmatprep.subr.bf16.mxu0 %v6316_v50 }
0x1344   : > { %v4530_v55 = vsel %vm1267_vm2, %v4526_v52, 0.0 }
0x1345   : > { %4531 = vadd.xlane.f32.xlu1 %v4530_v55  ;;  %v4527_v56 = vsel %vm1267_vm2, %v4525_v54, 0.0  ;;  %6319 = vmatpush3.bf16.msra.mxu0 %v6316_v50 }
0x1346   : > { %4528 = vadd.xlane.f32.xlu0 %v4527_v56  ;;  %v4971_v35 = vld [vmem:[%s7378_s15] sm:$0xff] (!%p5451_p5)  ;;  %v4973_v49 = vld [vmem:[%s7378_s15 + $0x10] sm:$0xff] (!%p5451_p5)  ;;  %v4974_v50 = vld [vmem:[%s7378_s15 + $0x18] sm:$0xff] (!%p5451_p5) }
0x13d2   : > { %v4532_v9 = vpop.xlane.xlu1 %4531 }
0x13d3   : > { %v4534_v10 = vmul.f32 0.03125, %v4532_v9  ;;  %v4529_v11 = vpop.xlane.xlu0 %4528 }
0x13d4   : > { %v4533_v13 = vmul.f32 0.03125, %v4529_v11 }
0x13d5   : > { %v4536_v15 = vadd.f32 1e-06, %v4534_v10 }
0x13d6   : > { %v4535_v16 = vadd.f32 1e-06, %v4533_v13 }
0x13d7   : > { %6418 = vrsqrt.f32 %v4536_v15 }
0x13d8   : > { %6420 = vrsqrt.f32 %v4535_v16 }
0x13e1   : > { %v6419_v19 = vpop.eup %6418 }
0x13e2   : > { %v6421_v21 = vpop.eup %6420  ;;  %v4540_v23 = vmul.f32 %v6419_v19, %v4524_v58  ;;  %v5447_v58 = vld [vmem:[%s999_s1] ss:$0 sm:$0xff] }
0x13e3   : > { %v4539_v25 = vmul.f32 %v6421_v21, %v4523_v51  ;;  %v5450_v19 = vld [vmem:[%s1007_s11] ss:$0 sm:$0xff]  ;;  %v1786_v21 = vadd.f32 %v6945_v3, %v5327_v18 }
0x13e4   : > { %v4544_v27 = vmul.f32 %v4542_v22, %v4540_v23 }
0x13e5   : > { %v4543_v1 = vmul.f32 %v4541_v24, %v4539_v25  ;;  %v1781_v24 = vadd.f32 %v5327_v18, %v6947_v4  ;;  %v5455_v4 = vld [vmem:[%s7377_s5 + $0x20] sm:$0xff] (!%p5451_p5) }
0x13e6   : > { %v4546_v2 = vadd.f32 %v4544_v27, %v1610_v26 }
0x13e7   : > { %v4545_v29 = vadd.f32 %v4543_v1, %v1605_v28 }
0x13e9   : > { %6027 = vmatprep.mubr.msk.f32.mxu1 %vm1267_vm2, %v4545_v29  ;;  %v4766_v29 = vld [vmem:[%s7377_s5 + $0x8] sm:$0xff] (!%p5451_p5) }
0x13ea   : > { %6028 = vmatmul.mubr.msk.f32.vlgmr.msra.gmra.mrb[40].mxu1 %vm1267_vm2, %v4546_v2  ;;  %v5456_v2 = vld [vmem:[%s7377_s5 + $0x28] sm:$0xff] (!%p5451_p5) }
0x13eb   : > { %6084 = vmatprep.mubr.msk.f32.mxu1 (!%p5451_p5), %vm1267_vm2, %v6842_v36 }
0x14bd   : > { %v6029_v51 = vpop.f32.mrb[40].mxu1 }
0x14be   : > { %v4636_v52 = vadd.f32 %v6029_v51, %v5447_v58  ;;  %v4630_v54 = vpop.f32.mrb[41].mxu1 }
0x14bf   : > { %v4631_v55 = vadd.f32 %v5447_v58, %v4630_v54  ;;  %v6340_v58 = vpack.c.bf16 (!%p5451_p5), %v4974_v50, %v4973_v49 }
0x14c0   : > { %v4642_v56 = vmul.f32 0.044715, %v4636_v52  ;;  %v4640_v16 = vmul.f32 0.5, %v4636_v52 }
0x14c1   : > { %v4641_v59 = vmul.f32 0.044715, %v4631_v55  ;;  %v4639_v13 = vmul.f32 0.5, %v4631_v55 }
0x14c2   : > { %v4644_v63 = vmul.f32 %v4642_v56, %v4636_v52 }
0x14c3   : > { %v4643_v60 = vmul.f32 %v4641_v59, %v4631_v55 }
0x14c4   : > { %v4646_v61 = vmul.f32 %v4644_v63, %v4636_v52 }
0x14c5   : > { %v4645_v62 = vmul.f32 %v4643_v60, %v4631_v55 }
0x14c6   : > { %v4648_v53 = vadd.f32 %v4646_v61, %v4636_v52 }
0x14c7   : > { %v4647_v6 = vadd.f32 %v4645_v62, %v4631_v55 }
0x14c8   : > { %v4650_v7 = vmul.f32 0.7978846, %v4648_v53  ;;  %v5460_v53 = vld [vmem:[%s7379_s26 + $0x1] ss:$0 sm:$0xff] (!%p5451_p5) }
0x14c9   : > { %v4649_v8 = vmul.f32 0.7978846, %v4647_v6 }
0x14ca   : > { %6422 = vtanh.f32 %v4650_v7  ;;  %v5452_v7 = vld [vmem:[%s7379_s26] ss:$0 sm:$0xff] (!%p5451_p5) }
0x14cb   : > { %6424 = vtanh.f32 %v4649_v8 }
0x14d4   : > { %v6423_v9 = vpop.eup %6422 }
0x14d5   : > { %v6425_v10 = vpop.eup %6424  ;;  %v4654_v11 = vadd.f32 1.0, %v6423_v9 }
0x14d6   : > { %v4653_v15 = vadd.f32 1.0, %v6425_v10 }
0x14d7   : > { %v4656_v5 = vmul.f32 %v4654_v11, %v4640_v16 }
0x14d8   : > { %v4655_v17 = vmul.f32 %v4653_v15, %v4639_v13 }
0x14da   : > { %6062 = vmatprep.mubr.f32.mxu0 %v4655_v17 }
0x14db   : > { %6063 = vmatmul.mubr.f32.vlgmr.msra.gmra.mrb[30].mxu0 %v4656_v5 }
0x14dc   : > { %6073 = vmatprep.mubr.msk.f32.mxu0 (!%p5451_p5), %vm1267_vm2, %v6842_v36  ;;  %v4767_v36 = vld [vmem:[%s7377_s5 + $0x10] sm:$0xff] (!%p5451_p5) }
0x14dd   : > { %v6324_v33 = vpack.c.bf16 (!%p5451_p5), %v4768_v32, %v4767_v36 }
0x15ae   : > { %v6064_v20 = vpop.f32.mrb[30].mxu0 }
0x15af   : > { %v4752_v22 = vadd.f32 %v6064_v20, %v5450_v19  ;;  %v4746_v23 = vpop.f32.mrb[31].mxu0 }
0x15b0   : > { %v4747_v25 = vadd.f32 %v5450_v19, %v4746_v23  ;;  %4764 = sbr.rel (%p5451_p5) target bundleno = 6091 (0x17cb), region = 132 }
0x15b1   : > { %v4756_v26 = vmul.f32 %v4752_v22, %v1786_v21  ;;  %v5463_v22 = vld [vmem:[%s7380_s13] ss:$0 sm:$0xff] (!%p5451_p5) }
0x15b2   : > { %v4755_v27 = vmul.f32 %v4747_v25, %v1781_v24 }
0x15b3   : > { %v4758_v28 = vadd.f32 %v4756_v26, %v7147_v44  ;;  %v4765_v44 = vld [vmem:[%s7377_s5] sm:$0xff] (!%p5451_p5) }
0x15b4   : > { %v4757_v1 = vadd.f32 %v4755_v27, %v7149_v46  ;;  %v6328_v46 = vpack.c.bf16 (!%p5451_p5), %v5456_v2, %v5455_v4  ;;  %v6320_v57 = vpack.c.bf16 (!%p5451_p5), %v4766_v29, %v4765_v44 }
0x15b5   : > { %4760 = vst.msk [vmem:[#allocation2 + $0x8] sm:$0xff] %vm1267_vm2, %v4758_v28  ;;  %v4942_v12 = vsel (!%p5451_p5), %vm1267_vm2, %v4758_v28, 0.0 }
0x15b6   : > { %4759 = vst.msk [vmem:[#allocation2] sm:$0xff] %vm1267_vm2, %v4757_v1  ;;  %v4939_v3 = vsel (!%p5451_p5), %vm1267_vm2, %v4757_v1, 0.0  ;;  %6329 = vmatprep.subr.bf16.mxu1 (!%p5451_p5), %v6328_v46  ;;  %6321 = vmatprep.subr.bf16.mxu0 (!%p5451_p5), %v6320_v57 }
0x15b7   : > { %4940 = vadd.xlane.f32.xlu0 %v4939_v3  ;;  %6331 = vmatpush3.bf16.msra.mxu1 %v6328_v46 }
0x15b8   : > { %6333 = vmatprep.subr.bf16.mxu1 %v6332_v0  ;;  %6323 = vmatpush3.bf16.msra.mxu0 %v6320_v57 }
0x15b9   : > { %6325 = vmatprep.subr.bf16.mxu0 %v6324_v33 }
0x15bb   : > { %4943 = vadd.xlane.f32.xlu0 %v4942_v12  ;;  %6335 = vmatpush3.bf16.msra.mxu1 %v6332_v0 }
0x15bc   : > { %6327 = vmatpush3.bf16.msra.mxu0 %v6324_v33 }
0x15be   : > { %6085 = vmatmul.mubr.msk.f32.vlgmr.msra.gmra.mrb[0].mxu1 %vm1267_vm2, %v6853_v43 }
0x15bf   : > { %6074 = vmatmul.mubr.msk.f32.vlgmr.msra.gmra.mrb[0].mxu0 %vm1267_vm2, %v6853_v43  ;;  %v4972_v43 = vld [vmem:[%s7378_s15 + $0x8] sm:$0xff] }
0x15c0   : > { %v6336_v48 = vpack.c.bf16 %v4972_v43, %v4971_v35 }
0x15c2   : > { %6337 = vmatprep.subr.bf16.mxu0 %v6336_v48 }
0x15c3   : > { %6339 = vmatpush3.bf16.msra.mxu0 %v6336_v48 }
0x15c4   : > { %6341 = vmatprep.subr.bf16.mxu0 %v6340_v58 }
0x15c7   : > { %6343 = vmatpush3.bf16.msra.mxu0 %v6340_v58 }
0x1644   : > { %v4941_v37 = vpop.xlane.xlu0 %4940 }
0x1645   : > { %v4945_v14 = vmul.f32 0.03125, %v4941_v37 }
0x1647   : > { %v4947_v38 = vsub.f32 %v4757_v1, %v4945_v14 }
0x1648   : > { %v4944_v39 = vpop.xlane.xlu0 %4943 }
0x1649   : > { %v4946_v40 = vmul.f32 0.03125, %v4944_v39  ;;  %v4949_v41 = vmul.f32 %v4947_v38, %v4947_v38 }
0x164b   : > { %v4948_v42 = vsub.f32 %v4758_v28, %v4946_v40  ;;  %v4951_v45 = vsel %vm1267_vm2, %v4949_v41, 0.0 }
0x164c   : > { %4952 = vadd.xlane.f32.xlu1 %v4951_v45 }
0x164d   : > { %v4950_v47 = vmul.f32 %v4948_v42, %v4948_v42 }
0x164f   : > { %v4954_v34 = vsel %vm1267_vm2, %v4950_v47, 0.0 }
0x1650   : > { %4955 = vadd.xlane.f32.xlu1 %v4954_v34 }
0x1691   : > { %v6086_v51 = vpop.f32.mrb[0].mxu1 }
0x1692   : > { %v4930_v52 = vpop.f32.mrb[1].mxu1  ;;  %v6075_v54 = vpop.f32.mrb[0].mxu0  ;;  %v4936_v10 = vadd.f32 %v6086_v51, %v5460_v53 }
0x1693   : > { %v4842_v55 = vpop.f32.mrb[1].mxu0  ;;  %v4931_v6 = vadd.f32 %v5460_v53, %v4930_v52  ;;  %v4848_v20 = vadd.f32 %v6075_v54, %v5452_v7 }
0x1694   : > { %v4843_v13 = vadd.f32 %v5452_v7, %v4842_v55  ;;  %v4966_v5 = vadd.f32 1.0, %v4936_v10 }
0x1695   : > { %v4965_v8 = vadd.f32 1.0, %v4931_v6 }
0x16d9   : > { %v4953_v56 = vpop.xlane.xlu1 %4952 }
0x16da   : > { %v4957_v59 = vmul.f32 0.03125, %v4953_v56 }
0x16dc   : > { %v4959_v63 = vadd.f32 1e-06, %v4957_v59 }
0x16dd   : > { %v4956_v60 = vpop.xlane.xlu1 %4955 }
0x16de   : > { %6428 = vrsqrt.f32 %v4959_v63  ;;  %v4958_v61 = vmul.f32 0.03125, %v4956_v60 }
0x16e0   : > { %v4960_v62 = vadd.f32 1e-06, %v4958_v61 }
0x16e2   : > { %6430 = vrsqrt.f32 %v4960_v62 }
0x16e8   : > { %v6429_v9 = vpop.eup %6428 }
0x16e9   : > { %v4963_v11 = vmul.f32 %v6429_v9, %v4947_v38 }
0x16eb   : > { %v4967_v15 = vmul.f32 %v4965_v8, %v4963_v11 }
0x16ec   : > { %v6431_v16 = vpop.eup %6430 }
0x16ed   : > { %v4964_v17 = vmul.f32 %v6431_v16, %v4948_v42  ;;  %v4969_v18 = vadd.f32 %v4967_v15, %v4843_v13 }
0x16ef   : > { %v4968_v19 = vmul.f32 %v4966_v5, %v4964_v17  ;;  %6095 = vmatprep.mubr.msk.f32.mxu0 %vm1267_vm2, %v4969_v18 }
0x16f1   : > { %v4970_v21 = vadd.f32 %v4968_v19, %v4848_v20 }
0x16f3   : > { %6096 = vmatmul.mubr.msk.f32.vlgmr.msra.gmra.mrb[2].mxu0 %vm1267_vm2, %v4970_v21 }
0x17c6   : > { %v6097_v23 = vpop.f32.mrb[2].mxu0 }
0x17c7   : > { %v5060_v24 = vadd.f32 %v6097_v23, %v5463_v22  ;;  %v5054_v25 = vpop.f32.mrb[3].mxu0 }
0x17c8   : > { %v5055_v26 = vadd.f32 %v5463_v22, %v5054_v25 }
0x17c9   : > { %5064 = vst.msk [vmem:[#allocation4 + $0x8] sm:$0xff] %vm1267_vm2, %v5060_v24 }
0x17ca   : > { %5063 = vst.msk [vmem:[#allocation4] sm:$0xff] %vm1267_vm2, %v5055_v26 }
0x17cb PF: > { %s7381_s2 = sld [smem:[#allocation8_spill]]  ;;  %s6475_s3 = smov [#allocation4]  }
0x17cc   : > { %s5071_s6 = sshll.u32 %s6475_s3, 4  ;;  %s5072_s6 = int_to_ptr.vmem [resolvable:$true] %s5071_s6 }
0x17cd   : > { %s6432_s9 = scalar_lea.vmem %s5072_s6, 256  ;;  %p6439_p10 = scmp.lt.s32.totalorder %s5072_s6, %s5072_s6 }
0x17ce   : > { %p6433_p7 = scmp.ne.s32.totalorder %s5072_s6, %s6432_s9  ;;  %p6440_p11 = scmp.lt.s32.totalorder %s6432_s9, %s6432_s9 }
0x17d0   : > { %p6441_p12 = por %p6440_p11, %p6439_p10 }
0x17d1   : > { %p6356_p6 = scmp.eq.s32.totalorder %s7381_s2, 1 }
0x17d3   : > { %p6434_p8 = pnand %p6433_p7, %p6356_p6 }
0x17d5   : > { %p6435_p9 = pneg %p6434_p8 }
0x17d7   : > { %p6442_p13 = pnand %p6441_p12, %p6435_p9 }
0x17d9   : > { %6445 = shalt.err (!%p6442_p13)
}
0x17da   : > { %s7382_s22 = sld [smem:[#allocation31_spill]] }
0x17e0   : > { %s6446_s23 = scalar_lea.hbm %s7382_s22, 256 }
0x17e1   : > { %p6447_p0 = scmp.ne.s32.totalorder %s7382_s22, %s6446_s23  ;;  %p6452_p3 = scmp.lt.u32.totalorder %s6446_s23, %s7382_s22 }
0x17e3   : > { %p6448_p1 = pnand %p6447_p0, %p6356_p6 }
0x17e5   : > { %p6449_p2 = pneg %p6448_p1 }
0x17e7   : > { %p6454_p4 = pnand %p6452_p3, %p6449_p2 }
0x17e9   : > { %6457 = shalt.err (!%p6454_p4)
}
0x17ea   : > { %s6476_s14 = smov 128   ;;  %s6477_s10 = smov 8  }
0x17eb   : > { %6353 = dma.vmem_to_hbm [thread:$0]  (%p6356_p6), %s5072_s6, 256, %s7382_s22, [#allocation5], %s6476_s14, %s6476_s14, %s6477_s10  }
0x17ec   : > { %6463 = dma.done.wait (%p6356_p6), [#allocation5], 256  }
0x17ed   : > { %6465 = vsyncadd (%p6356_p6), [#allocation5], 4294967040 }
0x17ee PF: > { %s7383_s0 = sld [smem:[#allocation7_spill]] }
0x17f4   : > { %s37_s27 = sadd.s32 1, %s7383_s0  }
0x17f5   : > { %p34_p5 = scmp.ge.s32.totalorder %s37_s27, 4  }
0x17f7   :  { %36 = sbr.rel (!%p34_p5) target bundleno = 24 (0x18), region = 231 }
0x17fe   :  { %5087 = vsyncpa [#allocation5], 1 }
0x17ff   :  { %5089 = vsyncpa [#allocation5 + $0x1], 1 }

</bundles_post_ra>
